<compile_context>
chip_gen: v6e
topology: v6e:2x2x1
jax: 0.10.0
libtpu: 0.0.40
codegen_flags: <defaults>
</compile_context>

<pallas_src>
import functools

import jax
import jax.numpy as jnp
from jax.experimental import pallas as pl
from jax.experimental.pallas import tpu as pltpu

HIDDEN = 512
NUM_CLASSES = 10
OUT_PAD = 128  # pad the 10-way head to one full lane register for clean MXU/VPU/store lowering


def _round_up(x, m):
    return (x + m - 1) // m * m


def _mlp_kernel(h_ref, w1_ref, b1_ref, w2_ref, b2_ref, w3_ref, b3_ref, o_ref):
    """Fused forward for one batch tile: two Linear+ReLU layers then the (padded) classifier head.

    MXU inputs are bf16; accumulation / bias / ReLU are f32.
    """
    # Single downcast point for the activation path.
    x = h_ref[...].astype(jnp.bfloat16)

    # Linear(512, 512) + ReLU
    x = jnp.dot(x, w1_ref[...], preferred_element_type=jnp.float32) + b1_ref[...]
    x = jnp.maximum(x, 0.0).astype(jnp.bfloat16)

    # Linear(512, 512) + ReLU
    x = jnp.dot(x, w2_ref[...], preferred_element_type=jnp.float32) + b2_ref[...]
    x = jnp.maximum(x, 0.0).astype(jnp.bfloat16)

    # Linear(512, 10)  (padded to 128 output lanes; real logits are the first 10 columns)
    x = jnp.dot(x, w3_ref[...], preferred_element_type=jnp.float32) + b3_ref[...]

    o_ref[...] = x.astype(o_ref.dtype)


def prepare_params(w1, b1, w2, b2, w3, b3):
    """One-time parameter prep (OUTSIDE the jitted forward path):
    pad the 10-wide head to 128 lanes and cast weights to bf16 (biases stay f32)."""
    w3p = jnp.zeros((HIDDEN, OUT_PAD), dtype=w3.dtype).at[:, :NUM_CLASSES].set(w3)
    b3p = jnp.zeros((1, OUT_PAD), dtype=b3.dtype).at[:, :NUM_CLASSES].set(b3)
    return (
        w1.astype(jnp.bfloat16), b1.astype(jnp.float32),
        w2.astype(jnp.bfloat16), b2.astype(jnp.float32),
        w3p.astype(jnp.bfloat16), b3p.astype(jnp.float32),
    )


@functools.partial(jax.jit, static_argnames=("block_b", "single_buffer_weights"))
def label_predictor_forward(h, w1, b1, w2, b2, w3p, b3p, *, block_b=256,
                            single_buffer_weights=True):
    """h: [B, 512] float32 -> logits [B, 10] float32.

    Weights come from prepare_params (bf16, head padded to 128 lanes).
    block_b: batch tile (sweep 256-512 for large B; on v7x keep the grid length >= 2
    so the "parallel" batch axis shards across both TensorCores).
    """
    B, F = h.shape
    assert F == HIDDEN

    # Effective tile: never larger than the (sublane-aligned) batch; pad batch to a tile multiple.
    bb = min(block_b, _round_up(B, 8))
    Bp = _round_up(B, bb)
    if Bp != B:
        h = jnp.pad(h, ((0, Bp - B), (0, 0)))

    # Weights never change across grid steps -> single-buffer them (frees VMEM for bigger tiles).
    w_mode = {"pipeline_mode": pl.Buffered(1)} if single_buffer_weights else {}

    grid = (Bp // bb,)

    out_padded = pl.pallas_call(
        _mlp_kernel,
        out_shape=jax.ShapeDtypeStruct((Bp, OUT_PAD), jnp.float32),
        grid_spec=pltpu.PrefetchScalarGridSpec(
            num_scalar_prefetch=0,
            grid=grid,
            in_specs=[
                pl.BlockSpec((bb, HIDDEN), lambda i: (i, 0)),                 # h tile
                pl.BlockSpec((HIDDEN, HIDDEN), lambda i: (0, 0), **w_mode),   # w1 (resident, bf16)
                pl.BlockSpec((1, HIDDEN), lambda i: (0, 0), **w_mode),        # b1 (f32)
                pl.BlockSpec((HIDDEN, HIDDEN), lambda i: (0, 0), **w_mode),   # w2 (resident, bf16)
                pl.BlockSpec((1, HIDDEN), lambda i: (0, 0), **w_mode),        # b2 (f32)
                pl.BlockSpec((HIDDEN, OUT_PAD), lambda i: (0, 0), **w_mode),  # w3 (padded, bf16)
                pl.BlockSpec((1, OUT_PAD), lambda i: (0, 0), **w_mode),       # b3 (padded, f32)
            ],
            out_specs=pl.BlockSpec((bb, OUT_PAD), lambda i: (i, 0)),
        ),
        compiler_params=pltpu.CompilerParams(
            dimension_semantics=("parallel",),
            vmem_limit_bytes=64 * 1024 * 1024,
        ),
    )(h, w1, b1, w2, b2, w3p, b3p)

    # Drop batch padding and padded logit lanes. (Downstream consumers that fuse softmax/argmax
    # could instead take the padded [Bp, 128] slab directly and slice lazily.)
    return out_padded[:B, :NUM_CLASSES]


def _init_params(key):
    """Deterministic init matching the PyTorch module's parameter shapes.

    PyTorch nn.Linear stores weight as [out, in]; we build [in, out] directly
    (equivalent to the transpose) since the kernel computes x @ W + b.
    """
    k1, k2, k3, k4, k5, k6 = jax.random.split(key, 6)
    s = 1.0 / jnp.sqrt(HIDDEN)
    w1 = jax.random.uniform(k1, (HIDDEN, HIDDEN), jnp.float32, -s, s)
    b1 = jax.random.uniform(k2, (1, HIDDEN), jnp.float32, -s, s)
    w2 = jax.random.uniform(k3, (HIDDEN, HIDDEN), jnp.float32, -s, s)
    b2 = jax.random.uniform(k4, (1, HIDDEN), jnp.float32, -s, s)
    w3 = jax.random.uniform(k5, (HIDDEN, NUM_CLASSES), jnp.float32, -s, s)
    b3 = jax.random.uniform(k6, (1, NUM_CLASSES), jnp.float32, -s, s)
    return w1, b1, w2, b2, w3, b3


def _reference_f32(h, w1, b1, w2, b2, w3, b3):
    x = jnp.maximum(h @ w1 + b1, 0.0)
    x = jnp.maximum(x @ w2 + b2, 0.0)
    return x @ w3 + b3


def _reference_bf16(h, w1b, b1, w2b, b2, w3pb, b3p):
    """Same bf16-in / f32-accumulate math as the kernel, in plain XLA."""
    x = h.astype(jnp.bfloat16)
    x = jnp.dot(x, w1b, preferred_element_type=jnp.float32) + b1
    x = jnp.maximum(x, 0.0).astype(jnp.bfloat16)
    x = jnp.dot(x, w2b, preferred_element_type=jnp.float32) + b2
    x = jnp.maximum(x, 0.0).astype(jnp.bfloat16)
    x = jnp.dot(x, w3pb, preferred_element_type=jnp.float32) + b3p
    return x[:, :NUM_CLASSES]


def _run(h, params, **kw):
    try:
        out = label_predictor_forward(h, *params, single_buffer_weights=True, **kw)
    except Exception:
        # Fallback if single-buffered resident weights (pl.Buffered(1)) are rejected on this build.
        out = label_predictor_forward(h, *params, single_buffer_weights=False, **kw)
    return jax.block_until_ready(out)


if __name__ == "__main__":
    key = jax.random.PRNGKey(0)
    kp, kx1, kx2 = jax.random.split(key, 3)

    raw_params = _init_params(kp)            # f32, PyTorch-equivalent parameters
    params = prepare_params(*raw_params)     # bf16 weights + padded head, done once

    # Small demo batch; feature dim is fixed at 512 by the module definition.
    B = 64
    h = jax.random.normal(kx1, (B, HIDDEN), dtype=jnp.float32)
    logits = _run(h, params, block_b=256)
    assert logits.shape == (B, NUM_CLASSES)

    # Exact-math check (same bf16-in / f32-accumulate recipe as the kernel).
    ref_bf16 = _reference_bf16(h, *params)
    assert jnp.allclose(logits, ref_bf16, atol=1e-2, rtol=1e-2), "mismatch vs bf16 reference"

    # Sanity check vs the full-f32 PyTorch-equivalent forward (loose tolerance for bf16 MXU feed).
    ref_f32 = _reference_f32(h, *raw_params)
    assert jnp.allclose(logits, ref_f32, atol=1e-1, rtol=1e-1), "mismatch vs f32 reference"

    # Also exercise a batch that is not a multiple of the tile (padding path + multi-step grid).
    B2 = 100
    h2 = jax.random.normal(kx2, (B2, HIDDEN), dtype=jnp.float32)
    logits2 = _run(h2, params, block_b=64)
    assert logits2.shape == (B2, NUM_CLASSES)
    ref2 = _reference_bf16(h2, *params)
    assert jnp.allclose(logits2, ref2, atol=1e-2, rtol=1e-2), "mismatch on padded batch"

    print("KERNEL_OK")
</pallas_src>

<mosaic_0001>
module attributes {stable_mosaic.version = 11 : i64} {
  func.func @_mlp_kernel(%arg0: i32, %arg1: memref<64x512xf32, #tpu.memory_space<vmem>>, %arg2: memref<512x512xbf16, #tpu.memory_space<vmem>>, %arg3: memref<1x512xf32, #tpu.memory_space<vmem>>, %arg4: memref<512x512xbf16, #tpu.memory_space<vmem>>, %arg5: memref<1x512xf32, #tpu.memory_space<vmem>>, %arg6: memref<512x128xbf16, #tpu.memory_space<vmem>>, %arg7: memref<1x128xf32, #tpu.memory_space<vmem>>, %arg8: memref<64x128xf32, #tpu.memory_space<vmem>>) attributes {dimension_semantics = [#tpu.dimension_semantics<parallel>], iteration_bounds = array<i64: 1>, scalar_prefetch = 0 : i64, scratch_operands = 0 : i64, tpu.core_type = #tpu.core_type<tc>, window_params = [{transform_indices = @transform_0, window_bounds = array<i64: 64, 512>}, {pipeline_mode = #tpu.pipeline_mode<synchronous>, transform_indices = @transform_1, window_bounds = array<i64: 512, 512>}, {pipeline_mode = #tpu.pipeline_mode<synchronous>, transform_indices = @transform_2, window_bounds = array<i64: 1, 512>}, {pipeline_mode = #tpu.pipeline_mode<synchronous>, transform_indices = @transform_3, window_bounds = array<i64: 512, 512>}, {pipeline_mode = #tpu.pipeline_mode<synchronous>, transform_indices = @transform_4, window_bounds = array<i64: 1, 512>}, {pipeline_mode = #tpu.pipeline_mode<synchronous>, transform_indices = @transform_5, window_bounds = array<i64: 512, 128>}, {pipeline_mode = #tpu.pipeline_mode<synchronous>, transform_indices = @transform_6, window_bounds = array<i64: 1, 128>}, {transform_indices = @transform_7, window_bounds = array<i64: 64, 128>}]} {
    %c0 = arith.constant 0 : index
    %c0_0 = arith.constant 0 : index
    %0 = vector.load %arg1[%c0, %c0_0] : memref<64x512xf32, #tpu.memory_space<vmem>>, vector<64x512xf32>
    %1 = arith.truncf %0 : vector<64x512xf32> to vector<64x512xbf16>
    %c0_1 = arith.constant 0 : index
    %c0_2 = arith.constant 0 : index
    %2 = vector.load %arg2[%c0_1, %c0_2] : memref<512x512xbf16, #tpu.memory_space<vmem>>, vector<512x512xbf16>
    %cst = arith.constant dense<0.000000e+00> : vector<64x512xf32>
    %3 = tpu.matmul %1, %2, %cst {dimension_numbers = #tpu.dot_dimension_numbers<[1], [0], [0], [1], [0, 0, 1, 1], [], []>} : vector<64x512xbf16>, vector<512x512xbf16>, vector<64x512xf32> -> vector<64x512xf32>
    %c0_3 = arith.constant 0 : index
    %c0_4 = arith.constant 0 : index
    %4 = vector.load %arg3[%c0_3, %c0_4] : memref<1x512xf32, #tpu.memory_space<vmem>>, vector<1x512xf32>
    %5 = vector.broadcast %4 : vector<1x512xf32> to vector<64x512xf32>
    %6 = arith.addf %3, %5 : vector<64x512xf32>
    %cst_5 = arith.constant 0.000000e+00 : f32
    %7 = vector.broadcast %cst_5 : f32 to vector<64x512xf32>
    %8 = arith.maximumf %6, %7 : vector<64x512xf32>
    %9 = arith.truncf %8 : vector<64x512xf32> to vector<64x512xbf16>
    %c0_6 = arith.constant 0 : index
    %c0_7 = arith.constant 0 : index
    %10 = vector.load %arg4[%c0_6, %c0_7] : memref<512x512xbf16, #tpu.memory_space<vmem>>, vector<512x512xbf16>
    %cst_8 = arith.constant dense<0.000000e+00> : vector<64x512xf32>
    %11 = tpu.matmul %9, %10, %cst_8 {dimension_numbers = #tpu.dot_dimension_numbers<[1], [0], [0], [1], [0, 0, 1, 1], [], []>} : vector<64x512xbf16>, vector<512x512xbf16>, vector<64x512xf32> -> vector<64x512xf32>
    %c0_9 = arith.constant 0 : index
    %c0_10 = arith.constant 0 : index
    %12 = vector.load %arg5[%c0_9, %c0_10] : memref<1x512xf32, #tpu.memory_space<vmem>>, vector<1x512xf32>
    %13 = vector.broadcast %12 : vector<1x512xf32> to vector<64x512xf32>
    %14 = arith.addf %11, %13 : vector<64x512xf32>
    %cst_11 = arith.constant 0.000000e+00 : f32
    %15 = vector.broadcast %cst_11 : f32 to vector<64x512xf32>
    %16 = arith.maximumf %14, %15 : vector<64x512xf32>
    %17 = arith.truncf %16 : vector<64x512xf32> to vector<64x512xbf16>
    %c0_12 = arith.constant 0 : index
    %c0_13 = arith.constant 0 : index
    %18 = vector.load %arg6[%c0_12, %c0_13] : memref<512x128xbf16, #tpu.memory_space<vmem>>, vector<512x128xbf16>
    %cst_14 = arith.constant dense<0.000000e+00> : vector<64x128xf32>
    %19 = tpu.matmul %17, %18, %cst_14 {dimension_numbers = #tpu.dot_dimension_numbers<[1], [0], [0], [1], [0, 0, 1, 1], [], []>} : vector<64x512xbf16>, vector<512x128xbf16>, vector<64x128xf32> -> vector<64x128xf32>
    %c0_15 = arith.constant 0 : index
    %c0_16 = arith.constant 0 : index
    %20 = vector.load %arg7[%c0_15, %c0_16] : memref<1x128xf32, #tpu.memory_space<vmem>>, vector<1x128xf32>
    %21 = vector.broadcast %20 : vector<1x128xf32> to vector<64x128xf32>
    %22 = arith.addf %19, %21 : vector<64x128xf32>
    %c0_17 = arith.constant 0 : index
    %c0_18 = arith.constant 0 : index
    %23 = vector.load %arg8[%c0_17, %c0_18] : memref<64x128xf32, #tpu.memory_space<vmem>>, vector<64x128xf32>
    tpu.vector_store %arg8[%c0_17, %c0_18], %22 {strides = array<i32>} : memref<64x128xf32, #tpu.memory_space<vmem>>, vector<64x128xf32>,
    return
  }
  func.func @transform_0(%arg0: i32) -> (i32, i32) {
    %c0_i32 = arith.constant 0 : i32
    %c0_i32_0 = arith.constant 0 : i32
    return %arg0, %c0_i32 : i32, i32
  }
  func.func @transform_1(%arg0: i32) -> (i32, i32) {
    %c0_i32 = arith.constant 0 : i32
    %c0_i32_0 = arith.constant 0 : i32
    %c0_i32_1 = arith.constant 0 : i32
    return %c0_i32, %c0_i32_0 : i32, i32
  }
  func.func @transform_2(%arg0: i32) -> (i32, i32) {
    %c0_i32 = arith.constant 0 : i32
    %c0_i32_0 = arith.constant 0 : i32
    %c0_i32_1 = arith.constant 0 : i32
    return %c0_i32, %c0_i32_0 : i32, i32
  }
  func.func @transform_3(%arg0: i32) -> (i32, i32) {
    %c0_i32 = arith.constant 0 : i32
    %c0_i32_0 = arith.constant 0 : i32
    %c0_i32_1 = arith.constant 0 : i32
    return %c0_i32, %c0_i32_0 : i32, i32
  }
  func.func @transform_4(%arg0: i32) -> (i32, i32) {
    %c0_i32 = arith.constant 0 : i32
    %c0_i32_0 = arith.constant 0 : i32
    %c0_i32_1 = arith.constant 0 : i32
    return %c0_i32, %c0_i32_0 : i32, i32
  }
  func.func @transform_5(%arg0: i32) -> (i32, i32) {
    %c0_i32 = arith.constant 0 : i32
    %c0_i32_0 = arith.constant 0 : i32
    %c0_i32_1 = arith.constant 0 : i32
    return %c0_i32, %c0_i32_0 : i32, i32
  }
  func.func @transform_6(%arg0: i32) -> (i32, i32) {
    %c0_i32 = arith.constant 0 : i32
    %c0_i32_0 = arith.constant 0 : i32
    %c0_i32_1 = arith.constant 0 : i32
    return %c0_i32, %c0_i32_0 : i32, i32
  }
  func.func @transform_7(%arg0: i32) -> (i32, i32) {
    %c0_i32 = arith.constant 0 : i32
    %c0_i32_0 = arith.constant 0 : i32
    return %arg0, %c0_i32 : i32, i32
  }
}

module attributes {stable_mosaic.version = 11 : i64} {
  func.func @_mlp_kernel(%arg0: i32, %arg1: memref<64x512xf32, #tpu.memory_space<vmem>>, %arg2: memref<512x512xbf16, #tpu.memory_space<vmem>>, %arg3: memref<1x512xf32, #tpu.memory_space<vmem>>, %arg4: memref<512x512xbf16, #tpu.memory_space<vmem>>, %arg5: memref<1x512xf32, #tpu.memory_space<vmem>>, %arg6: memref<512x128xbf16, #tpu.memory_space<vmem>>, %arg7: memref<1x128xf32, #tpu.memory_space<vmem>>, %arg8: memref<64x128xf32, #tpu.memory_space<vmem>>) attributes {dimension_semantics = [#tpu.dimension_semantics<parallel>], iteration_bounds = array<i64: 1>, scalar_prefetch = 0 : i64, scratch_operands = 0 : i64, tpu.core_type = #tpu.core_type<tc>, window_params = [{transform_indices = @transform_0, window_bounds = array<i64: 64, 512>}, {pipeline_mode = #tpu.pipeline_mode<synchronous>, transform_indices = @transform_1, window_bounds = array<i64: 512, 512>}, {pipeline_mode = #tpu.pipeline_mode<synchronous>, transform_indices = @transform_2, window_bounds = array<i64: 1, 512>}, {pipeline_mode = #tpu.pipeline_mode<synchronous>, transform_indices = @transform_3, window_bounds = array<i64: 512, 512>}, {pipeline_mode = #tpu.pipeline_mode<synchronous>, transform_indices = @transform_4, window_bounds = array<i64: 1, 512>}, {pipeline_mode = #tpu.pipeline_mode<synchronous>, transform_indices = @transform_5, window_bounds = array<i64: 512, 128>}, {pipeline_mode = #tpu.pipeline_mode<synchronous>, transform_indices = @transform_6, window_bounds = array<i64: 1, 128>}, {transform_indices = @transform_7, window_bounds = array<i64: 64, 128>}]} {
    %c0 = arith.constant 0 : index
    %c0_0 = arith.constant 0 : index
    %0 = vector.load %arg1[%c0, %c0_0] : memref<64x512xf32, #tpu.memory_space<vmem>>, vector<64x512xf32>
    %1 = arith.truncf %0 : vector<64x512xf32> to vector<64x512xbf16>
    %c0_1 = arith.constant 0 : index
    %c0_2 = arith.constant 0 : index
    %2 = vector.load %arg2[%c0_1, %c0_2] : memref<512x512xbf16, #tpu.memory_space<vmem>>, vector<512x512xbf16>
    %cst = arith.constant dense<0.000000e+00> : vector<64x512xf32>
    %3 = tpu.matmul %1, %2, %cst {dimension_numbers = #tpu.dot_dimension_numbers<[1], [0], [0], [1], [0, 0, 1, 1], [], []>} : vector<64x512xbf16>, vector<512x512xbf16>, vector<64x512xf32> -> vector<64x512xf32>
    %c0_3 = arith.constant 0 : index
    %c0_4 = arith.constant 0 : index
    %4 = vector.load %arg3[%c0_3, %c0_4] : memref<1x512xf32, #tpu.memory_space<vmem>>, vector<1x512xf32>
    %5 = vector.broadcast %4 : vector<1x512xf32> to vector<64x512xf32>
    %6 = arith.addf %3, %5 : vector<64x512xf32>
    %cst_5 = arith.constant 0.000000e+00 : f32
    %7 = vector.broadcast %cst_5 : f32 to vector<64x512xf32>
    %8 = arith.maximumf %6, %7 : vector<64x512xf32>
    %9 = arith.truncf %8 : vector<64x512xf32> to vector<64x512xbf16>
    %c0_6 = arith.constant 0 : index
    %c0_7 = arith.constant 0 : index
    %10 = vector.load %arg4[%c0_6, %c0_7] : memref<512x512xbf16, #tpu.memory_space<vmem>>, vector<512x512xbf16>
    %cst_8 = arith.constant dense<0.000000e+00> : vector<64x512xf32>
    %11 = tpu.matmul %9, %10, %cst_8 {dimension_numbers = #tpu.dot_dimension_numbers<[1], [0], [0], [1], [0, 0, 1, 1], [], []>} : vector<64x512xbf16>, vector<512x512xbf16>, vector<64x512xf32> -> vector<64x512xf32>
    %c0_9 = arith.constant 0 : index
    %c0_10 = arith.constant 0 : index
    %12 = vector.load %arg5[%c0_9, %c0_10] : memref<1x512xf32, #tpu.memory_space<vmem>>, vector<1x512xf32>
    %13 = vector.broadcast %12 : vector<1x512xf32> to vector<64x512xf32>
    %14 = arith.addf %11, %13 : vector<64x512xf32>
    %cst_11 = arith.constant 0.000000e+00 : f32
    %15 = vector.broadcast %cst_11 : f32 to vector<64x512xf32>
    %16 = arith.maximumf %14, %15 : vector<64x512xf32>
    %17 = arith.truncf %16 : vector<64x512xf32> to vector<64x512xbf16>
    %c0_12 = arith.constant 0 : index
    %c0_13 = arith.constant 0 : index
    %18 = vector.load %arg6[%c0_12, %c0_13] : memref<512x128xbf16, #tpu.memory_space<vmem>>, vector<512x128xbf16>
    %cst_14 = arith.constant dense<0.000000e+00> : vector<64x128xf32>
    %19 = tpu.matmul %17, %18, %cst_14 {dimension_numbers = #tpu.dot_dimension_numbers<[1], [0], [0], [1], [0, 0, 1, 1], [], []>} : vector<64x512xbf16>, vector<512x128xbf16>, vector<64x128xf32> -> vector<64x128xf32>
    %c0_15 = arith.constant 0 : index
    %c0_16 = arith.constant 0 : index
    %20 = vector.load %arg7[%c0_15, %c0_16] : memref<1x128xf32, #tpu.memory_space<vmem>>, vector<1x128xf32>
    %21 = vector.broadcast %20 : vector<1x128xf32> to vector<64x128xf32>
    %22 = arith.addf %19, %21 : vector<64x128xf32>
    %c0_17 = arith.constant 0 : index
    %c0_18 = arith.constant 0 : index
    %23 = vector.load %arg8[%c0_17, %c0_18] : memref<64x128xf32, #tpu.memory_space<vmem>>, vector<64x128xf32>
    tpu.vector_store %arg8[%c0_17, %c0_18], %22 {strides = array<i32>} : memref<64x128xf32, #tpu.memory_space<vmem>>, vector<64x128xf32>,
    return
  }
  func.func @transform_0(%arg0: i32) -> (i32, i32) {
    %c0_i32 = arith.constant 0 : i32
    %c0_i32_0 = arith.constant 0 : i32
    return %arg0, %c0_i32 : i32, i32
  }
  func.func @transform_1(%arg0: i32) -> (i32, i32) {
    %c0_i32 = arith.constant 0 : i32
    %c0_i32_0 = arith.constant 0 : i32
    %c0_i32_1 = arith.constant 0 : i32
    return %c0_i32, %c0_i32_0 : i32, i32
  }
  func.func @transform_2(%arg0: i32) -> (i32, i32) {
    %c0_i32 = arith.constant 0 : i32
    %c0_i32_0 = arith.constant 0 : i32
    %c0_i32_1 = arith.constant 0 : i32
    return %c0_i32, %c0_i32_0 : i32, i32
  }
  func.func @transform_3(%arg0: i32) -> (i32, i32) {
    %c0_i32 = arith.constant 0 : i32
    %c0_i32_0 = arith.constant 0 : i32
    %c0_i32_1 = arith.constant 0 : i32
    return %c0_i32, %c0_i32_0 : i32, i32
  }
  func.func @transform_4(%arg0: i32) -> (i32, i32) {
    %c0_i32 = arith.constant 0 : i32
    %c0_i32_0 = arith.constant 0 : i32
    %c0_i32_1 = arith.constant 0 : i32
    return %c0_i32, %c0_i32_0 : i32, i32
  }
  func.func @transform_5(%arg0: i32) -> (i32, i32) {
    %c0_i32 = arith.constant 0 : i32
    %c0_i32_0 = arith.constant 0 : i32
    %c0_i32_1 = arith.constant 0 : i32
    return %c0_i32, %c0_i32_0 : i32, i32
  }
  func.func @transform_6(%arg0: i32) -> (i32, i32) {
    %c0_i32 = arith.constant 0 : i32
    %c0_i32_0 = arith.constant 0 : i32
    %c0_i32_1 = arith.constant 0 : i32
    return %c0_i32, %c0_i32_0 : i32, i32
  }
  func.func @transform_7(%arg0: i32) -> (i32, i32) {
    %c0_i32 = arith.constant 0 : i32
    %c0_i32_0 = arith.constant 0 : i32
    return %arg0, %c0_i32 : i32, i32
  }
}

</mosaic_0001>

<bundles_post_ra>
// kernel: label_predictor_forward.1
= control target key start
LH: loop header
LB: loop body
LE: loop exit
PB: predicated region body
PF: predicated region fallthrough
CT: control target
= control target key end

     0   :  { %12 = vsyncpa [#allocation3], 0  ;;  %s4049_s0 = inlined_call_operand.hbm [shape: f32[64,512], index: 0, kind: input, shape index: {}]   ;;  %s4050_s1 = inlined_call_operand.hbm [shape: bf16[512,512], index: 1, kind: input, shape index: {}]   ;;  %s4051_s2 = inlined_call_operand.hbm [shape: f32[1,512], index: 2, kind: input, shape index: {}]   ;;  %s4052_s3 = inlined_call_operand.hbm [shape: bf16[512,512], index: 3, kind: input, shape index: {}]   ;;  %s4053_s4 = inlined_call_operand.vmem [shape: f32[1,512], index: 4, kind: input, shape index: {}]   ;;  %s4054_s5 = inlined_call_operand.hbm [shape: bf16[512,128], index: 5, kind: input, shape index: {}]   ;;  %s4055_s6 = inlined_call_operand.vmem [shape: f32[1,128], index: 6, kind: input, shape index: {}]   ;;  %s4056_s7 = inlined_call_operand.vmem [shape: f32[64,128], index: 7, kind: output, shape index: {}]  }
   0x1   :  { %13 = vsyncpa [#allocation5], 0 }
   0x2   :  { %14 = vsyncpa [#allocation8], 0  ;;  %s3711_s24 = smov [#allocation4]  }
   0x3   :  { %s32_s25 = sshll.u32 %s3711_s24, 4  ;;  %s33_s25 = int_to_ptr.vmem [resolvable:$true] %s32_s25 }
   0x4   :  { %s3613_s26 = scalar_lea.vmem %s33_s25, 16384  ;;  %p3618_p1 = scmp.lt.s32.totalorder %s33_s25, %s33_s25 }
   0x5   :  { %p3614_p0 = scmp.ne.s32.totalorder %s33_s25, %s3613_s26  ;;  %p3619_p2 = scmp.lt.s32.totalorder %s3613_s26, %s3613_s26 }
   0x7   :  { %p3620_p3 = por %p3619_p2, %p3618_p1 }
   0x9   :  { %p3621_p4 = pnand %p3620_p3, %p3614_p0 }
   0xb   :  { %3624 = shalt.err (!%p3621_p4)
}
   0xc   :  { %s3712_s27 = smov 256   ;;  %s3713_s28 = smov 16  }
   0xd   :  { %38 = dma.hbm_to_vmem [thread:$0]  %s4050_s1, 16384, %s33_s25, [#allocation5], %s3712_s27, %s3712_s27, %s3713_s28  }
   0xe   :  { %s3714_s8 = smov [#allocation7]   ;;  %s3715_s10 = smov [#allocation2]  }
   0xf   :  { %s54_s9 = sshll.u32 %s3714_s8, 4  ;;  %s20_s11 = sshll.u32 %s3715_s10, 4  ;;  %s55_s9 = int_to_ptr.vmem [resolvable:$true] %s54_s9  ;;  %s21_s11 = int_to_ptr.vmem [resolvable:$true] %s20_s11 }
  0x10   :  { %s3633_s12 = scalar_lea.vmem %s55_s9, 16384  ;;  %p3638_p6 = scmp.lt.s32.totalorder %s55_s9, %s55_s9 }
  0x11   :  { %p3634_p5 = scmp.ne.s32.totalorder %s55_s9, %s3633_s12  ;;  %p3639_p7 = scmp.lt.s32.totalorder %s3633_s12, %s3633_s12 }
  0x13   :  { %p3640_p8 = por %p3639_p7, %p3638_p6 }
  0x15   :  { %p3641_p9 = pnand %p3640_p8, %p3634_p5 }
  0x17   :  { %3644 = shalt.err (!%p3641_p9)
}
  0x18   :  { %60 = dma.hbm_to_vmem [thread:$0]  %s4052_s3, 16384, %s55_s9, [#allocation8], %s3712_s27, %s3712_s27, %s3713_s28  }
  0x19   :  { %s3653_s15 = scalar_lea.vmem %s21_s11, 4096  ;;  %p3658_p11 = scmp.lt.s32.totalorder %s21_s11, %s21_s11 }
  0x1a   :  { %p3654_p10 = scmp.ne.s32.totalorder %s21_s11, %s3653_s15  ;;  %p3659_p12 = scmp.lt.s32.totalorder %s3653_s15, %s3653_s15 }
  0x1c   :  { %p3660_p13 = por %p3659_p12, %p3658_p11 }
  0x1e   :  { %p3661_p0 = pnand %p3660_p13, %p3654_p10 }
  0x20   :  { %3664 = shalt.err (!%p3661_p0)
}
  0x21   :  { %s3716_s1 = smov 512   ;;  %s3717_s16 = smov 32  }
  0x22   :  { %26 = dma.hbm_to_vmem [thread:$0]  %s4049_s0, 4096, %s21_s11, [#allocation3], %s3716_s1, %s3716_s1, %s3717_s16  }
  0x23   :  { %s3718_s19 = smov [#allocation6]   ;;  %s3719_s21 = smov [#allocation9]  }
  0x24   :  { %s45_s20 = sshll.u32 %s3718_s19, 4  ;;  %s68_s22 = sshll.u32 %s3719_s21, 4  ;;  %s46_s20 = int_to_ptr.vmem [resolvable:$true] %s45_s20  ;;  %s69_s22 = int_to_ptr.vmem [resolvable:$true] %s68_s22 }
  0x25   :  { %s3673_s3 = scalar_lea.vmem %s46_s20, 64  ;;  %p3678_p2 = scmp.lt.s32.totalorder %s46_s20, %s46_s20 }
  0x26   :  { %p3674_p1 = scmp.ne.s32.totalorder %s46_s20, %s3673_s3  ;;  %p3679_p3 = scmp.lt.s32.totalorder %s3673_s3, %s3673_s3 }
  0x28   :  { %p3680_p4 = por %p3679_p3, %p3678_p2 }
  0x2a   :  { %p3681_p5 = pnand %p3680_p4, %p3674_p1 }
  0x2c   :  { %3684 = shalt.err (!%p3681_p5)
}
  0x2d   :  { %48 = dma.hbm_to_vmem [thread:$0]  %s4051_s2, 64, %s46_s20, [#allocation5]  }
  0x2e   :  { %s3693_s25 = scalar_lea.vmem %s69_s22, 4096  ;;  %p3698_p7 = scmp.lt.s32.totalorder %s69_s22, %s69_s22 }
  0x2f   :  { %p3694_p6 = scmp.ne.s32.totalorder %s69_s22, %s3693_s25  ;;  %p3699_p8 = scmp.lt.s32.totalorder %s3693_s25, %s3693_s25 }
  0x31   :  { %p3700_p9 = por %p3699_p8, %p3698_p7 }
  0x33   :  { %p3701_p10 = pnand %p3700_p9, %p3694_p6 }
  0x35   :  { %3704 = shalt.err (!%p3701_p10)
}
  0x36   :  { %s3720_s0 = smov 64   ;;  %s3721_s26 = smov 4  }
  0x37   :  { %74 = dma.hbm_to_vmem [thread:$0]  %s4054_s5, 4096, %s69_s22, [#allocation8], %s3720_s0, %s3720_s0, %s3721_s26  }
  0x38   :  { %3705 = dma.done.wait [#allocation3], 4096  }
  0x39   :  { %3706 = vsyncadd [#allocation3], 4294963200 }
  0x3a   :  { %3707 = dma.done.wait [#allocation5], 16448  }
  0x3b   :  { %3708 = vsyncadd [#allocation5], 4294950848 }
  0x3c   :  { %3709 = dma.done.wait [#allocation8], 20480  }
  0x3d   :  { %3710 = vsyncadd [#allocation8], 4294946816  ;;  %v3189_v0 = vld [vmem:[#allocation4 + $0xe4] ss:$16 sps:$4 sm:$0xff]   ;;  %v3193_v2 = vld [vmem:[#allocation4 + $0xe0] ss:$16 sps:$4 sm:$0xff]  }
  0x3e   :  { %v3191_v1 = vld [vmem:[#allocation4 + $0x2e4] ss:$16 sps:$4 sm:$0xff]   ;;  %931 = vmatprep.subr.bf16.mxu0 %v3189_v0  ;;  %v3194_v3 = vld [vmem:[#allocation4 + $0x2e0] ss:$16 sps:$4 sm:$0xff]   ;;  %v94_v46 = vld [vmem:[#allocation2 + $0x8] sm:$0xff] }
  0x3f   :  { %1004 = vmatprep.subr.bf16.mxu1 %v3191_v1  ;;  %v3195_v4 = vld [vmem:[#allocation4 + $0xc4] ss:$16 sps:$4 sm:$0xff]   ;;  %932 = vmatpush1.bf16.msra.mxu0 %v3193_v2  ;;  %v3199_v6 = vld [vmem:[#allocation4 + $0xc0] ss:$16 sps:$4 sm:$0xff]   ;;  %v98_v47 = vld [vmem:[#allocation2 + $0x28] sm:$0xff] }
  0x40   :  { %1005 = vmatpush1.bf16.msra.mxu1 %v3194_v3  ;;  %v3197_v5 = vld [vmem:[#allocation4 + $0x2c4] ss:$16 sps:$4 sm:$0xff]   ;;  %933 = vmatprep.subr.bf16.mxu0 %v3195_v4  ;;  %v3200_v7 = vld [vmem:[#allocation4 + $0x2c0] ss:$16 sps:$4 sm:$0xff]   ;;  %v96_v48 = vld [vmem:[#allocation2 + $0x18] sm:$0xff]  ;;  %v3777_v53 = vpack.c.bf16 %v98_v47, %v94_v46 }
  0x41   :  { %1006 = vmatprep.subr.bf16.mxu1 %v3197_v5  ;;  %v3201_v8 = vld [vmem:[#allocation4 + $0xa4] ss:$16 sps:$4 sm:$0xff]   ;;  %v3205_v10 = vld [vmem:[#allocation4 + $0xa0] ss:$16 sps:$4 sm:$0xff]   ;;  %v100_v49 = vld [vmem:[#allocation2 + $0x38] sm:$0xff] }
  0x42   :  { %v3203_v9 = vld [vmem:[#allocation4 + $0x2a4] ss:$16 sps:$4 sm:$0xff]   ;;  %v3206_v11 = vld [vmem:[#allocation4 + $0x2a0] ss:$16 sps:$4 sm:$0xff]   ;;  %v3779_v54 = vpack.c.bf16 %v100_v49, %v96_v48  ;;  %963 = vmatprep.mubr.bf16.mxu0 %v3777_v53  ;;  %v3311_v48 = vld [vmem:[#allocation4 + $0x6c] ss:$16 sps:$4 sm:$0xff]  }
  0x43   :  { %934 = vmatpush1.bf16.msra.mxu0 %v3199_v6  ;;  %v3207_v12 = vld [vmem:[#allocation4 + $0x84] ss:$16 sps:$4 sm:$0xff]   ;;  %v3211_v14 = vld [vmem:[#allocation4 + $0x80] ss:$16 sps:$4 sm:$0xff]  }
  0x44   :  { %1007 = vmatpush1.bf16.msra.mxu1 %v3200_v7  ;;  %935 = vmatprep.subr.bf16.mxu0 %v3201_v8  ;;  %v3209_v13 = vld [vmem:[#allocation4 + $0x284] ss:$16 sps:$4 sm:$0xff]   ;;  %v3212_v15 = vld [vmem:[#allocation4 + $0x280] ss:$16 sps:$4 sm:$0xff]  }
  0x45   :  { %1008 = vmatprep.subr.bf16.mxu1 %v3203_v9  ;;  %v3213_v16 = vld [vmem:[#allocation4 + $0x64] ss:$16 sps:$4 sm:$0xff]   ;;  %v3217_v18 = vld [vmem:[#allocation4 + $0x60] ss:$16 sps:$4 sm:$0xff]   ;;  %1036 = vmatprep.mubr.bf16.mxu1 %v3779_v54 }
  0x46   :  { %v3215_v17 = vld [vmem:[#allocation4 + $0x264] ss:$16 sps:$4 sm:$0xff]   ;;  %v3218_v19 = vld [vmem:[#allocation4 + $0x260] ss:$16 sps:$4 sm:$0xff]  }
  0x47   :  { %936 = vmatpush1.bf16.msra.mxu0 %v3205_v10  ;;  %v3219_v20 = vld [vmem:[#allocation4 + $0x44] ss:$16 sps:$4 sm:$0xff]   ;;  %v3223_v22 = vld [vmem:[#allocation4 + $0x40] ss:$16 sps:$4 sm:$0xff]   ;;  %v3287_v10 = vld [vmem:[#allocation4 + $0xec] ss:$16 sps:$4 sm:$0xff]  }
  0x48   :  { %1009 = vmatpush1.bf16.msra.mxu1 %v3206_v11  ;;  %937 = vmatprep.subr.bf16.mxu0 %v3207_v12  ;;  %v3221_v21 = vld [vmem:[#allocation4 + $0x244] ss:$16 sps:$4 sm:$0xff]   ;;  %v3224_v23 = vld [vmem:[#allocation4 + $0x240] ss:$16 sps:$4 sm:$0xff]   ;;  %v3290_v11 = vld [vmem:[#allocation4 + $0x2ec] ss:$16 sps:$4 sm:$0xff]  }
  0x49   :  { %1010 = vmatprep.subr.bf16.mxu1 %v3209_v13  ;;  %v3225_v24 = vld [vmem:[#allocation4 + $0x24] ss:$16 sps:$4 sm:$0xff]   ;;  %v3229_v26 = vld [vmem:[#allocation4 + $0x20] ss:$16 sps:$4 sm:$0xff]   ;;  %v3285_v12 = vld [vmem:[#allocation4 + $0xe8] ss:$16 sps:$4 sm:$0xff]  }
  0x4a   :  { %v3227_v25 = vld [vmem:[#allocation4 + $0x224] ss:$16 sps:$4 sm:$0xff]   ;;  %v3230_v27 = vld [vmem:[#allocation4 + $0x220] ss:$16 sps:$4 sm:$0xff]   ;;  %v3288_v13 = vld [vmem:[#allocation4 + $0x2e8] ss:$16 sps:$4 sm:$0xff]  }
  0x4b   :  { %938 = vmatpush1.bf16.msra.mxu0 %v3211_v14  ;;  %v3231_v28 = vld [vmem:[#allocation4 + $0x4] ss:$16 sps:$4 sm:$0xff]   ;;  %v3235_v30 = vld [vmem:[#allocation4] ss:$16 sps:$4 sm:$0xff]   ;;  %v102_v14 = vld [vmem:[#allocation2 + $0x48] sm:$0xff] }
  0x4c   :  { %1011 = vmatpush1.bf16.msra.mxu1 %v3212_v15  ;;  %939 = vmatprep.subr.bf16.mxu0 %v3213_v16  ;;  %v3233_v29 = vld [vmem:[#allocation4 + $0x204] ss:$16 sps:$4 sm:$0xff]   ;;  %v3236_v31 = vld [vmem:[#allocation4 + $0x200] ss:$16 sps:$4 sm:$0xff]  }
  0x4d   :  { %1012 = vmatprep.subr.bf16.mxu1 %v3215_v17  ;;  %v3237_v32 = vld [vmem:[#allocation4 + $0x1e4] ss:$16 sps:$4 sm:$0xff]   ;;  %v3241_v34 = vld [vmem:[#allocation4 + $0x1e0] ss:$16 sps:$4 sm:$0xff]   ;;  %v106_v17 = vld [vmem:[#allocation2 + $0x68] sm:$0xff] }
  0x4e   :  { %v3239_v33 = vld [vmem:[#allocation4 + $0x3e4] ss:$16 sps:$4 sm:$0xff]   ;;  %v3242_v35 = vld [vmem:[#allocation4 + $0x3e0] ss:$16 sps:$4 sm:$0xff]  }
  0x4f   :  { %940 = vmatpush1.bf16.msra.mxu0 %v3217_v18  ;;  %v3243_v36 = vld [vmem:[#allocation4 + $0x1c4] ss:$16 sps:$4 sm:$0xff]   ;;  %v3247_v38 = vld [vmem:[#allocation4 + $0x1c0] ss:$16 sps:$4 sm:$0xff]   ;;  %v104_v18 = vld [vmem:[#allocation2 + $0x58] sm:$0xff] }
  0x50   :  { %1013 = vmatpush1.bf16.msra.mxu1 %v3218_v19  ;;  %941 = vmatprep.subr.bf16.mxu0 %v3219_v20  ;;  %v3245_v37 = vld [vmem:[#allocation4 + $0x3c4] ss:$16 sps:$4 sm:$0xff]   ;;  %v3248_v39 = vld [vmem:[#allocation4 + $0x3c0] ss:$16 sps:$4 sm:$0xff]   ;;  %v108_v19 = vld [vmem:[#allocation2 + $0x78] sm:$0xff] }
  0x51   :  { %1014 = vmatprep.subr.bf16.mxu1 %v3221_v21  ;;  %v3249_v40 = vld [vmem:[#allocation4 + $0x1a4] ss:$16 sps:$4 sm:$0xff]   ;;  %v3253_v42 = vld [vmem:[#allocation4 + $0x1a0] ss:$16 sps:$4 sm:$0xff]   ;;  %v3293_v20 = vld [vmem:[#allocation4 + $0xcc] ss:$16 sps:$4 sm:$0xff]  }
  0x52   :  { %v3251_v41 = vld [vmem:[#allocation4 + $0x3a4] ss:$16 sps:$4 sm:$0xff]   ;;  %v3254_v43 = vld [vmem:[#allocation4 + $0x3a0] ss:$16 sps:$4 sm:$0xff]   ;;  %v3296_v21 = vld [vmem:[#allocation4 + $0x2cc] ss:$16 sps:$4 sm:$0xff]  }
  0x53   :  { %942 = vmatpush1.bf16.msra.mxu0 %v3223_v22  ;;  %v3255_v44 = vld [vmem:[#allocation4 + $0x184] ss:$16 sps:$4 sm:$0xff]   ;;  %v3259_v50 = vld [vmem:[#allocation4 + $0x180] ss:$16 sps:$4 sm:$0xff]   ;;  %v3291_v22 = vld [vmem:[#allocation4 + $0xc8] ss:$16 sps:$4 sm:$0xff]  }
  0x54   :  { %1015 = vmatpush1.bf16.msra.mxu1 %v3224_v23  ;;  %943 = vmatprep.subr.bf16.mxu0 %v3225_v24  ;;  %v3257_v45 = vld [vmem:[#allocation4 + $0x384] ss:$16 sps:$4 sm:$0xff]   ;;  %v3260_v51 = vld [vmem:[#allocation4 + $0x380] ss:$16 sps:$4 sm:$0xff]   ;;  %v3294_v23 = vld [vmem:[#allocation4 + $0x2c8] ss:$16 sps:$4 sm:$0xff]   ;;  %v3787_v24 = vpack.c.bf16 %v106_v17, %v102_v14 }
  0x55   :  { %1016 = vmatprep.subr.bf16.mxu1 %v3227_v25  ;;  %v3261_v52 = vld [vmem:[#allocation4 + $0x164] ss:$16 sps:$4 sm:$0xff]   ;;  %v3265_v56 = vld [vmem:[#allocation4 + $0x160] ss:$16 sps:$4 sm:$0xff]   ;;  %v3329_v14 = vld [vmem:[#allocation4 + $0xc] ss:$16 sps:$4 sm:$0xff]  }
  0x56   :  { %v3263_v55 = vld [vmem:[#allocation4 + $0x364] ss:$16 sps:$4 sm:$0xff]   ;;  %v3266_v57 = vld [vmem:[#allocation4 + $0x360] ss:$16 sps:$4 sm:$0xff]   ;;  %v3332_v17 = vld [vmem:[#allocation4 + $0x20c] ss:$16 sps:$4 sm:$0xff]  }
  0x57   :  { %944 = vmatpush1.bf16.msra.mxu0 %v3229_v26  ;;  %v3267_v58 = vld [vmem:[#allocation4 + $0x144] ss:$16 sps:$4 sm:$0xff]   ;;  %v3271_v60 = vld [vmem:[#allocation4 + $0x140] ss:$16 sps:$4 sm:$0xff]   ;;  %v3789_v26 = vpack.c.bf16 %v108_v19, %v104_v18  ;;  %v3327_v18 = vld [vmem:[#allocation4 + $0x8] ss:$16 sps:$4 sm:$0xff]  }
  0x58   :  { %1017 = vmatpush1.bf16.msra.mxu1 %v3230_v27  ;;  %945 = vmatprep.subr.bf16.mxu0 %v3231_v28  ;;  %v3269_v59 = vld [vmem:[#allocation4 + $0x344] ss:$16 sps:$4 sm:$0xff]   ;;  %v3272_v61 = vld [vmem:[#allocation4 + $0x340] ss:$16 sps:$4 sm:$0xff]   ;;  %v3299_v28 = vld [vmem:[#allocation4 + $0xac] ss:$16 sps:$4 sm:$0xff]  }
  0x59   :  { %1018 = vmatprep.subr.bf16.mxu1 %v3233_v29  ;;  %v3273_v62 = vld [vmem:[#allocation4 + $0x124] ss:$16 sps:$4 sm:$0xff]   ;;  %v3277_v0 = vld [vmem:[#allocation4 + $0x120] ss:$16 sps:$4 sm:$0xff]   ;;  %v3330_v19 = vld [vmem:[#allocation4 + $0x208] ss:$16 sps:$4 sm:$0xff]  }
  0x5a   :  { %v3275_v63 = vld [vmem:[#allocation4 + $0x324] ss:$16 sps:$4 sm:$0xff]   ;;  %v3278_v1 = vld [vmem:[#allocation4 + $0x320] ss:$16 sps:$4 sm:$0xff]  }
  0x5b   :  { %946 = vmatpush1.bf16.msra.mxu0 %v3235_v30  ;;  %v3279_v2 = vld [vmem:[#allocation4 + $0x104] ss:$16 sps:$4 sm:$0xff]   ;;  %v3283_v4 = vld [vmem:[#allocation4 + $0x100] ss:$16 sps:$4 sm:$0xff]  }
  0x5c   :  { %1019 = vmatpush1.bf16.msra.mxu1 %v3236_v31  ;;  %947 = vmatprep.subr.bf16.mxu0 %v3237_v32  ;;  %v3281_v3 = vld [vmem:[#allocation4 + $0x304] ss:$16 sps:$4 sm:$0xff]   ;;  %v3284_v5 = vld [vmem:[#allocation4 + $0x300] ss:$16 sps:$4 sm:$0xff]   ;;  %v3302_v31 = vld [vmem:[#allocation4 + $0x2ac] ss:$16 sps:$4 sm:$0xff]  }
  0x5d   :  { %1020 = vmatprep.subr.bf16.mxu1 %v3239_v33  ;;  %v93_v6 = vld [vmem:[#allocation2] sm:$0xff]  ;;  %v95_v8 = vld [vmem:[#allocation2 + $0x10] sm:$0xff]  ;;  %v3297_v32 = vld [vmem:[#allocation4 + $0xa8] ss:$16 sps:$4 sm:$0xff]  }
  0x5e   :  { %v97_v7 = vld [vmem:[#allocation2 + $0x20] sm:$0xff]  ;;  %v99_v9 = vld [vmem:[#allocation2 + $0x30] sm:$0xff]  ;;  %v3300_v33 = vld [vmem:[#allocation4 + $0x2a8] ss:$16 sps:$4 sm:$0xff]  }
  0x5f   :  { %948 = vmatpush2.bf16.msra.mxu0 %v3241_v34  ;;  %v3783_v15 = vpack.c.bf16 %v97_v7, %v93_v6  ;;  %v3785_v16 = vpack.c.bf16 %v99_v9, %v95_v8  ;;  %v101_v25 = vld [vmem:[#allocation2 + $0x40] sm:$0xff]  ;;  %v103_v29 = vld [vmem:[#allocation2 + $0x50] sm:$0xff]  ;;  %v110_v34 = vld [vmem:[#allocation2 + $0x88] sm:$0xff] }
  0x60   :  { %1021 = vmatpush2.bf16.msra.mxu1 %v3242_v35  ;;  %949 = vmatprep.subr.bf16.mxu0 %v3243_v36  ;;  %v105_v27 = vld [vmem:[#allocation2 + $0x60] sm:$0xff]  ;;  %v107_v30 = vld [vmem:[#allocation2 + $0x70] sm:$0xff]  ;;  %v3323_v6 = vld [vmem:[#allocation4 + $0x2c] ss:$16 sps:$4 sm:$0xff]  }
  0x61   :  { %1022 = vmatprep.subr.bf16.mxu1 %v3245_v37  ;;  %v3795_v35 = vpack.c.bf16 %v105_v27, %v101_v25  ;;  %v3797_v36 = vpack.c.bf16 %v107_v30, %v103_v29  ;;  %v114_v37 = vld [vmem:[#allocation2 + $0xa8] sm:$0xff]  ;;  %v113_v46 = vld [vmem:[#allocation2 + $0xa0] sm:$0xff]  ;;  %v111_v49 = vld [vmem:[#allocation2 + $0x90] sm:$0xff] }
  0x62   :  { %v119_v7 = vld [vmem:[#allocation2 + $0xd0] sm:$0xff]  ;;  %v3326_v9 = vld [vmem:[#allocation4 + $0x22c] ss:$16 sps:$4 sm:$0xff]   ;;  %v3342_v29 = vld [vmem:[#allocation4 + $0x3c8] ss:$16 sps:$4 sm:$0xff]  }
  0x63   :  { %950 = vmatpush2.bf16.msra.mxu0 %v3247_v38  ;;  %v112_v38 = vld [vmem:[#allocation2 + $0x98] sm:$0xff]  ;;  %v123_v8 = vld [vmem:[#allocation2 + $0xf0] sm:$0xff] }
  0x64   :  { %1023 = vmatpush2.bf16.msra.mxu1 %v3248_v39  ;;  %951 = vmatprep.subr.bf16.mxu0 %v3249_v40  ;;  %v116_v39 = vld [vmem:[#allocation2 + $0xb8] sm:$0xff] }
  0x65   :  { %1024 = vmatprep.subr.bf16.mxu1 %v3251_v41  ;;  %v3305_v40 = vld [vmem:[#allocation4 + $0x8c] ss:$16 sps:$4 sm:$0xff]   ;;  %v3801_v47 = vpack.c.bf16 %v116_v39, %v112_v38 }
  0x66   :  { %v3308_v41 = vld [vmem:[#allocation4 + $0x28c] ss:$16 sps:$4 sm:$0xff]  }
  0x67   :  { %952 = vmatpush2.bf16.msra.mxu0 %v3253_v42  ;;  %v3303_v42 = vld [vmem:[#allocation4 + $0x88] ss:$16 sps:$4 sm:$0xff]   ;;  %v3341_v25 = vld [vmem:[#allocation4 + $0x1cc] ss:$16 sps:$4 sm:$0xff]  }
  0x68   :  { %1025 = vmatpush2.bf16.msra.mxu1 %v3254_v43  ;;  %953 = vmatprep.subr.bf16.mxu0 %v3255_v44  ;;  %v3306_v43 = vld [vmem:[#allocation4 + $0x288] ss:$16 sps:$4 sm:$0xff]   ;;  %v3799_v44 = vpack.c.bf16 %v114_v37, %v110_v34  ;;  %v3344_v27 = vld [vmem:[#allocation4 + $0x3cc] ss:$16 sps:$4 sm:$0xff]  }
  0x69   :  { %1026 = vmatprep.subr.bf16.mxu1 %v3257_v45  ;;  %v109_v45 = vld [vmem:[#allocation2 + $0x80] sm:$0xff]  ;;  %v3347_v30 = vld [vmem:[#allocation4 + $0x1ac] ss:$16 sps:$4 sm:$0xff]   ;;  %v3351_v34 = vld [vmem:[#allocation4 + $0x188] ss:$16 sps:$4 sm:$0xff]  }
  0x6a   :  { %v3354_v37 = vld [vmem:[#allocation4 + $0x388] ss:$16 sps:$4 sm:$0xff]   ;;  %v3359_v38 = vld [vmem:[#allocation4 + $0x16c] ss:$16 sps:$4 sm:$0xff]  }
  0x6b   :  { %954 = vmatpush2.bf16.msra.mxu0 %v3259_v50  ;;  %v115_v50 = vld [vmem:[#allocation2 + $0xb0] sm:$0xff]  ;;  %v3362_v39 = vld [vmem:[#allocation4 + $0x36c] ss:$16 sps:$4 sm:$0xff]  }
  0x6c   :  { %1027 = vmatpush2.bf16.msra.mxu1 %v3260_v51  ;;  %955 = vmatprep.subr.bf16.mxu0 %v3261_v52  ;;  %v3314_v51 = vld [vmem:[#allocation4 + $0x26c] ss:$16 sps:$4 sm:$0xff]   ;;  %v3309_v52 = vld [vmem:[#allocation4 + $0x68] ss:$16 sps:$4 sm:$0xff]  }
  0x6d   :  { %1028 = vmatprep.subr.bf16.mxu1 %v3263_v55  ;;  %v3312_v55 = vld [vmem:[#allocation4 + $0x268] ss:$16 sps:$4 sm:$0xff]  }
  0x6f   :  { %956 = vmatpush2.bf16.msra.mxu0 %v3265_v56  ;;  %v118_v56 = vld [vmem:[#allocation2 + $0xc8] sm:$0xff] }
  0x70   :  { %1029 = vmatpush2.bf16.msra.mxu1 %v3266_v57  ;;  %957 = vmatprep.subr.bf16.mxu0 %v3267_v58  ;;  %v122_v57 = vld [vmem:[#allocation2 + $0xe8] sm:$0xff]  ;;  %v3807_v58 = vpack.c.bf16 %v113_v46, %v109_v45 }
  0x71   :  { %1030 = vmatprep.subr.bf16.mxu1 %v3269_v59  ;;  %v3809_v59 = vpack.c.bf16 %v115_v50, %v111_v49  ;;  %v3363_v45 = vld [vmem:[#allocation4 + $0x148] ss:$16 sps:$4 sm:$0xff]   ;;  %v3374_v49 = vld [vmem:[#allocation4 + $0x32c] ss:$16 sps:$4 sm:$0xff]  }
  0x72   :  { %v3366_v46 = vld [vmem:[#allocation4 + $0x348] ss:$16 sps:$4 sm:$0xff]  }
  0x73   :  { %958 = vmatpush2.bf16.msra.mxu0 %v3271_v60  ;;  %v120_v60 = vld [vmem:[#allocation2 + $0xd8] sm:$0xff] }
  0x74   :  { %1031 = vmatpush2.bf16.msra.mxu1 %v3272_v61  ;;  %959 = vmatprep.subr.bf16.mxu0 %v3273_v62  ;;  %v124_v61 = vld [vmem:[#allocation2 + $0xf8] sm:$0xff] }
  0x75   :  { %1032 = vmatprep.subr.bf16.mxu1 %v3275_v63  ;;  %v3317_v62 = vld [vmem:[#allocation4 + $0x4c] ss:$16 sps:$4 sm:$0xff]   ;;  %v3369_v50 = vld [vmem:[#allocation4 + $0x128] ss:$16 sps:$4 sm:$0xff]  }
  0x76   :  { %v3320_v63 = vld [vmem:[#allocation4 + $0x24c] ss:$16 sps:$4 sm:$0xff]  }
  0x77   :  { %960 = vmatpush2.bf16.msra.mxu0 %v3277_v0  ;;  %v3315_v0 = vld [vmem:[#allocation4 + $0x48] ss:$16 sps:$4 sm:$0xff]  }
  0x78   :  { %1033 = vmatpush2.bf16.msra.mxu1 %v3278_v1  ;;  %961 = vmatprep.subr.bf16.mxu0 %v3279_v2  ;;  %v3318_v1 = vld [vmem:[#allocation4 + $0x248] ss:$16 sps:$4 sm:$0xff]   ;;  %v3811_v2 = vpack.c.bf16 %v122_v57, %v118_v56 }
  0x79   :  { %1034 = vmatprep.subr.bf16.mxu1 %v3281_v3  ;;  %v117_v3 = vld [vmem:[#allocation2 + $0xc0] sm:$0xff]  ;;  %v3375_v56 = vld [vmem:[#allocation4 + $0x108] ss:$16 sps:$4 sm:$0xff]  }
  0x7a   :  { %v3378_v57 = vld [vmem:[#allocation4 + $0x308] ss:$16 sps:$4 sm:$0xff]  }
  0x7b   :  { %962 = vmatpush2.bf16.msra.mxu0 %v3283_v4  ;;  %v121_v4 = vld [vmem:[#allocation2 + $0xe0] sm:$0xff] }
  0x7c   :  { %1035 = vmatpush2.bf16.msra.mxu1 %v3284_v5  ;;  %1077 = vmatprep.subr.bf16.mxu0 %v3287_v10  ;;  %v3813_v5 = vpack.c.bf16 %v124_v61, %v120_v60  ;;  %v3819_v10 = vpack.c.bf16 %v121_v4, %v117_v3  ;;  %v3383_v60 = vld [vmem:[#allocation7 + $0xe4] ss:$16 sps:$4 sm:$0xff]   ;;  %v3381_v61 = vld [vmem:[#allocation7 + $0xe0] ss:$16 sps:$4 sm:$0xff]  }
  0x7d   :  { %1150 = vmatprep.subr.bf16.mxu1 %v3290_v11  ;;  %v3321_v11 = vld [vmem:[#allocation4 + $0x28] ss:$16 sps:$4 sm:$0xff]  }
  0x7e   :  { %964 = vmatmul.mubr.bf16.vlgmr.msra.gmra.mxu0 %v3783_v15  ;;  %v3392_v3 = vld [vmem:[#allocation7 + $0x84] ss:$16 sps:$4 sm:$0xff]  }
  0x7f   :  { %1037 = vmatmul.mubr.bf16.vlgmr.msra.gmra.mxu1 %v3785_v16  ;;  %1078 = vmatpush1.bf16.msra.mxu0 %v3285_v12  ;;  %v3324_v12 = vld [vmem:[#allocation4 + $0x228] ss:$16 sps:$4 sm:$0xff]  }
  0x80   :  { %1151 = vmatpush1.bf16.msra.mxu1 %v3288_v13  ;;  %1079 = vmatprep.subr.bf16.mxu0 %v3293_v20  ;;  %v3821_v13 = vpack.c.bf16 %v123_v8, %v119_v7  ;;  %v3335_v20 = vld [vmem:[#allocation4 + $0x1ec] ss:$16 sps:$4 sm:$0xff]   ;;  %v3398_v4 = vld [vmem:[#allocation7 + $0x44] ss:$16 sps:$4 sm:$0xff]   ;;  %v3399_v7 = vld [vmem:[#allocation7 + $0x20] ss:$16 sps:$4 sm:$0xff]  }
  0x81   :  { %1152 = vmatprep.subr.bf16.mxu1 %v3296_v21  ;;  %973 = vmatprep.mubr.bf16.mxu0 %v3787_v24  ;;  %v3338_v21 = vld [vmem:[#allocation4 + $0x3ec] ss:$16 sps:$4 sm:$0xff]   ;;  %v3443_v8 = vld [vmem:[#allocation7 + $0x2a4] ss:$16 sps:$4 sm:$0xff]  }
  0x82   :  { %1046 = vmatprep.mubr.bf16.mxu1 %v3789_v26 }
  0x83   :  { %1080 = vmatpush1.bf16.msra.mxu0 %v3291_v22  ;;  %v3333_v22 = vld [vmem:[#allocation4 + $0x1e8] ss:$16 sps:$4 sm:$0xff]  }
  0x84   :  { %1153 = vmatpush1.bf16.msra.mxu1 %v3294_v23  ;;  %1081 = vmatprep.subr.bf16.mxu0 %v3299_v28  ;;  %v3336_v23 = vld [vmem:[#allocation4 + $0x3e8] ss:$16 sps:$4 sm:$0xff]  }
  0x85   :  { %1154 = vmatprep.subr.bf16.mxu1 %v3302_v31  ;;  %v3339_v28 = vld [vmem:[#allocation4 + $0x1c8] ss:$16 sps:$4 sm:$0xff]   ;;  %v3350_v31 = vld [vmem:[#allocation4 + $0x3ac] ss:$16 sps:$4 sm:$0xff]  }
  0x86   :  { %974 = vmatmul.mubr.bf16.gmra.mxu0 %v3795_v35 }
  0x87   :  { %1047 = vmatmul.mubr.bf16.gmra.mxu1 %v3797_v36  ;;  %1082 = vmatpush1.bf16.msra.mxu0 %v3297_v32  ;;  %v3345_v32 = vld [vmem:[#allocation4 + $0x1a8] ss:$16 sps:$4 sm:$0xff]  }
  0x88   :  { %1155 = vmatpush1.bf16.msra.mxu1 %v3300_v33  ;;  %1083 = vmatprep.subr.bf16.mxu0 %v3305_v40  ;;  %v3356_v33 = vld [vmem:[#allocation4 + $0x38c] ss:$16 sps:$4 sm:$0xff]   ;;  %v3357_v40 = vld [vmem:[#allocation4 + $0x168] ss:$16 sps:$4 sm:$0xff]  }
  0x89   :  { %1156 = vmatprep.subr.bf16.mxu1 %v3308_v41  ;;  %983 = vmatprep.mubr.bf16.mxu0 %v3799_v44  ;;  %v3360_v41 = vld [vmem:[#allocation4 + $0x368] ss:$16 sps:$4 sm:$0xff]  }
  0x8a   :  { %1056 = vmatprep.mubr.bf16.mxu1 %v3801_v47 }
  0x8b   :  { %1084 = vmatpush1.bf16.msra.mxu0 %v3303_v42  ;;  %v3365_v42 = vld [vmem:[#allocation4 + $0x14c] ss:$16 sps:$4 sm:$0xff]  }
  0x8c   :  { %1157 = vmatpush1.bf16.msra.mxu1 %v3306_v43  ;;  %1085 = vmatprep.subr.bf16.mxu0 %v3311_v48  ;;  %v3368_v43 = vld [vmem:[#allocation4 + $0x34c] ss:$16 sps:$4 sm:$0xff]  }
  0x8d   :  { %1158 = vmatprep.subr.bf16.mxu1 %v3314_v51  ;;  %v3371_v48 = vld [vmem:[#allocation4 + $0x12c] ss:$16 sps:$4 sm:$0xff]   ;;  %v3372_v51 = vld [vmem:[#allocation4 + $0x328] ss:$16 sps:$4 sm:$0xff]  }
  0x8e   :  { %984 = vmatmul.mubr.bf16.gmra.mxu0 %v3807_v58 }
  0x8f   :  { %1057 = vmatmul.mubr.bf16.gmra.mxu1 %v3809_v59  ;;  %1086 = vmatpush1.bf16.msra.mxu0 %v3309_v52  ;;  %v3377_v52 = vld [vmem:[#allocation4 + $0x10c] ss:$16 sps:$4 sm:$0xff]  }
  0x90   :  { %1159 = vmatpush1.bf16.msra.mxu1 %v3312_v55  ;;  %1087 = vmatprep.subr.bf16.mxu0 %v3317_v62  ;;  %v3380_v55 = vld [vmem:[#allocation4 + $0x30c] ss:$16 sps:$4 sm:$0xff]   ;;  %v3386_v62 = vld [vmem:[#allocation7 + $0xc4] ss:$16 sps:$4 sm:$0xff]  }
  0x91   :  { %1160 = vmatprep.subr.bf16.mxu1 %v3320_v63  ;;  %993 = vmatprep.mubr.bf16.mxu0 %v3811_v2  ;;  %v3384_v63 = vld [vmem:[#allocation7 + $0xc0] ss:$16 sps:$4 sm:$0xff]  }
  0x92   :  { %1066 = vmatprep.mubr.bf16.mxu1 %v3813_v5 }
  0x93   :  { %1088 = vmatpush1.bf16.msra.mxu0 %v3315_v0  ;;  %v3389_v0 = vld [vmem:[#allocation7 + $0xa4] ss:$16 sps:$4 sm:$0xff]  }
  0x94   :  { %1161 = vmatpush1.bf16.msra.mxu1 %v3318_v1  ;;  %1089 = vmatprep.subr.bf16.mxu0 %v3323_v6  ;;  %v3387_v1 = vld [vmem:[#allocation7 + $0xa0] ss:$16 sps:$4 sm:$0xff]  }
  0x95   :  { %1162 = vmatprep.subr.bf16.mxu1 %v3326_v9  ;;  %v3429_v6 = vld [vmem:[#allocation7 + $0x2e0] ss:$16 sps:$4 sm:$0xff]  }
  0x96   :  { %994 = vmatmul.mubr.bf16.gmra.mxu0 %v3819_v10  ;;  %v3441_v9 = vld [vmem:[#allocation7 + $0x2a0] ss:$16 sps:$4 sm:$0xff]  }
  0x97   :  { %1067 = vmatmul.mubr.bf16.gmra.mxu1 %v3821_v13  ;;  %1090 = vmatpush1.bf16.msra.mxu0 %v3321_v11  ;;  %v3447_v11 = vld [vmem:[#allocation7 + $0x280] ss:$16 sps:$4 sm:$0xff]  }
  0x98   :  { %1163 = vmatpush1.bf16.msra.mxu1 %v3324_v12  ;;  %1091 = vmatprep.subr.bf16.mxu0 %v3329_v14  ;;  %v3405_v12 = vld [vmem:[#allocation7 + $0x1e0] ss:$16 sps:$4 sm:$0xff]   ;;  %v3455_v14 = vld [vmem:[#allocation7 + $0x264] ss:$16 sps:$4 sm:$0xff]  }
  0x99   :  { %1164 = vmatprep.subr.bf16.mxu1 %v3332_v17  ;;  %1109 = vmatprep.mubr.bf16.mxu0 %v3777_v53  ;;  %v3348_v53 = vld [vmem:[#allocation4 + $0x3a8] ss:$16 sps:$4 sm:$0xff]  }
  0x9a   :  { %1182 = vmatprep.mubr.bf16.mxu1 %v3779_v54  ;;  %v3353_v54 = vld [vmem:[#allocation4 + $0x18c] ss:$16 sps:$4 sm:$0xff]   ;;  %v3410_v17 = vld [vmem:[#allocation7 + $0x1c4] ss:$16 sps:$4 sm:$0xff]  }
  0x9b   :  { %1092 = vmatpush1.bf16.msra.mxu0 %v3327_v18  ;;  %v3453_v18 = vld [vmem:[#allocation7 + $0x260] ss:$16 sps:$4 sm:$0xff]  }
  0x9c   :  { %1165 = vmatpush1.bf16.msra.mxu1 %v3330_v19  ;;  %1093 = vmatprep.subr.bf16.mxu0 %v3335_v20  ;;  %v3413_v19 = vld [vmem:[#allocation7 + $0x1a4] ss:$16 sps:$4 sm:$0xff]   ;;  %v3459_v20 = vld [vmem:[#allocation7 + $0x240] ss:$16 sps:$4 sm:$0xff]  }
  0x9d   :  { %1166 = vmatprep.subr.bf16.mxu1 %v3338_v21  ;;  %v3411_v21 = vld [vmem:[#allocation7 + $0x1a0] ss:$16 sps:$4 sm:$0xff]  }
  0x9f   :  { %1094 = vmatpush2.bf16.msra.mxu0 %v3333_v22  ;;  %v3467_v22 = vld [vmem:[#allocation7 + $0x224] ss:$16 sps:$4 sm:$0xff]  }
  0xa0   :  { %1167 = vmatpush2.bf16.msra.mxu1 %v3336_v23  ;;  %1095 = vmatprep.subr.bf16.mxu0 %v3341_v25  ;;  %v3416_v23 = vld [vmem:[#allocation7 + $0x184] ss:$16 sps:$4 sm:$0xff]   ;;  %v3465_v25 = vld [vmem:[#allocation7 + $0x220] ss:$16 sps:$4 sm:$0xff]  }
  0xa1   :  { %1168 = vmatprep.subr.bf16.mxu1 %v3344_v27  ;;  %v3414_v27 = vld [vmem:[#allocation7 + $0x180] ss:$16 sps:$4 sm:$0xff]  }
  0xa3   :  { %1096 = vmatpush2.bf16.msra.mxu0 %v3339_v28  ;;  %v3419_v28 = vld [vmem:[#allocation7 + $0x164] ss:$16 sps:$4 sm:$0xff]  }
  0xa4   :  { %1169 = vmatpush2.bf16.msra.mxu1 %v3342_v29  ;;  %1097 = vmatprep.subr.bf16.mxu0 %v3347_v30  ;;  %v3473_v29 = vld [vmem:[#allocation7 + $0x204] ss:$16 sps:$4 sm:$0xff]   ;;  %v3471_v30 = vld [vmem:[#allocation7 + $0x200] ss:$16 sps:$4 sm:$0xff]  }
  0xa5   :  { %1170 = vmatprep.subr.bf16.mxu1 %v3350_v31  ;;  %v3417_v31 = vld [vmem:[#allocation7 + $0x160] ss:$16 sps:$4 sm:$0xff]  }
  0xa7   :  { %1098 = vmatpush2.bf16.msra.mxu0 %v3345_v32  ;;  %v3422_v32 = vld [vmem:[#allocation7 + $0x144] ss:$16 sps:$4 sm:$0xff]  }
  0xa8   :  { %1171 = vmatpush2.bf16.msra.mxu1 %v3348_v53  ;;  %1099 = vmatprep.subr.bf16.mxu0 %v3353_v54  ;;  %v3479_v53 = vld [vmem:[#allocation7 + $0x3e4] ss:$16 sps:$4 sm:$0xff]   ;;  %v3477_v54 = vld [vmem:[#allocation7 + $0x3e0] ss:$16 sps:$4 sm:$0xff]  }
  0xa9   :  { %1172 = vmatprep.subr.bf16.mxu1 %v3356_v33  ;;  %v3420_v33 = vld [vmem:[#allocation7 + $0x140] ss:$16 sps:$4 sm:$0xff]  }
  0xab   :  { %1100 = vmatpush2.bf16.msra.mxu0 %v3351_v34  ;;  %v3425_v34 = vld [vmem:[#allocation7 + $0x124] ss:$16 sps:$4 sm:$0xff]  }
  0xac   :  { %1173 = vmatpush2.bf16.msra.mxu1 %v3354_v37  ;;  %1101 = vmatprep.subr.bf16.mxu0 %v3359_v38  ;;  %v3485_v37 = vld [vmem:[#allocation7 + $0x3c4] ss:$16 sps:$4 sm:$0xff]   ;;  %v3483_v38 = vld [vmem:[#allocation7 + $0x3c0] ss:$16 sps:$4 sm:$0xff]  }
  0xad   :  { %1174 = vmatprep.subr.bf16.mxu1 %v3362_v39  ;;  %v3491_v39 = vld [vmem:[#allocation7 + $0x3a4] ss:$16 sps:$4 sm:$0xff]  }
  0xaf   :  { %1102 = vmatpush2.bf16.msra.mxu0 %v3357_v40  ;;  %v3423_v40 = vld [vmem:[#allocation7 + $0x120] ss:$16 sps:$4 sm:$0xff]  }
  0xb0   :  { %1175 = vmatpush2.bf16.msra.mxu1 %v3360_v41  ;;  %1103 = vmatprep.subr.bf16.mxu0 %v3365_v42  ;;  %v3489_v41 = vld [vmem:[#allocation7 + $0x3a0] ss:$16 sps:$4 sm:$0xff]   ;;  %v3428_v42 = vld [vmem:[#allocation7 + $0x104] ss:$16 sps:$4 sm:$0xff]  }
  0xb1   :  { %1176 = vmatprep.subr.bf16.mxu1 %v3368_v43  ;;  %v3497_v43 = vld [vmem:[#allocation7 + $0x384] ss:$16 sps:$4 sm:$0xff]  }
  0xb3   :  { %1104 = vmatpush2.bf16.msra.mxu0 %v3363_v45  ;;  %v3426_v45 = vld [vmem:[#allocation7 + $0x100] ss:$16 sps:$4 sm:$0xff]  }
  0xb4   :  { %1177 = vmatpush2.bf16.msra.mxu1 %v3366_v46  ;;  %1105 = vmatprep.subr.bf16.mxu0 %v3371_v48  ;;  %v3495_v46 = vld [vmem:[#allocation7 + $0x380] ss:$16 sps:$4 sm:$0xff]   ;;  %v3434_v48 = vld [vmem:[#allocation7 + $0xec] ss:$16 sps:$4 sm:$0xff]  }
  0xb5   :  { %1178 = vmatprep.subr.bf16.mxu1 %v3374_v49  ;;  %v3503_v49 = vld [vmem:[#allocation7 + $0x364] ss:$16 sps:$4 sm:$0xff]  }
  0xb7   :  { %1106 = vmatpush2.bf16.msra.mxu0 %v3369_v50  ;;  %v3501_v50 = vld [vmem:[#allocation7 + $0x360] ss:$16 sps:$4 sm:$0xff]  }
  0xb8   :  { %1179 = vmatpush2.bf16.msra.mxu1 %v3372_v51  ;;  %1107 = vmatprep.subr.bf16.mxu0 %v3377_v52  ;;  %v3509_v51 = vld [vmem:[#allocation7 + $0x344] ss:$16 sps:$4 sm:$0xff]   ;;  %v3507_v52 = vld [vmem:[#allocation7 + $0x340] ss:$16 sps:$4 sm:$0xff]  }
  0xb9   :  { %1180 = vmatprep.subr.bf16.mxu1 %v3380_v55  ;;  %v3515_v55 = vld [vmem:[#allocation7 + $0x324] ss:$16 sps:$4 sm:$0xff]  }
  0xbb   :  { %1108 = vmatpush2.bf16.msra.mxu0 %v3375_v56  ;;  %v3513_v56 = vld [vmem:[#allocation7 + $0x320] ss:$16 sps:$4 sm:$0xff]  }
  0xbc   :  { %1181 = vmatpush2.bf16.msra.mxu1 %v3378_v57  ;;  %2061 = vmatprep.subr.bf16.mxu0 %v3383_v60  ;;  %v3521_v57 = vld [vmem:[#allocation7 + $0x304] ss:$16 sps:$4 sm:$0xff]   ;;  %v3519_v60 = vld [vmem:[#allocation7 + $0x300] ss:$16 sps:$4 sm:$0xff]  }
  0xbe   :  { %1110 = vmatmul.mubr.bf16.vlgmr.msra.gmra.mxu0 %v3783_v15  ;;  %v3390_v15 = vld [vmem:[#allocation7 + $0x80] ss:$16 sps:$4 sm:$0xff]  }
  0xbf   :  { %1183 = vmatmul.mubr.bf16.vlgmr.msra.gmra.mxu1 %v3785_v16  ;;  %1119 = vmatprep.mubr.bf16.mxu0 %v3787_v24  ;;  %v3395_v16 = vld [vmem:[#allocation7 + $0x64] ss:$16 sps:$4 sm:$0xff]   ;;  %v3393_v24 = vld [vmem:[#allocation7 + $0x60] ss:$16 sps:$4 sm:$0xff]  }
  0xc0   :  { %1192 = vmatprep.mubr.bf16.mxu1 %v3789_v26  ;;  %2062 = vmatpush1.bf16.msra.mxu0 %v3381_v61  ;;  %v3431_v26 = vld [vmem:[#allocation7 + $0x2e4] ss:$16 sps:$4 sm:$0xff]   ;;  %v3527_v61 = vld [vmem:[#allocation7 + $0x2ec] ss:$16 sps:$4 sm:$0xff]  }
  0xc1   :  { %2063 = vmatprep.subr.bf16.mxu0 %v3386_v62  ;;  %2134 = vmatprep.subr.bf16.mxu1 %v3431_v26  ;;  %v271_v62 = vlaneseq }
  0xc2   :  { %2135 = vmatpush1.bf16.msra.mxu1 %v3429_v6 }
  0xc4   :  { %2064 = vmatpush1.bf16.msra.mxu0 %v3384_v63  ;;  %v3841_v63 = vshrl.u32 %v271_v62, 7 }
  0xc5   :  { %2065 = vmatprep.subr.bf16.mxu0 %v3389_v0 }
  0xc6   :  { %1120 = vmatmul.mubr.bf16.gmra.mxu0 %v3795_v35  ;;  %v3396_v35 = vld [vmem:[#allocation7 + $0x40] ss:$16 sps:$4 sm:$0xff]   ;;  %v277_v0 = vsub.s32 1, %v3841_v63 }
  0xc7   :  { %1193 = vmatmul.mubr.bf16.gmra.mxu1 %v3797_v36  ;;  %1129 = vmatprep.mubr.bf16.mxu0 %v3799_v44  ;;  %v3437_v36 = vld [vmem:[#allocation7 + $0x2c4] ss:$16 sps:$4 sm:$0xff]  }
  0xc8   :  { %1202 = vmatprep.mubr.bf16.mxu1 %v3801_v47  ;;  %2066 = vmatpush1.bf16.msra.mxu0 %v3387_v1  ;;  %v3401_v44 = vld [vmem:[#allocation7 + $0x24] ss:$16 sps:$4 sm:$0xff]   ;;  %v3435_v47 = vld [vmem:[#allocation7 + $0x2c0] ss:$16 sps:$4 sm:$0xff]   ;;  %v3844_v1 = vld [vmem:[#allocation6] sm:$0xf] }
  0xc9   :  { %2067 = vmatprep.subr.bf16.mxu0 %v3392_v3  ;;  %2136 = vmatprep.subr.bf16.mxu1 %v3437_v36  ;;  %v273_v3 = vsub.s32 0, %v3841_v63 }
  0xca   :  { %2137 = vmatpush1.bf16.msra.mxu1 %v3435_v47 }
  0xcb   :  { %2138 = vmatprep.subr.bf16.mxu1 %v3443_v8 }
  0xcc   :  { %2068 = vmatpush1.bf16.msra.mxu0 %v3390_v15  ;;  %v3850_v15 = vrot.slane %v3844_v1, %v277_v0 }
  0xcd   :  { %2069 = vmatprep.subr.bf16.mxu0 %v3395_v16  ;;  %v3855_v16 = vrot.slane %v3844_v1, %v273_v3 }
  0xce   :  { %1130 = vmatmul.mubr.bf16.gmra.mxu0 %v3807_v58  ;;  %v3404_v58 = vld [vmem:[#allocation7 + $0x4] ss:$16 sps:$4 sm:$0xff]   ;;  %2139 = vmatpush1.bf16.msra.mxu1 %v3441_v9 }
  0xcf   :  { %1203 = vmatmul.mubr.bf16.gmra.mxu1 %v3809_v59  ;;  %1139 = vmatprep.mubr.bf16.mxu0 %v3811_v2  ;;  %v3402_v59 = vld [vmem:[#allocation7] ss:$16 sps:$4 sm:$0xff]   ;;  %v3449_v2 = vld [vmem:[#allocation7 + $0x284] ss:$16 sps:$4 sm:$0xff]  }
  0xd0   :  { %1212 = vmatprep.mubr.bf16.mxu1 %v3813_v5  ;;  %2070 = vmatpush1.bf16.msra.mxu0 %v3393_v24  ;;  %v3407_v5 = vld [vmem:[#allocation7 + $0x1e4] ss:$16 sps:$4 sm:$0xff]  }
  0xd1   :  { %2071 = vmatprep.subr.bf16.mxu0 %v3398_v4  ;;  %2140 = vmatprep.subr.bf16.mxu1 %v3449_v2 }
  0xd2   :  { %2141 = vmatpush1.bf16.msra.mxu1 %v3447_v11 }
  0xd3   :  { %2142 = vmatprep.subr.bf16.mxu1 %v3455_v14 }
  0xd4   :  { %2072 = vmatpush1.bf16.msra.mxu0 %v3396_v35 }
  0xd5   :  { %2073 = vmatprep.subr.bf16.mxu0 %v3401_v44 }
  0xd6   :  { %1140 = vmatmul.mubr.bf16.gmra.mxu0 %v3819_v10  ;;  %v3408_v10 = vld [vmem:[#allocation7 + $0x1c0] ss:$16 sps:$4 sm:$0xff]   ;;  %2143 = vmatpush1.bf16.msra.mxu1 %v3453_v18 }
  0xd7   :  { %1213 = vmatmul.mubr.bf16.gmra.mxu1 %v3821_v13  ;;  %v3461_v13 = vld [vmem:[#allocation7 + $0x244] ss:$16 sps:$4 sm:$0xff]  }
  0xd8   :  { %2074 = vmatpush1.bf16.msra.mxu0 %v3399_v7  ;;  %2144 = vmatprep.subr.bf16.mxu1 %v3461_v13 }
  0xd9   :  { %2075 = vmatprep.subr.bf16.mxu0 %v3404_v58 }
  0xda   :  { %2145 = vmatpush1.bf16.msra.mxu1 %v3459_v20 }
  0xdb   :  { %2146 = vmatprep.subr.bf16.mxu1 %v3467_v22 }
  0xdc   :  { %2076 = vmatpush1.bf16.msra.mxu0 %v3402_v59 }
  0xdd   :  { %2077 = vmatprep.subr.bf16.mxu0 %v3407_v5 }
  0xde   :  { %2147 = vmatpush1.bf16.msra.mxu1 %v3465_v25 }
  0xdf   :  { %2148 = vmatprep.subr.bf16.mxu1 %v3473_v29 }
  0xe0   :  { %2078 = vmatpush2.bf16.msra.mxu0 %v3405_v12 }
  0xe1   :  { %2079 = vmatprep.subr.bf16.mxu0 %v3410_v17 }
  0xe2   :  { %2149 = vmatpush1.bf16.msra.mxu1 %v3471_v30 }
  0xe3   :  { %2150 = vmatprep.subr.bf16.mxu1 %v3479_v53 }
  0xe4   :  { %2080 = vmatpush2.bf16.msra.mxu0 %v3408_v10 }
  0xe5   :  { %2081 = vmatprep.subr.bf16.mxu0 %v3413_v19 }
  0xe6   :  { %2151 = vmatpush2.bf16.msra.mxu1 %v3477_v54 }
  0xe7   :  { %2152 = vmatprep.subr.bf16.mxu1 %v3485_v37 }
  0xe8   :  { %2082 = vmatpush2.bf16.msra.mxu0 %v3411_v21 }
  0xe9   :  { %2083 = vmatprep.subr.bf16.mxu0 %v3416_v23 }
  0xea   :  { %2153 = vmatpush2.bf16.msra.mxu1 %v3483_v38 }
  0xeb   :  { %2154 = vmatprep.subr.bf16.mxu1 %v3491_v39 }
  0xec   :  { %2084 = vmatpush2.bf16.msra.mxu0 %v3414_v27 }
  0xed   :  { %2085 = vmatprep.subr.bf16.mxu0 %v3419_v28 }
  0xee   :  { %2155 = vmatpush2.bf16.msra.mxu1 %v3489_v41 }
  0xef   :  { %2156 = vmatprep.subr.bf16.mxu1 %v3497_v43 }
  0xf0   :  { %2086 = vmatpush2.bf16.msra.mxu0 %v3417_v31  ;;  %v3432_v31 = vld [vmem:[#allocation7 + $0xe8] ss:$16 sps:$4 sm:$0xff]  }
  0xf1   :  { %2087 = vmatprep.subr.bf16.mxu0 %v3422_v32 }
  0xf2   :  { %2157 = vmatpush2.bf16.msra.mxu1 %v3495_v46  ;;  %v3438_v46 = vld [vmem:[#allocation7 + $0xc8] ss:$16 sps:$4 sm:$0xff]  }
  0xf3   :  { %2158 = vmatprep.subr.bf16.mxu1 %v3503_v49 }
  0xf4   :  { %2088 = vmatpush2.bf16.msra.mxu0 %v3420_v33  ;;  %v3440_v33 = vld [vmem:[#allocation7 + $0xcc] ss:$16 sps:$4 sm:$0xff]  }
  0xf5   :  { %2089 = vmatprep.subr.bf16.mxu0 %v3425_v34 }
  0xf6   :  { %2159 = vmatpush2.bf16.msra.mxu1 %v3501_v50  ;;  %v3446_v50 = vld [vmem:[#allocation7 + $0xac] ss:$16 sps:$4 sm:$0xff]  }
  0xf7   :  { %2160 = vmatprep.subr.bf16.mxu1 %v3509_v51 }
  0xf8   :  { %2090 = vmatpush2.bf16.msra.mxu0 %v3423_v40 }
  0xf9   :  { %2091 = vmatprep.subr.bf16.mxu0 %v3428_v42 }
  0xfa   :  { %2161 = vmatpush2.bf16.msra.mxu1 %v3507_v52 }
  0xfb   :  { %2162 = vmatprep.subr.bf16.mxu1 %v3515_v55 }
  0xfc   :  { %2092 = vmatpush2.bf16.msra.mxu0 %v3426_v45 }
  0xfd   :  { %2207 = vmatprep.subr.bf16.mxu0 %v3434_v48 }
  0xfe   :  { %2163 = vmatpush2.bf16.msra.mxu1 %v3513_v56 }
  0xff   :  { %2164 = vmatprep.subr.bf16.mxu1 %v3521_v57 }
 0x102   :  { %2165 = vmatpush2.bf16.msra.mxu1 %v3519_v60 }
 0x103   :  { %2280 = vmatprep.subr.bf16.mxu1 %v3527_v61 }
 0x13e   :  { %v965_v24 = vpop.f32.mrf.mxu0 }
 0x13f   :  { %v1038_v26 = vpop.f32.mrf.mxu1  ;;  %v966_v36 = vadd.f32 %v965_v24, %v3855_v16 }
 0x140   :  { %v967_v4 = vpop.f32.mrf.mxu0 }
 0x141   :  { %v1040_v6 = vpop.f32.mrf.mxu1  ;;  %v968_v35 = vadd.f32 %v967_v4, %v3850_v15  ;;  %v1039_v5 = vadd.f32 %v1038_v26, %v966_v36  ;;  %v3444_v26 = vld [vmem:[#allocation7 + $0xa8] ss:$16 sps:$4 sm:$0xff]  }
 0x142   :  { %v969_v44 = vpop.f32.mrf.mxu0 }
 0x143   :  { %v1042_v47 = vpop.f32.mrf.mxu1  ;;  %v970_v7 = vadd.f32 %v969_v44, %v3855_v16  ;;  %v1041_v9 = vadd.f32 %v1040_v6, %v968_v35  ;;  %v1223_v22 = vmax.f32 %v1039_v5, 0.0  ;;  %v3452_v35 = vld [vmem:[#allocation7 + $0x8c] ss:$16 sps:$4 sm:$0xff]   ;;  %v3450_v5 = vld [vmem:[#allocation7 + $0x88] ss:$16 sps:$4 sm:$0xff]  }
 0x144   :  { %v971_v8 = vpop.f32.mrf.mxu0 }
 0x145   :  { %v1044_v58 = vpop.f32.mrf.mxu1  ;;  %v1043_v59 = vadd.f32 %v1042_v47, %v970_v7  ;;  %v972_v2 = vadd.f32 %v971_v8, %v3850_v15  ;;  %v1224_v19 = vmax.f32 %v1041_v9, 0.0 }
 0x146   :  { %v975_v11 = vpop.f32.mrf.mxu0 }
 0x147   :  { %v1048_v12 = vpop.f32.mrf.mxu1  ;;  %v1045_v14 = vadd.f32 %v1044_v58, %v972_v2  ;;  %v976_v17 = vadd.f32 %v975_v11, %v3855_v16  ;;  %v1227_v18 = vmax.f32 %v1043_v59, 0.0 }
 0x148   :  { %v977_v10 = vpop.f32.mrf.mxu0 }
 0x149   :  { %v1050_v13 = vpop.f32.mrf.mxu1  ;;  %v1228_v20 = vmax.f32 %v1045_v14, 0.0  ;;  %v978_v21 = vadd.f32 %v977_v10, %v3850_v15  ;;  %v1049_v23 = vadd.f32 %v1048_v12, %v976_v17  ;;  %v3866_v32 = vpack.c.bf16 %v1227_v18, %v1223_v22  ;;  %v3458_v14 = vld [vmem:[#allocation7 + $0x6c] ss:$16 sps:$4 sm:$0xff]  }
 0x14a   :  { %v979_v25 = vpop.f32.mrf.mxu0 }
 0x14b   :  { %v1052_v27 = vpop.f32.mrf.mxu1  ;;  %v3863_v28 = vpack.c.bf16 %v1228_v20, %v1224_v19  ;;  %v980_v29 = vadd.f32 %v979_v25, %v3855_v16  ;;  %v1051_v30 = vadd.f32 %v1050_v13, %v978_v21  ;;  %v1231_v38 = vmax.f32 %v1049_v23, 0.0  ;;  %v3456_v25 = vld [vmem:[#allocation7 + $0x68] ss:$16 sps:$4 sm:$0xff]  }
 0x14c   :  { %v981_v53 = vpop.f32.mrf.mxu0 }
 0x14d   :  { %v1054_v54 = vpop.f32.mrf.mxu1  ;;  %v982_v34 = vadd.f32 %v981_v53, %v3850_v15  ;;  %v1053_v37 = vadd.f32 %v1052_v27, %v980_v29  ;;  %2093 = vmatprep.mubr.bf16.mxu0 %v3863_v28  ;;  %v1232_v41 = vmax.f32 %v1051_v30, 0.0  ;;  %v3464_v30 = vld [vmem:[#allocation7 + $0x4c] ss:$16 sps:$4 sm:$0xff]  }
 0x14e   :  { %v985_v39 = vpop.f32.mrf.mxu0  ;;  %2094 = vmatmul.mubr.bf16.vlgmr.msra.gmra.mxu0 %v3866_v32 }
 0x14f   :  { %v1058_v40 = vpop.f32.mrf.mxu1  ;;  %v1235_v42 = vmax.f32 %v1053_v37, 0.0  ;;  %v986_v43 = vadd.f32 %v985_v39, %v3855_v16  ;;  %v1055_v45 = vadd.f32 %v1054_v54, %v982_v34  ;;  %2208 = vmatpush1.bf16.msra.mxu0 %v3432_v31 }
 0x150   :  { %v987_v48 = vpop.f32.mrf.mxu0  ;;  %2209 = vmatprep.subr.bf16.mxu0 %v3440_v33 }
 0x151   :  { %v1060_v49 = vpop.f32.mrf.mxu1  ;;  %v1236_v51 = vmax.f32 %v1055_v45, 0.0  ;;  %v988_v52 = vadd.f32 %v987_v48, %v3850_v15  ;;  %v3873_v55 = vpack.c.bf16 %v1235_v42, %v1231_v38  ;;  %v1059_v56 = vadd.f32 %v1058_v40, %v986_v43  ;;  %v3470_v38 = vld [vmem:[#allocation7 + $0x2c] ss:$16 sps:$4 sm:$0xff]   ;;  %v3474_v43 = vld [vmem:[#allocation7 + $0x8] ss:$16 sps:$4 sm:$0xff]  }
 0x152   :  { %v989_v57 = vpop.f32.mrf.mxu0  ;;  %v3476_v42 = vld [vmem:[#allocation7 + $0xc] ss:$16 sps:$4 sm:$0xff]  }
 0x153   :  { %v1062_v60 = vpop.f32.mrf.mxu1  ;;  %v3875_v61 = vpack.c.bf16 %v1236_v51, %v1232_v41  ;;  %v990_v62 = vadd.f32 %v989_v57, %v3855_v16  ;;  %v1061_v24 = vadd.f32 %v1060_v49, %v988_v52  ;;  %2210 = vmatpush1.bf16.msra.mxu0 %v3438_v46  ;;  %v1239_v47 = vmax.f32 %v1059_v56, 0.0  ;;  %v3482_v45 = vld [vmem:[#allocation7 + $0x1ec] ss:$16 sps:$4 sm:$0xff]   ;;  %v3480_v46 = vld [vmem:[#allocation7 + $0x1e8] ss:$16 sps:$4 sm:$0xff]  }
 0x154   :  { %v991_v4 = vpop.f32.mrf.mxu0  ;;  %2211 = vmatprep.subr.bf16.mxu0 %v3446_v50  ;;  %v3488_v48 = vld [vmem:[#allocation7 + $0x1cc] ss:$16 sps:$4 sm:$0xff]   ;;  %v3486_v49 = vld [vmem:[#allocation7 + $0x1c8] ss:$16 sps:$4 sm:$0xff]  }
 0x155   :  { %v1064_v6 = vpop.f32.mrf.mxu1  ;;  %v992_v36 = vadd.f32 %v991_v4, %v3850_v15  ;;  %v1063_v44 = vadd.f32 %v1062_v60, %v990_v62  ;;  %2103 = vmatprep.mubr.bf16.mxu0 %v3875_v61  ;;  %v1240_v58 = vmax.f32 %v1061_v24, 0.0  ;;  %v3494_v50 = vld [vmem:[#allocation7 + $0x1ac] ss:$16 sps:$4 sm:$0xff]   ;;  %v3492_v51 = vld [vmem:[#allocation7 + $0x1a8] ss:$16 sps:$4 sm:$0xff]   ;;  %v281_v60 = vsub.s32 2, %v3841_v63 }
 0x156   :  { %v995_v7 = vpop.f32.mrf.mxu0  ;;  %2104 = vmatmul.mubr.bf16.gmra.mxu0 %v3873_v55  ;;  %v3500_v52 = vld [vmem:[#allocation7 + $0x18c] ss:$16 sps:$4 sm:$0xff]   ;;  %v3498_v56 = vld [vmem:[#allocation7 + $0x188] ss:$16 sps:$4 sm:$0xff]  }
 0x157   :  { %v1068_v8 = vpop.f32.mrf.mxu1  ;;  %v1243_v9 = vmax.f32 %v1063_v44, 0.0  ;;  %v996_v59 = vadd.f32 %v995_v7, %v3855_v16  ;;  %v1065_v2 = vadd.f32 %v1064_v6, %v992_v36  ;;  %2212 = vmatpush1.bf16.msra.mxu0 %v3444_v26  ;;  %v3506_v57 = vld [vmem:[#allocation7 + $0x16c] ss:$16 sps:$4 sm:$0xff]   ;;  %v3504_v62 = vld [vmem:[#allocation7 + $0x168] ss:$16 sps:$4 sm:$0xff]   ;;  %v3908_v4 = vrot.slane %v3844_v1, %v281_v60 }
 0x158   :  { %v997_v11 = vpop.f32.mrf.mxu0  ;;  %2213 = vmatprep.subr.bf16.mxu0 %v3452_v35  ;;  %v3512_v24 = vld [vmem:[#allocation7 + $0x14c] ss:$16 sps:$4 sm:$0xff]   ;;  %v3510_v36 = vld [vmem:[#allocation7 + $0x148] ss:$16 sps:$4 sm:$0xff]  }
 0x159   :  { %v1070_v12 = vpop.f32.mrf.mxu1  ;;  %v1244_v17 = vmax.f32 %v1065_v2, 0.0  ;;  %v998_v18 = vadd.f32 %v997_v11, %v3850_v15  ;;  %v3883_v10 = vpack.c.bf16 %v1243_v9, %v1239_v47  ;;  %v1069_v13 = vadd.f32 %v1068_v8, %v996_v59  ;;  %v3518_v7 = vld [vmem:[#allocation7 + $0x12c] ss:$16 sps:$4 sm:$0xff]  }
 0x15a   :  { %v999_v19 = vpop.f32.mrf.mxu0 }
 0x15b   :  { %v1072_v20 = vpop.f32.mrf.mxu1  ;;  %v3885_v21 = vpack.c.bf16 %v1244_v17, %v1240_v58  ;;  %v1000_v22 = vadd.f32 %v999_v19, %v3855_v16  ;;  %v1071_v23 = vadd.f32 %v1070_v12, %v998_v18  ;;  %2214 = vmatpush1.bf16.msra.mxu0 %v3450_v5  ;;  %v1247_v54 = vmax.f32 %v1069_v13, 0.0  ;;  %v3462_v16 = vld [vmem:[#allocation7 + $0x48] ss:$16 sps:$4 sm:$0xff]   ;;  %v3524_v12 = vld [vmem:[#allocation7 + $0x10c] ss:$16 sps:$4 sm:$0xff]  }
 0x15c   :  { %v1001_v27 = vpop.f32.mrf.mxu0  ;;  %2215 = vmatprep.subr.bf16.mxu0 %v3458_v14  ;;  %v3516_v5 = vld [vmem:[#allocation7 + $0x128] ss:$16 sps:$4 sm:$0xff]  }
 0x15d   :  { %v1074_v29 = vpop.f32.mrf.mxu1  ;;  %v1002_v31 = vadd.f32 %v1001_v27, %v3850_v15  ;;  %v1073_v53 = vadd.f32 %v1072_v20, %v1000_v22  ;;  %2113 = vmatprep.mubr.bf16.mxu0 %v3885_v21  ;;  %v1248_v33 = vmax.f32 %v1071_v23, 0.0  ;;  %v3468_v15 = vld [vmem:[#allocation7 + $0x28] ss:$16 sps:$4 sm:$0xff]  }
 0x15e   :  { %2114 = vmatmul.mubr.bf16.gmra.mxu0 %v3883_v10 }
 0x15f   :  { %v1251_v34 = vmax.f32 %v1073_v53, 0.0  ;;  %v1075_v37 = vadd.f32 %v1074_v29, %v1002_v31  ;;  %2216 = vmatpush1.bf16.msra.mxu0 %v3456_v25  ;;  %v3522_v25 = vld [vmem:[#allocation7 + $0x108] ss:$16 sps:$4 sm:$0xff]  }
 0x160   :  { %2217 = vmatprep.subr.bf16.mxu0 %v3464_v30 }
 0x161   :  { %v1252_v39 = vmax.f32 %v1075_v37, 0.0  ;;  %v3891_v40 = vpack.c.bf16 %v1251_v34, %v1247_v54 }
 0x163   :  { %v3893_v41 = vpack.c.bf16 %v1252_v39, %v1248_v33  ;;  %2218 = vmatpush1.bf16.msra.mxu0 %v3462_v16 }
 0x164   :  { %2219 = vmatprep.subr.bf16.mxu0 %v3470_v38 }
 0x165   :  { %2123 = vmatprep.mubr.bf16.mxu0 %v3893_v41 }
 0x166   :  { %2124 = vmatmul.mubr.bf16.gmra.mxu0 %v3891_v40 }
 0x167   :  { %2220 = vmatpush1.bf16.msra.mxu0 %v3468_v15  ;;  %2239 = vmatprep.mubr.bf16.mxu0 %v3863_v28  ;;  %v285_v28 = vsub.s32 3, %v3841_v63 }
 0x168   :  { %2221 = vmatprep.subr.bf16.mxu0 %v3476_v42  ;;  %v3525_v42 = vld [vmem:[#allocation7 + $0x2e8] ss:$16 sps:$4 sm:$0xff]  }
 0x169   :  { %v3903_v26 = vrot.slane %v3844_v1, %v285_v28 }
 0x16b   :  { %2222 = vmatpush1.bf16.msra.mxu0 %v3474_v43 }
 0x16c   :  { %2223 = vmatprep.subr.bf16.mxu0 %v3482_v45 }
 0x16f   :  { %2224 = vmatpush2.bf16.msra.mxu0 %v3480_v46 }
 0x170   :  { %2225 = vmatprep.subr.bf16.mxu0 %v3488_v48  ;;  %v3530_v48 = vld [vmem:[#allocation7 + $0x2cc] ss:$16 sps:$4 sm:$0xff]  }
 0x173   :  { %2226 = vmatpush2.bf16.msra.mxu0 %v3486_v49 }
 0x174   :  { %2227 = vmatprep.subr.bf16.mxu0 %v3494_v50 }
 0x177   :  { %2228 = vmatpush2.bf16.msra.mxu0 %v3492_v51 }
 0x178   :  { %2229 = vmatprep.subr.bf16.mxu0 %v3500_v52 }
 0x17b   :  { %2230 = vmatpush2.bf16.msra.mxu0 %v3498_v56 }
 0x17c   :  { %2231 = vmatprep.subr.bf16.mxu0 %v3506_v57 }
 0x17e   :  { %v1111_v6 = vpop.f32.mrf.mxu0 }
 0x17f   :  { %v1184_v35 = vpop.f32.mrf.mxu1  ;;  %2232 = vmatpush2.bf16.msra.mxu0 %v3504_v62  ;;  %v1112_v58 = vadd.f32 %v1111_v6, %v3908_v4 }
 0x180   :  { %v1113_v44 = vpop.f32.mrf.mxu0  ;;  %2233 = vmatprep.subr.bf16.mxu0 %v3512_v24 }
 0x181   :  { %v1186_v47 = vpop.f32.mrf.mxu1  ;;  %v1114_v8 = vadd.f32 %v1113_v44, %v3903_v26  ;;  %v1185_v13 = vadd.f32 %v1184_v35, %v1112_v58  ;;  %v3528_v35 = vld [vmem:[#allocation7 + $0x2c8] ss:$16 sps:$4 sm:$0xff]  }
 0x182   :  { %v1115_v9 = vpop.f32.mrf.mxu0 }
 0x183   :  { %v1188_v59 = vpop.f32.mrf.mxu1  ;;  %v1116_v2 = vadd.f32 %v1115_v9, %v3908_v4  ;;  %2234 = vmatpush2.bf16.msra.mxu0 %v3510_v36  ;;  %v1187_v14 = vadd.f32 %v1186_v47, %v1114_v8  ;;  %v1225_v33 = vmax.f32 %v1185_v13, 0.0  ;;  %v3533_v47 = vld [vmem:[#allocation7 + $0x2ac] ss:$16 sps:$4 sm:$0xff]  }
 0x184   :  { %v1117_v1 = vpop.f32.mrf.mxu0  ;;  %2235 = vmatprep.subr.bf16.mxu0 %v3518_v7 }
 0x185   :  { %v1190_v11 = vpop.f32.mrf.mxu1  ;;  %v1189_v17 = vadd.f32 %v1188_v59, %v1116_v2  ;;  %v1118_v18 = vadd.f32 %v1117_v1, %v3903_v26  ;;  %v1226_v31 = vmax.f32 %v1187_v14, 0.0  ;;  %v3536_v14 = vld [vmem:[#allocation7 + $0x28c] ss:$16 sps:$4 sm:$0xff]  }
 0x186   :  { %v1121_v19 = vpop.f32.mrf.mxu0 }
 0x187   :  { %v1194_v20 = vpop.f32.mrf.mxu1  ;;  %v1191_v22 = vadd.f32 %v1190_v11, %v1118_v18  ;;  %v1122_v23 = vadd.f32 %v1121_v19, %v3908_v4  ;;  %2236 = vmatpush2.bf16.msra.mxu0 %v3516_v5  ;;  %v1229_v27 = vmax.f32 %v1189_v17, 0.0 }
 0x188   :  { %v1123_v29 = vpop.f32.mrf.mxu0  ;;  %2237 = vmatprep.subr.bf16.mxu0 %v3524_v12 }
 0x189   :  { %v1196_v30 = vpop.f32.mrf.mxu1  ;;  %v1230_v53 = vmax.f32 %v1191_v22, 0.0  ;;  %v1124_v54 = vadd.f32 %v1123_v29, %v3903_v26  ;;  %v1195_v34 = vadd.f32 %v1194_v20, %v1122_v23  ;;  %v3919_v43 = vpack.c.bf16 %v1229_v27, %v1225_v33  ;;  %v3534_v29 = vld [vmem:[#allocation7 + $0x288] ss:$16 sps:$4 sm:$0xff]  }
 0x18a   :  { %v1125_v37 = vpop.f32.mrf.mxu0 }
 0x18b   :  { %v1198_v16 = vpop.f32.mrf.mxu1  ;;  %v3916_v38 = vpack.c.bf16 %v1230_v53, %v1226_v31  ;;  %v1126_v39 = vadd.f32 %v1125_v37, %v3908_v4  ;;  %v1197_v15 = vadd.f32 %v1196_v30, %v1124_v54  ;;  %2238 = vmatpush2.bf16.msra.mxu0 %v3522_v25  ;;  %v1233_v51 = vmax.f32 %v1195_v34, 0.0  ;;  %v3539_v53 = vld [vmem:[#allocation7 + $0x26c] ss:$16 sps:$4 sm:$0xff]  }
 0x18c   :  { %v1127_v45 = vpop.f32.mrf.mxu0 }
 0x18d   :  { %v1200_v46 = vpop.f32.mrf.mxu1  ;;  %v1128_v49 = vadd.f32 %v1127_v45, %v3903_v26  ;;  %v1199_v50 = vadd.f32 %v1198_v16, %v1126_v39  ;;  %2166 = vmatprep.mubr.bf16.mxu1 %v3916_v38  ;;  %v1234_v57 = vmax.f32 %v1197_v15, 0.0 }
 0x18e   :  { %2240 = vmatmul.mubr.bf16.vlgmr.msra.gmra.mxu0 %v3866_v32  ;;  %v1131_v52 = vpop.f32.mrf.mxu0  ;;  %2167 = vmatmul.mubr.bf16.vlgmr.msra.gmra.mxu1 %v3919_v43 }
 0x18f   :  { %v1204_v56 = vpop.f32.mrf.mxu1  ;;  %v1237_v62 = vmax.f32 %v1199_v50, 0.0  ;;  %v1132_v24 = vadd.f32 %v1131_v52, %v3908_v4  ;;  %v1201_v6 = vadd.f32 %v1200_v46, %v1128_v49  ;;  %2249 = vmatprep.mubr.bf16.mxu0 %v3875_v61  ;;  %2281 = vmatpush1.bf16.msra.mxu1 %v3525_v42  ;;  %v3531_v61 = vld [vmem:[#allocation7 + $0x2a8] ss:$16 sps:$4 sm:$0xff]  }
 0x190   :  { %v1133_v36 = vpop.f32.mrf.mxu0  ;;  %2282 = vmatprep.subr.bf16.mxu1 %v3530_v48  ;;  %v3542_v48 = vld [vmem:[#allocation7 + $0x24c] ss:$16 sps:$4 sm:$0xff]  }
 0x191   :  { %v1206_v44 = vpop.f32.mrf.mxu1  ;;  %v1238_v7 = vmax.f32 %v1201_v6, 0.0  ;;  %v1134_v32 = vadd.f32 %v1133_v36, %v3903_v26  ;;  %v3928_v8 = vpack.c.bf16 %v1237_v62, %v1233_v51  ;;  %v1205_v58 = vadd.f32 %v1204_v56, %v1132_v24  ;;  %v3545_v62 = vld [vmem:[#allocation7 + $0x22c] ss:$16 sps:$4 sm:$0xff]  }
 0x192   :  { %v1135_v9 = vpop.f32.mrf.mxu0  ;;  %v3551_v36 = vld [vmem:[#allocation7 + $0x3ec] ss:$16 sps:$4 sm:$0xff]  }
 0x193   :  { %v1208_v59 = vpop.f32.mrf.mxu1  ;;  %v3930_v2 = vpack.c.bf16 %v1238_v7, %v1234_v57  ;;  %v1136_v5 = vadd.f32 %v1135_v9, %v3908_v4  ;;  %v1207_v1 = vadd.f32 %v1206_v44, %v1134_v32  ;;  %2283 = vmatpush1.bf16.msra.mxu1 %v3528_v35  ;;  %v1241_v13 = vmax.f32 %v1205_v58, 0.0  ;;  %v3540_v57 = vld [vmem:[#allocation7 + $0x248] ss:$16 sps:$4 sm:$0xff]   ;;  %v3554_v32 = vld [vmem:[#allocation7 + $0x3cc] ss:$16 sps:$4 sm:$0xff]   ;;  %v3575_v58 = vld [vmem:[#allocation9 + $0x70] sm:$0xff]  }
 0x194   :  { %v1137_v11 = vpop.f32.mrf.mxu0  ;;  %2284 = vmatprep.subr.bf16.mxu1 %v3533_v47  ;;  %v3543_v35 = vld [vmem:[#allocation7 + $0x228] ss:$16 sps:$4 sm:$0xff]   ;;  %v3576_v9 = vld [vmem:[#allocation9 + $0x30] sm:$0xff]  }
 0x195   :  { %v1210_v12 = vpop.f32.mrf.mxu1  ;;  %v1138_v17 = vadd.f32 %v1137_v11, %v3903_v26  ;;  %v1209_v18 = vadd.f32 %v1208_v59, %v1136_v5  ;;  %2176 = vmatprep.mubr.bf16.mxu1 %v3930_v2  ;;  %v1242_v22 = vmax.f32 %v1207_v1, 0.0  ;;  %v3573_v44 = vld [vmem:[#allocation9 + $0x78] sm:$0xff]   ;;  %v3577_v59 = vld [vmem:[#allocation9 + $0x68] sm:$0xff]   ;;  %v3579_v1 = vld [vmem:[#allocation9 + $0x60] sm:$0xff]  }
 0x196   :  { %2250 = vmatmul.mubr.bf16.gmra.mxu0 %v3873_v55  ;;  %v1141_v19 = vpop.f32.mrf.mxu0  ;;  %2177 = vmatmul.mubr.bf16.gmra.mxu1 %v3928_v8  ;;  %v3549_v47 = vld [vmem:[#allocation7 + $0x3e8] ss:$16 sps:$4 sm:$0xff]   ;;  %v3557_v5 = vld [vmem:[#allocation7 + $0x3ac] ss:$16 sps:$4 sm:$0xff]  }
 0x197   :  { %v1214_v20 = vpop.f32.mrf.mxu1  ;;  %v1245_v23 = vmax.f32 %v1209_v18, 0.0  ;;  %v1142_v25 = vadd.f32 %v1141_v19, %v3908_v4  ;;  %v1211_v27 = vadd.f32 %v1210_v12, %v1138_v17  ;;  %2259 = vmatprep.mubr.bf16.mxu0 %v3885_v21  ;;  %2285 = vmatpush1.bf16.msra.mxu1 %v3531_v61  ;;  %v3537_v21 = vld [vmem:[#allocation7 + $0x268] ss:$16 sps:$4 sm:$0xff]   ;;  %v3560_v11 = vld [vmem:[#allocation7 + $0x38c] ss:$16 sps:$4 sm:$0xff]   ;;  %v3580_v12 = vld [vmem:[#allocation9 + $0x20] sm:$0xff]  }
 0x198   :  { %v1143_v30 = vpop.f32.mrf.mxu0  ;;  %2286 = vmatprep.subr.bf16.mxu1 %v3536_v14  ;;  %3098 = vmatprep.subr.bf16.mxu0 %v3573_v44  ;;  %v3574_v7 = vld [vmem:[#allocation9 + $0x38] sm:$0xff]  }
 0x199   :  { %v1216_v31 = vpop.f32.mrf.mxu1  ;;  %v1246_v54 = vmax.f32 %v1211_v27, 0.0  ;;  %v1144_v55 = vadd.f32 %v1143_v30, %v3903_v26  ;;  %v3940_v33 = vpack.c.bf16 %v1245_v23, %v1241_v13  ;;  %v1215_v34 = vadd.f32 %v1214_v20, %v1142_v25  ;;  %3099 = vmatpush3.bf16.msra.mxu0 %v3574_v7  ;;  %v3555_v61 = vld [vmem:[#allocation7 + $0x3a8] ss:$16 sps:$4 sm:$0xff]   ;;  %v3563_v18 = vld [vmem:[#allocation7 + $0x36c] ss:$16 sps:$4 sm:$0xff]   ;;  %v3583_v30 = vld [vmem:[#allocation9 + $0x50] sm:$0xff]  }
 0x19a   :  { %v1145_v37 = vpop.f32.mrf.mxu0  ;;  %3100 = vmatprep.subr.bf16.mxu0 %v3575_v58  ;;  %v3581_v14 = vld [vmem:[#allocation9 + $0x58] sm:$0xff]  }
 0x19b   :  { %v1218_v16 = vpop.f32.mrf.mxu1  ;;  %v3942_v39 = vpack.c.bf16 %v1246_v54, %v1242_v22  ;;  %v1146_v15 = vadd.f32 %v1145_v37, %v3908_v4  ;;  %v1217_v42 = vadd.f32 %v1216_v31, %v1144_v55  ;;  %2287 = vmatpush1.bf16.msra.mxu1 %v3534_v29  ;;  %v1249_v51 = vmax.f32 %v1215_v34, 0.0  ;;  %v3558_v17 = vld [vmem:[#allocation7 + $0x388] ss:$16 sps:$4 sm:$0xff]   ;;  %v3566_v19 = vld [vmem:[#allocation7 + $0x34c] ss:$16 sps:$4 sm:$0xff]   ;;  %v3584_v31 = vld [vmem:[#allocation9 + $0x10] sm:$0xff]  }
 0x19c   :  { %v1147_v45 = vpop.f32.mrf.mxu0  ;;  %2288 = vmatprep.subr.bf16.mxu1 %v3539_v53  ;;  %v3561_v13 = vld [vmem:[#allocation7 + $0x368] ss:$16 sps:$4 sm:$0xff]   ;;  %v3569_v22 = vld [vmem:[#allocation7 + $0x32c] ss:$16 sps:$4 sm:$0xff]   ;;  %v3587_v55 = vld [vmem:[#allocation9 + $0x40] sm:$0xff]  }
 0x19d   :  { %v1220_v46 = vpop.f32.mrf.mxu1  ;;  %v1148_v49 = vadd.f32 %v1147_v45, %v3903_v26  ;;  %v1219_v50 = vadd.f32 %v1218_v16, %v1146_v15  ;;  %2186 = vmatprep.mubr.bf16.mxu1 %v3942_v39  ;;  %v1250_v52 = vmax.f32 %v1217_v42, 0.0  ;;  %3101 = vmatpush3.bf16.msra.mxu0 %v3576_v9  ;;  %v3564_v20 = vld [vmem:[#allocation7 + $0x348] ss:$16 sps:$4 sm:$0xff]   ;;  %v3572_v25 = vld [vmem:[#allocation7 + $0x30c] ss:$16 sps:$4 sm:$0xff]   ;;  %v3588_v34 = vld [vmem:[#allocation9] sm:$0xff]  }
 0x19e   :  { %2260 = vmatmul.mubr.bf16.gmra.mxu0 %v3883_v10  ;;  %2187 = vmatmul.mubr.bf16.gmra.mxu1 %v3940_v33  ;;  %v3548_v10 = vld [vmem:[#allocation7 + $0x20c] ss:$16 sps:$4 sm:$0xff]   ;;  %v3567_v23 = vld [vmem:[#allocation7 + $0x328] ss:$16 sps:$4 sm:$0xff]   ;;  %v3591_v37 = vld [vmem:[#allocation9 + $0xf0] sm:$0xff]  }
 0x19f   :  { %v1253_v56 = vmax.f32 %v1219_v50, 0.0  ;;  %v1221_v4 = vadd.f32 %v1220_v46, %v1148_v49  ;;  %2269 = vmatprep.mubr.bf16.mxu0 %v3893_v41  ;;  %2289 = vmatpush1.bf16.msra.mxu1 %v3537_v21  ;;  %v3546_v41 = vld [vmem:[#allocation7 + $0x208] ss:$16 sps:$4 sm:$0xff]   ;;  %v3592_v16 = vld [vmem:[#allocation9 + $0xb0] sm:$0xff]   ;;  %v3595_v15 = vld [vmem:[#allocation9 + $0xe0] sm:$0xff]  }
 0x1a0   :  { %2290 = vmatprep.subr.bf16.mxu1 %v3542_v48  ;;  %3102 = vmatprep.subr.bf16.mxu0 %v3577_v59  ;;  %v3570_v27 = vld [vmem:[#allocation7 + $0x308] ss:$16 sps:$4 sm:$0xff]   ;;  %v3596_v42 = vld [vmem:[#allocation9 + $0xa0] sm:$0xff]   ;;  %v3599_v45 = vld [vmem:[#allocation9 + $0xd0] sm:$0xff]  }
 0x1a1   :  { %v1254_v24 = vmax.f32 %v1221_v4, 0.0  ;;  %v3950_v6 = vpack.c.bf16 %v1253_v56, %v1249_v51  ;;  %v3582_v29 = vld [vmem:[#allocation9 + $0x18] sm:$0xff]   ;;  %v3585_v53 = vld [vmem:[#allocation9 + $0x48] sm:$0xff]   ;;  %v3600_v46 = vld [vmem:[#allocation9 + $0x90] sm:$0xff]  }
 0x1a2   :  { %v3586_v54 = vld [vmem:[#allocation9 + $0x8] sm:$0xff]   ;;  %v3598_v21 = vld [vmem:[#allocation9 + $0x98] sm:$0xff]   ;;  %v3603_v50 = vld [vmem:[#allocation9 + $0xc0] sm:$0xff]  }
 0x1a3   :  { %v3952_v26 = vpack.c.bf16 %v1254_v24, %v1250_v52  ;;  %2291 = vmatpush1.bf16.msra.mxu1 %v3540_v57  ;;  %v3601_v48 = vld [vmem:[#allocation9 + $0xc8] sm:$0xff]   ;;  %v3604_v51 = vld [vmem:[#allocation9 + $0x80] sm:$0xff]  }
 0x1a4   :  { %2292 = vmatprep.subr.bf16.mxu1 %v3545_v62  ;;  %v3602_v49 = vld [vmem:[#allocation9 + $0x88] sm:$0xff]  }
 0x1a5   :  { %2196 = vmatprep.mubr.bf16.mxu1 %v3952_v26 }
 0x1a6   :  { %2270 = vmatmul.mubr.bf16.gmra.mxu0 %v3891_v40  ;;  %2197 = vmatmul.mubr.bf16.gmra.mxu1 %v3950_v6  ;;  %v3552_v40 = vld [vmem:[#allocation7 + $0x3c8] ss:$16 sps:$4 sm:$0xff]  }
 0x1a7   :  { %2293 = vmatpush1.bf16.msra.mxu1 %v3543_v35  ;;  %2312 = vmatprep.mubr.bf16.mxu1 %v3916_v38  ;;  %v3578_v38 = vld [vmem:[#allocation9 + $0x28] sm:$0xff]   ;;  %v3968_v35 = vld [vmem:[%s4053_s4] sm:$0xf] }
 0x1a8   :  { %2294 = vmatprep.subr.bf16.mxu1 %v3548_v10  ;;  %3103 = vmatpush3.bf16.msra.mxu0 %v3578_v38 }
 0x1a9   :  { %3104 = vmatprep.subr.bf16.mxu0 %v3579_v1 }
 0x1ab   :  { %2295 = vmatpush1.bf16.msra.mxu1 %v3546_v41  ;;  %v3973_v41 = vrot.slane %v3968_v35, %v277_v0 }
 0x1ac   :  { %2296 = vmatprep.subr.bf16.mxu1 %v3551_v36  ;;  %3105 = vmatpush3.bf16.msra.mxu0 %v3580_v12  ;;  %v3978_v36 = vrot.slane %v3968_v35, %v273_v3 }
 0x1ad   :  { %3106 = vmatprep.subr.bf16.mxu0 %v3581_v14 }
 0x1af   :  { %2297 = vmatpush2.bf16.msra.mxu1 %v3549_v47 }
 0x1b0   :  { %2298 = vmatprep.subr.bf16.mxu1 %v3554_v32  ;;  %3107 = vmatpush3.bf16.msra.mxu0 %v3582_v29 }
 0x1b1   :  { %3108 = vmatprep.subr.bf16.mxu0 %v3583_v30 }
 0x1b3   :  { %2299 = vmatpush2.bf16.msra.mxu1 %v3552_v40 }
 0x1b4   :  { %2300 = vmatprep.subr.bf16.mxu1 %v3557_v5  ;;  %3109 = vmatpush3.bf16.msra.mxu0 %v3584_v31 }
 0x1b5   :  { %3110 = vmatprep.subr.bf16.mxu0 %v3585_v53 }
 0x1b7   :  { %2301 = vmatpush2.bf16.msra.mxu1 %v3555_v61 }
 0x1b8   :  { %2302 = vmatprep.subr.bf16.mxu1 %v3560_v11  ;;  %3111 = vmatpush3.bf16.msra.mxu0 %v3586_v54 }
 0x1b9   :  { %3112 = vmatprep.subr.bf16.mxu0 %v3587_v55 }
 0x1bb   :  { %2303 = vmatpush2.bf16.msra.mxu1 %v3558_v17 }
 0x1bc   :  { %2304 = vmatprep.subr.bf16.mxu1 %v3563_v18  ;;  %3113 = vmatpush3.bf16.msra.mxu0 %v3588_v34 }
 0x1bf   :  { %2305 = vmatpush2.bf16.msra.mxu1 %v3561_v13 }
 0x1c0   :  { %2306 = vmatprep.subr.bf16.mxu1 %v3566_v19 }
 0x1c3   :  { %2307 = vmatpush2.bf16.msra.mxu1 %v3564_v20 }
 0x1c4   :  { %2308 = vmatprep.subr.bf16.mxu1 %v3569_v22 }
 0x1c7   :  { %2309 = vmatpush2.bf16.msra.mxu1 %v3567_v23 }
 0x1c8   :  { %2310 = vmatprep.subr.bf16.mxu1 %v3572_v25 }
 0x1cb   :  { %2311 = vmatpush2.bf16.msra.mxu1 %v3570_v27 }
 0x1ce   :  { %2313 = vmatmul.mubr.bf16.vlgmr.msra.gmra.mxu1 %v3919_v43  ;;  %v3589_v43 = vld [vmem:[#allocation9 + $0xf8] sm:$0xff]  }
 0x1cf   :  { %2322 = vmatprep.mubr.bf16.mxu1 %v3930_v2  ;;  %v3590_v2 = vld [vmem:[#allocation9 + $0xb8] sm:$0xff]   ;;  %3138 = vmatprep.subr.bf16.mxu1 %v3589_v43 }
 0x1d0   :  { %3139 = vmatpush3.bf16.msra.mxu1 %v3590_v2 }
 0x1d1   :  { %3140 = vmatprep.subr.bf16.mxu1 %v3591_v37 }
 0x1d4   :  { %3141 = vmatpush3.bf16.msra.mxu1 %v3592_v16 }
 0x1d6   :  { %2323 = vmatmul.mubr.bf16.gmra.mxu1 %v3928_v8  ;;  %v3593_v8 = vld [vmem:[#allocation9 + $0xe8] sm:$0xff]  }
 0x1d7   :  { %2332 = vmatprep.mubr.bf16.mxu1 %v3942_v39  ;;  %v3594_v39 = vld [vmem:[#allocation9 + $0xa8] sm:$0xff]   ;;  %3142 = vmatprep.subr.bf16.mxu1 %v3593_v8 }
 0x1d8   :  { %3143 = vmatpush3.bf16.msra.mxu1 %v3594_v39 }
 0x1d9   :  { %3144 = vmatprep.subr.bf16.mxu1 %v3595_v15 }
 0x1dc   :  { %3145 = vmatpush3.bf16.msra.mxu1 %v3596_v42 }
 0x1de   :  { %2333 = vmatmul.mubr.bf16.gmra.mxu1 %v3940_v33  ;;  %v3597_v33 = vld [vmem:[#allocation9 + $0xd8] sm:$0xff]  }
 0x1df   :  { %2342 = vmatprep.mubr.bf16.mxu1 %v3952_v26  ;;  %3146 = vmatprep.subr.bf16.mxu1 %v3597_v33 }
 0x1e0   :  { %3147 = vmatpush3.bf16.msra.mxu1 %v3598_v21 }
 0x1e1   :  { %3148 = vmatprep.subr.bf16.mxu1 %v3599_v45 }
 0x1e4   :  { %3149 = vmatpush3.bf16.msra.mxu1 %v3600_v46 }
 0x1e5   :  { %3150 = vmatprep.subr.bf16.mxu1 %v3601_v48 }
 0x1e6   :  { %2343 = vmatmul.mubr.bf16.gmra.mxu1 %v3950_v6 }
 0x1e8   :  { %3151 = vmatpush3.bf16.msra.mxu1 %v3602_v49 }
 0x1e9   :  { %3152 = vmatprep.subr.bf16.mxu1 %v3603_v50 }
 0x1ec   :  { %3153 = vmatpush3.bf16.msra.mxu1 %v3604_v51 }
 0x20e   :  { %v2095_v52 = vpop.f32.mrf.mxu0 }
 0x20f   :  { %v2096_v9 = vadd.f32 %v2095_v52, %v3978_v36 }
 0x210   :  { %v2097_v56 = vpop.f32.mrf.mxu0 }
 0x211   :  { %v2098_v32 = vadd.f32 %v2097_v56, %v3973_v41 }
 0x212   :  { %v2099_v4 = vpop.f32.mrf.mxu0 }
 0x213   :  { %v2100_v58 = vadd.f32 %v2099_v4, %v3978_v36 }
 0x214   :  { %v2101_v57 = vpop.f32.mrf.mxu0 }
 0x215   :  { %v2102_v40 = vadd.f32 %v2101_v57, %v3973_v41 }
 0x216   :  { %v2105_v62 = vpop.f32.mrf.mxu0 }
 0x217   :  { %v2106_v25 = vadd.f32 %v2105_v62, %v3978_v36 }
 0x218   :  { %v2107_v24 = vpop.f32.mrf.mxu0 }
 0x219   :  { %v2108_v20 = vadd.f32 %v2107_v24, %v3973_v41 }
 0x21a   :  { %v2109_v6 = vpop.f32.mrf.mxu0 }
 0x21b   :  { %v2110_v22 = vadd.f32 %v2109_v6, %v3978_v36 }
 0x21c   :  { %v2111_v26 = vpop.f32.mrf.mxu0 }
 0x21d   :  { %v2112_v30 = vadd.f32 %v2111_v26, %v3973_v41 }
 0x21e   :  { %v2115_v10 = vpop.f32.mrf.mxu0 }
 0x21f   :  { %v2116_v46 = vadd.f32 %v2115_v10, %v3978_v36 }
 0x220   :  { %v2117_v47 = vpop.f32.mrf.mxu0 }
 0x221   :  { %v2118_v33 = vadd.f32 %v2117_v47, %v3973_v41 }
 0x222   :  { %v2119_v38 = vpop.f32.mrf.mxu0 }
 0x223   :  { %v2120_v21 = vadd.f32 %v2119_v38, %v3978_v36 }
 0x224   :  { %v2121_v18 = vpop.f32.mrf.mxu0 }
 0x225   :  { %v2122_v50 = vadd.f32 %v2121_v18, %v3973_v41 }
 0x226   :  { %v2125_v54 = vpop.f32.mrf.mxu0 }
 0x228   :  { %v2127_v39 = vpop.f32.mrf.mxu0 }
 0x229   :  { %v2128_v10 = vadd.f32 %v2127_v39, %v3973_v41 }
 0x22a   :  { %v2129_v56 = vpop.f32.mrf.mxu0 }
 0x22c   :  { %v2131_v47 = vpop.f32.mrf.mxu0 }
 0x24e   :  { %v2168_v44 = vpop.f32.mrf.mxu1 }
 0x24f   :  { %v2169_v1 = vadd.f32 %v2168_v44, %v2096_v9 }
 0x250   :  { %v2170_v7 = vpop.f32.mrf.mxu1 }
 0x251   :  { %v2171_v5 = vadd.f32 %v2170_v7, %v2098_v32  ;;  %v2353_v13 = vmax.f32 %v2169_v1, 0.0 }
 0x252   :  { %v2172_v59 = vpop.f32.mrf.mxu1 }
 0x253   :  { %v2173_v0 = vadd.f32 %v2172_v59, %v2100_v58  ;;  %v2354_v14 = vmax.f32 %v2171_v5, 0.0  ;;  %v2130_v58 = vadd.f32 %v2129_v56, %v3978_v36  ;;  %v2126_v59 = vadd.f32 %v2125_v54, %v3978_v36 }
 0x254   :  { %v2174_v61 = vpop.f32.mrf.mxu1 }
 0x255   :  { %v2175_v11 = vadd.f32 %v2174_v61, %v2102_v40  ;;  %v2357_v3 = vmax.f32 %v2173_v0, 0.0  ;;  %v2132_v0 = vadd.f32 %v2131_v47, %v3973_v41  ;;  %v2241_v61 = vpop.f32.mrf.mxu0 }
 0x256   :  { %v2178_v12 = vpop.f32.mrf.mxu1 }
 0x257   :  { %v2358_v17 = vmax.f32 %v2175_v11, 0.0  ;;  %v2385_v27 = vpack.c.bf16 %v2357_v3, %v2353_v13  ;;  %v2179_v55 = vadd.f32 %v2178_v12, %v2106_v25  ;;  %v2243_v13 = vpop.f32.mrf.mxu0 }
 0x258   :  { %v2180_v19 = vpop.f32.mrf.mxu1 }
 0x259   :  { %v2386_v23 = vpack.c.bf16 %v2358_v17, %v2354_v14  ;;  %v2181_v31 = vadd.f32 %v2180_v19, %v2108_v20  ;;  %v2361_v15 = vmax.f32 %v2179_v55, 0.0  ;;  %v2245_v36 = vpop.f32.mrf.mxu0 }
 0x25a   :  { %v2182_v29 = vpop.f32.mrf.mxu1 }
 0x25b   :  { %v2183_v53 = vadd.f32 %v2182_v29, %v2110_v22  ;;  %2696 = vmatprep.mubr.bf16.mxu0 %v2386_v23  ;;  %v2362_v16 = vmax.f32 %v2181_v31, 0.0  ;;  %v2247_v23 = vpop.f32.mrf.mxu0  ;;  %v3999_v31 = vrot.slane %v3968_v35, %v285_v28 }
 0x25c   :  { %v2184_v34 = vpop.f32.mrf.mxu1  ;;  %2697 = vmatmul.mubr.bf16.vlgmr.msra.gmra.mxu0 %v2385_v27 }
 0x25d   :  { %v2185_v43 = vadd.f32 %v2184_v34, %v2112_v30  ;;  %v2365_v2 = vmax.f32 %v2183_v53, 0.0  ;;  %v2251_v41 = vpop.f32.mrf.mxu0  ;;  %v4004_v53 = vrot.slane %v3968_v35, %v281_v60 }
 0x25e   :  { %v2188_v37 = vpop.f32.mrf.mxu1 }
 0x25f   :  { %v2366_v8 = vmax.f32 %v2185_v43, 0.0  ;;  %v2389_v48 = vpack.c.bf16 %v2365_v2, %v2361_v15  ;;  %v2189_v4 = vadd.f32 %v2188_v37, %v2116_v46  ;;  %v2253_v25 = vpop.f32.mrf.mxu0  ;;  %v2244_v43 = vadd.f32 %v2243_v13, %v3999_v31 }
 0x260   :  { %v2190_v42 = vpop.f32.mrf.mxu1  ;;  %v2246_v2 = vadd.f32 %v2245_v36, %v4004_v53  ;;  %v2242_v37 = vadd.f32 %v2241_v61, %v4004_v53  ;;  %v2252_v56 = vadd.f32 %v2251_v41, %v4004_v53 }
 0x261   :  { %v2390_v45 = vpack.c.bf16 %v2366_v8, %v2362_v16  ;;  %v2191_v51 = vadd.f32 %v2190_v42, %v2118_v33  ;;  %v2369_v7 = vmax.f32 %v2189_v4, 0.0  ;;  %v2255_v27 = vpop.f32.mrf.mxu0  ;;  %v2248_v8 = vadd.f32 %v2247_v23, %v3999_v31 }
 0x262   :  { %v2192_v49 = vpop.f32.mrf.mxu1 }
 0x263   :  { %v2193_v52 = vadd.f32 %v2192_v49, %v2120_v21  ;;  %2704 = vmatprep.mubr.bf16.mxu0 %v2390_v45  ;;  %v2370_v26 = vmax.f32 %v2191_v51, 0.0  ;;  %v2257_v29 = vpop.f32.mrf.mxu0  ;;  %v2256_v51 = vadd.f32 %v2255_v27, %v4004_v53 }
 0x264   :  { %v2194_v57 = vpop.f32.mrf.mxu1  ;;  %2705 = vmatmul.mubr.bf16.gmra.mxu0 %v2389_v48 }
 0x265   :  { %v2195_v62 = vadd.f32 %v2194_v57, %v2122_v50  ;;  %v2373_v24 = vmax.f32 %v2193_v52, 0.0  ;;  %v2261_v30 = vpop.f32.mrf.mxu0  ;;  %v2254_v50 = vadd.f32 %v2253_v25, %v3999_v31 }
 0x266   :  { %v2198_v6 = vpop.f32.mrf.mxu1  ;;  %v2262_v61 = vadd.f32 %v2261_v30, %v4004_v53 }
 0x267   :  { %v2374_v44 = vmax.f32 %v2195_v62, 0.0  ;;  %v2393_v40 = vpack.c.bf16 %v2373_v24, %v2369_v7  ;;  %v2199_v11 = vadd.f32 %v2198_v6, %v2126_v59  ;;  %v2263_v55 = vpop.f32.mrf.mxu0  ;;  %v2258_v62 = vadd.f32 %v2257_v29, %v3999_v31 }
 0x268   :  { %v2200_v32 = vpop.f32.mrf.mxu1 }
 0x269   :  { %v2394_v9 = vpack.c.bf16 %v2374_v44, %v2370_v26  ;;  %v2201_v38 = vadd.f32 %v2200_v32, %v2128_v10  ;;  %v2377_v19 = vmax.f32 %v2199_v11, 0.0  ;;  %v2265_v15 = vpop.f32.mrf.mxu0 }
 0x26a   :  { %v2202_v5 = vpop.f32.mrf.mxu1 }
 0x26b   :  { %v2203_v1 = vadd.f32 %v2202_v5, %v2130_v58  ;;  %2712 = vmatprep.mubr.bf16.mxu0 %v2394_v9  ;;  %v2378_v17 = vmax.f32 %v2201_v38, 0.0  ;;  %v2267_v46 = vpop.f32.mrf.mxu0  ;;  %v2266_v38 = vadd.f32 %v2265_v15, %v4004_v53 }
 0x26c   :  { %v2204_v3 = vpop.f32.mrf.mxu1  ;;  %2713 = vmatmul.mubr.bf16.gmra.mxu0 %v2393_v40 }
 0x26d   :  { %v2205_v12 = vadd.f32 %v2204_v3, %v2132_v0  ;;  %v2381_v14 = vmax.f32 %v2203_v1, 0.0  ;;  %v2271_v26 = vpop.f32.mrf.mxu0  ;;  %v2264_v0 = vadd.f32 %v2263_v55, %v3999_v31 }
 0x26f   :  { %v2382_v18 = vmax.f32 %v2205_v12, 0.0  ;;  %v2397_v22 = vpack.c.bf16 %v2381_v14, %v2377_v19  ;;  %v2273_v59 = vpop.f32.mrf.mxu0  ;;  %v2268_v12 = vadd.f32 %v2267_v46, %v3999_v31 }
 0x270   :  { %v2274_v30 = vadd.f32 %v2273_v59, %v3999_v31 }
 0x271   :  { %v2398_v20 = vpack.c.bf16 %v2382_v18, %v2378_v17  ;;  %v2275_v18 = vpop.f32.mrf.mxu0 }
 0x273   :  { %2720 = vmatprep.mubr.bf16.mxu0 %v2398_v20  ;;  %v2277_v25 = vpop.f32.mrf.mxu0 }
 0x274   :  { %2721 = vmatmul.mubr.bf16.gmra.mxu0 %v2397_v22 }
 0x28e   :  { %v2314_v54 = vpop.f32.mrf.mxu1 }
 0x28f   :  { %v2315_v42 = vadd.f32 %v2314_v54, %v2242_v37  ;;  %v2276_v54 = vadd.f32 %v2275_v18, %v4004_v53  ;;  %v2278_v37 = vadd.f32 %v2277_v25, %v3999_v31 }
 0x290   :  { %v2316_v34 = vpop.f32.mrf.mxu1 }
 0x291   :  { %v2317_v39 = vadd.f32 %v2316_v34, %v2244_v43  ;;  %v2355_v48 = vmax.f32 %v2315_v42, 0.0  ;;  %v2272_v34 = vadd.f32 %v2271_v26, %v4004_v53 }
 0x292   :  { %v2318_v16 = vpop.f32.mrf.mxu1 }
 0x293   :  { %v2319_v28 = vadd.f32 %v2318_v16, %v2246_v2  ;;  %v2356_v21 = vmax.f32 %v2317_v39, 0.0 }
 0x294   :  { %v2320_v63 = vpop.f32.mrf.mxu1 }
 0x295   :  { %v2321_v33 = vadd.f32 %v2320_v63, %v2248_v8  ;;  %v2359_v60 = vmax.f32 %v2319_v28, 0.0 }
 0x296   :  { %v2324_v35 = vpop.f32.mrf.mxu1 }
 0x297   :  { %v2360_v45 = vmax.f32 %v2321_v33, 0.0  ;;  %v2387_v4 = vpack.c.bf16 %v2359_v60, %v2355_v48  ;;  %v2325_v44 = vadd.f32 %v2324_v35, %v2252_v56 }
 0x298   :  { %v2326_v49 = vpop.f32.mrf.mxu1 }
 0x299   :  { %v2388_v52 = vpack.c.bf16 %v2360_v45, %v2356_v21  ;;  %v2327_v24 = vadd.f32 %v2326_v49, %v2254_v50  ;;  %v2363_v40 = vmax.f32 %v2325_v44, 0.0 }
 0x29a   :  { %v2328_v57 = vpop.f32.mrf.mxu1 }
 0x29b   :  { %v2329_v6 = vadd.f32 %v2328_v57, %v2256_v51  ;;  %2761 = vmatprep.mubr.bf16.mxu1 %v2388_v52  ;;  %v2364_v58 = vmax.f32 %v2327_v24, 0.0 }
 0x29c   :  { %v2330_v47 = vpop.f32.mrf.mxu1  ;;  %2762 = vmatmul.mubr.bf16.vlgmr.msra.gmra.mxu1 %v2387_v4  ;;  %v3065_v4 = vld [vmem:[%s4055_s6] ss:$0 sm:$0xff] }
 0x29d   :  { %v2331_v7 = vadd.f32 %v2330_v47, %v2258_v62  ;;  %v2367_v32 = vmax.f32 %v2329_v6, 0.0 }
 0x29e   :  { %v2334_v10 = vpop.f32.mrf.mxu1 }
 0x29f   :  { %v2368_v9 = vmax.f32 %v2331_v7, 0.0  ;;  %v2391_v11 = vpack.c.bf16 %v2367_v32, %v2363_v40  ;;  %v2335_v13 = vadd.f32 %v2334_v10, %v2262_v61 }
 0x2a0   :  { %v2336_v5 = vpop.f32.mrf.mxu1 }
 0x2a1   :  { %v2392_v1 = vpack.c.bf16 %v2368_v9, %v2364_v58  ;;  %v2337_v14 = vadd.f32 %v2336_v5, %v2264_v0  ;;  %v2371_v27 = vmax.f32 %v2335_v13, 0.0 }
 0x2a2   :  { %v2338_v3 = vpop.f32.mrf.mxu1 }
 0x2a3   :  { %v2339_v17 = vadd.f32 %v2338_v3, %v2266_v38  ;;  %2769 = vmatprep.mubr.bf16.mxu1 %v2392_v1  ;;  %v2372_v23 = vmax.f32 %v2337_v14, 0.0 }
 0x2a4   :  { %v2340_v19 = vpop.f32.mrf.mxu1  ;;  %2770 = vmatmul.mubr.bf16.gmra.mxu1 %v2391_v11 }
 0x2a5   :  { %v2341_v20 = vadd.f32 %v2340_v19, %v2268_v12  ;;  %v2375_v22 = vmax.f32 %v2339_v17, 0.0 }
 0x2a6   :  { %v2344_v36 = vpop.f32.mrf.mxu1 }
 0x2a7   :  { %v2376_v41 = vmax.f32 %v2341_v20, 0.0  ;;  %v2395_v43 = vpack.c.bf16 %v2375_v22, %v2371_v27  ;;  %v2345_v39 = vadd.f32 %v2344_v36, %v2272_v34 }
 0x2a8   :  { %v2346_v29 = vpop.f32.mrf.mxu1 }
 0x2a9   :  { %v2396_v55 = vpack.c.bf16 %v2376_v41, %v2372_v23  ;;  %v2347_v16 = vadd.f32 %v2346_v29, %v2274_v30  ;;  %v2379_v60 = vmax.f32 %v2345_v39, 0.0 }
 0x2aa   :  { %v2348_v2 = vpop.f32.mrf.mxu1 }
 0x2ab   :  { %v2349_v8 = vadd.f32 %v2348_v2, %v2276_v54  ;;  %2777 = vmatprep.mubr.bf16.mxu1 %v2396_v55  ;;  %v2380_v63 = vmax.f32 %v2347_v16, 0.0 }
 0x2ac   :  { %v2350_v28 = vpop.f32.mrf.mxu1  ;;  %2778 = vmatmul.mubr.bf16.gmra.mxu1 %v2395_v43 }
 0x2ad   :  { %v2351_v15 = vadd.f32 %v2350_v28, %v2278_v37  ;;  %v2383_v42 = vmax.f32 %v2349_v8, 0.0 }
 0x2af   :  { %v2384_v33 = vmax.f32 %v2351_v15, 0.0  ;;  %v2399_v21 = vpack.c.bf16 %v2383_v42, %v2379_v60 }
 0x2b1   :  { %v2400_v35 = vpack.c.bf16 %v2384_v33, %v2380_v63 }
 0x2b3   :  { %2785 = vmatprep.mubr.bf16.mxu1 %v2400_v35 }
 0x2b4   :  { %2786 = vmatmul.mubr.bf16.gmra.mxu1 %v2399_v21 }
 0x31c   :  { %v3114_v53 = vpop.f32.mrf.mxu0 }
 0x31e   :  { %v3115_v45 = vpop.f32.mrf.mxu0 }
 0x31f   :  { %v3116_v56 = vadd.f32 %v3115_v45, %v3114_v53 }
 0x320   :  { %v3117_v46 = vpop.f32.mrf.mxu0 }
 0x321   :  { %v2699_v6 = vadd.f32 %v3116_v56, %v3065_v4 }
 0x322   :  { %v3118_v48 = vpop.f32.mrf.mxu0 }
 0x323   :  { %v3119_v26 = vadd.f32 %v3118_v48, %v3117_v46 }
 0x324   :  { %v3120_v31 = vpop.f32.mrf.mxu0 }
 0x325   :  { %v2702_v58 = vadd.f32 %v3119_v26, %v3065_v4 }
 0x326   :  { %v3121_v49 = vpop.f32.mrf.mxu0 }
 0x327   :  { %v3122_v9 = vadd.f32 %v3121_v49, %v3120_v31 }
 0x328   :  { %v3123_v50 = vpop.f32.mrf.mxu0 }
 0x329   :  { %v2707_v1 = vadd.f32 %v3122_v9, %v3065_v4 }
 0x32a   :  { %v3124_v51 = vpop.f32.mrf.mxu0 }
 0x32b   :  { %v3125_v61 = vadd.f32 %v3124_v51, %v3123_v50 }
 0x32c   :  { %v3126_v52 = vpop.f32.mrf.mxu0 }
 0x32d   :  { %v2710_v18 = vadd.f32 %v3125_v61, %v3065_v4 }
 0x32e   :  { %v3127_v57 = vpop.f32.mrf.mxu0 }
 0x32f   :  { %v3128_v13 = vadd.f32 %v3127_v57, %v3126_v52 }
 0x330   :  { %v3129_v47 = vpop.f32.mrf.mxu0 }
 0x331   :  { %v2715_v41 = vadd.f32 %v3128_v13, %v3065_v4 }
 0x332   :  { %v3130_v40 = vpop.f32.mrf.mxu0 }
 0x333   :  { %v3131_v25 = vadd.f32 %v3130_v40, %v3129_v47 }
 0x334   :  { %v3132_v3 = vpop.f32.mrf.mxu0 }
 0x335   :  { %v2718_v34 = vadd.f32 %v3131_v25, %v3065_v4 }
 0x336   :  { %v3133_v20 = vpop.f32.mrf.mxu0 }
 0x337   :  { %v3134_v43 = vadd.f32 %v3133_v20, %v3132_v3 }
 0x338   :  { %v3135_v29 = vpop.f32.mrf.mxu0 }
 0x339   :  { %v2723_v28 = vadd.f32 %v3134_v43, %v3065_v4 }
 0x33a   :  { %v3136_v37 = vpop.f32.mrf.mxu0 }
 0x33b   :  { %v3137_v15 = vadd.f32 %v3136_v37, %v3135_v29 }
 0x33d   :  { %v2726_v35 = vadd.f32 %v3137_v15, %v3065_v4 }
 0x35c   :  { %v3154_v62 = vpop.f32.mrf.mxu1 }
 0x35e   :  { %v3155_v24 = vpop.f32.mrf.mxu1 }
 0x35f   :  { %v3156_v44 = vadd.f32 %v3155_v24, %v3154_v62 }
 0x360   :  { %v3157_v7 = vpop.f32.mrf.mxu1 }
 0x361   :  { %v2764_v32 = vadd.f32 %v3156_v44, %v2699_v6 }
 0x362   :  { %v3158_v10 = vpop.f32.mrf.mxu1 }
 0x363   :  { %2794 = vst [vmem:[%s4056_s7] sm:$0xff] %v2764_v32  ;;  %v3159_v59 = vadd.f32 %v3158_v10, %v3157_v7 }
 0x364   :  { %v3160_v5 = vpop.f32.mrf.mxu1 }
 0x365   :  { %v2767_v0 = vadd.f32 %v3159_v59, %v2702_v58 }
 0x366   :  { %v3161_v38 = vpop.f32.mrf.mxu1 }
 0x367   :  { %2795 = vst [vmem:[%s4056_s7 + $0x8] sm:$0xff] %v2767_v0  ;;  %v3162_v11 = vadd.f32 %v3161_v38, %v3160_v5 }
 0x368   :  { %v3163_v12 = vpop.f32.mrf.mxu1 }
 0x369   :  { %v2772_v14 = vadd.f32 %v3162_v11, %v2707_v1 }
 0x36a   :  { %v3164_v17 = vpop.f32.mrf.mxu1 }
 0x36b   :  { %2796 = vst [vmem:[%s4056_s7 + $0x10] sm:$0xff] %v2772_v14  ;;  %v3165_v19 = vadd.f32 %v3164_v17, %v3163_v12 }
 0x36c   :  { %v3166_v22 = vpop.f32.mrf.mxu1 }
 0x36d   :  { %v2775_v36 = vadd.f32 %v3165_v19, %v2710_v18 }
 0x36e   :  { %v3167_v23 = vpop.f32.mrf.mxu1 }
 0x36f   :  { %2797 = vst [vmem:[%s4056_s7 + $0x18] sm:$0xff] %v2775_v36  ;;  %v3168_v27 = vadd.f32 %v3167_v23, %v3166_v22 }
 0x370   :  { %v3169_v30 = vpop.f32.mrf.mxu1 }
 0x371   :  { %v2780_v54 = vadd.f32 %v3168_v27, %v2715_v41 }
 0x372   :  { %v3170_v55 = vpop.f32.mrf.mxu1 }
 0x373   :  { %2798 = vst [vmem:[%s4056_s7 + $0x20] sm:$0xff] %v2780_v54  ;;  %v3171_v2 = vadd.f32 %v3170_v55, %v3169_v30 }
 0x374   :  { %v3172_v16 = vpop.f32.mrf.mxu1 }
 0x375   :  { %v2783_v8 = vadd.f32 %v3171_v2, %v2718_v34 }
 0x376   :  { %v3173_v39 = vpop.f32.mrf.mxu1 }
 0x377   :  { %2799 = vst [vmem:[%s4056_s7 + $0x28] sm:$0xff] %v2783_v8  ;;  %v3174_v42 = vadd.f32 %v3173_v39, %v3172_v16 }
 0x378   :  { %v3175_v63 = vpop.f32.mrf.mxu1 }
 0x379   :  { %v2788_v33 = vadd.f32 %v3174_v42, %v2723_v28 }
 0x37a   :  { %v3176_v60 = vpop.f32.mrf.mxu1 }
 0x37b   :  { %2800 = vst [vmem:[%s4056_s7 + $0x30] sm:$0xff] %v2788_v33  ;;  %v3177_v21 = vadd.f32 %v3176_v60, %v3175_v63 }
 0x37d   :  { %v2791_v53 = vadd.f32 %v3177_v21, %v2726_v35 }
 0x37f   :  { %2801 = vst [vmem:[%s4056_s7 + $0x38] sm:$0xff] %v2791_v53 }
 0x380   :  { %2806 = vsyncpa [#allocation3], 1 }
 0x381   :  { %2807 = vsyncpa [#allocation5], 1 }
 0x382   :  { %2808 = vsyncpa [#allocation8], 1 }

// kernel: label_predictor_forward.1
= control target key start
LH: loop header
LB: loop body
LE: loop exit
PB: predicated region body
PF: predicated region fallthrough
CT: control target
= control target key end

     0   :  { %12 = vsyncpa [#allocation3], 0  ;;  %s4049_s0 = inlined_call_operand.hbm [shape: f32[64,512], index: 0, kind: input, shape index: {}]   ;;  %s4050_s1 = inlined_call_operand.hbm [shape: bf16[512,512], index: 1, kind: input, shape index: {}]   ;;  %s4051_s2 = inlined_call_operand.hbm [shape: f32[1,512], index: 2, kind: input, shape index: {}]   ;;  %s4052_s3 = inlined_call_operand.hbm [shape: bf16[512,512], index: 3, kind: input, shape index: {}]   ;;  %s4053_s4 = inlined_call_operand.vmem [shape: f32[1,512], index: 4, kind: input, shape index: {}]   ;;  %s4054_s5 = inlined_call_operand.hbm [shape: bf16[512,128], index: 5, kind: input, shape index: {}]   ;;  %s4055_s6 = inlined_call_operand.vmem [shape: f32[1,128], index: 6, kind: input, shape index: {}]   ;;  %s4056_s7 = inlined_call_operand.vmem [shape: f32[64,128], index: 7, kind: output, shape index: {}]  }
   0x1   :  { %13 = vsyncpa [#allocation5], 0 }
   0x2   :  { %14 = vsyncpa [#allocation8], 0  ;;  %s3711_s24 = smov [#allocation4]  }
   0x3   :  { %s32_s25 = sshll.u32 %s3711_s24, 4  ;;  %s33_s25 = int_to_ptr.vmem [resolvable:$true] %s32_s25 }
   0x4   :  { %s3613_s26 = scalar_lea.vmem %s33_s25, 16384  ;;  %p3618_p1 = scmp.lt.s32.totalorder %s33_s25, %s33_s25 }
   0x5   :  { %p3614_p0 = scmp.ne.s32.totalorder %s33_s25, %s3613_s26  ;;  %p3619_p2 = scmp.lt.s32.totalorder %s3613_s26, %s3613_s26 }
   0x7   :  { %p3620_p3 = por %p3619_p2, %p3618_p1 }
   0x9   :  { %p3621_p4 = pnand %p3620_p3, %p3614_p0 }
   0xb   :  { %3624 = shalt.err (!%p3621_p4)
}
   0xc   :  { %s3712_s27 = smov 256   ;;  %s3713_s28 = smov 16  }
   0xd   :  { %38 = dma.hbm_to_vmem [thread:$0]  %s4050_s1, 16384, %s33_s25, [#allocation5], %s3712_s27, %s3712_s27, %s3713_s28  }
   0xe   :  { %s3714_s8 = smov [#allocation7]   ;;  %s3715_s10 = smov [#allocation2]  }
   0xf   :  { %s54_s9 = sshll.u32 %s3714_s8, 4  ;;  %s20_s11 = sshll.u32 %s3715_s10, 4  ;;  %s55_s9 = int_to_ptr.vmem [resolvable:$true] %s54_s9  ;;  %s21_s11 = int_to_ptr.vmem [resolvable:$true] %s20_s11 }
  0x10   :  { %s3633_s12 = scalar_lea.vmem %s55_s9, 16384  ;;  %p3638_p6 = scmp.lt.s32.totalorder %s55_s9, %s55_s9 }
  0x11   :  { %p3634_p5 = scmp.ne.s32.totalorder %s55_s9, %s3633_s12  ;;  %p3639_p7 = scmp.lt.s32.totalorder %s3633_s12, %s3633_s12 }
  0x13   :  { %p3640_p8 = por %p3639_p7, %p3638_p6 }
  0x15   :  { %p3641_p9 = pnand %p3640_p8, %p3634_p5 }
  0x17   :  { %3644 = shalt.err (!%p3641_p9)
}
  0x18   :  { %60 = dma.hbm_to_vmem [thread:$0]  %s4052_s3, 16384, %s55_s9, [#allocation8], %s3712_s27, %s3712_s27, %s3713_s28  }
  0x19   :  { %s3653_s15 = scalar_lea.vmem %s21_s11, 4096  ;;  %p3658_p11 = scmp.lt.s32.totalorder %s21_s11, %s21_s11 }
  0x1a   :  { %p3654_p10 = scmp.ne.s32.totalorder %s21_s11, %s3653_s15  ;;  %p3659_p12 = scmp.lt.s32.totalorder %s3653_s15, %s3653_s15 }
  0x1c   :  { %p3660_p13 = por %p3659_p12, %p3658_p11 }
  0x1e   :  { %p3661_p0 = pnand %p3660_p13, %p3654_p10 }
  0x20   :  { %3664 = shalt.err (!%p3661_p0)
}
  0x21   :  { %s3716_s1 = smov 512   ;;  %s3717_s16 = smov 32  }
  0x22   :  { %26 = dma.hbm_to_vmem [thread:$0]  %s4049_s0, 4096, %s21_s11, [#allocation3], %s3716_s1, %s3716_s1, %s3717_s16  }
  0x23   :  { %s3718_s19 = smov [#allocation6]   ;;  %s3719_s21 = smov [#allocation9]  }
  0x24   :  { %s45_s20 = sshll.u32 %s3718_s19, 4  ;;  %s68_s22 = sshll.u32 %s3719_s21, 4  ;;  %s46_s20 = int_to_ptr.vmem [resolvable:$true] %s45_s20  ;;  %s69_s22 = int_to_ptr.vmem [resolvable:$true] %s68_s22 }
  0x25   :  { %s3673_s3 = scalar_lea.vmem %s46_s20, 64  ;;  %p3678_p2 = scmp.lt.s32.totalorder %s46_s20, %s46_s20 }
  0x26   :  { %p3674_p1 = scmp.ne.s32.totalorder %s46_s20, %s3673_s3  ;;  %p3679_p3 = scmp.lt.s32.totalorder %s3673_s3, %s3673_s3 }
  0x28   :  { %p3680_p4 = por %p3679_p3, %p3678_p2 }
  0x2a   :  { %p3681_p5 = pnand %p3680_p4, %p3674_p1 }
  0x2c   :  { %3684 = shalt.err (!%p3681_p5)
}
  0x2d   :  { %48 = dma.hbm_to_vmem [thread:$0]  %s4051_s2, 64, %s46_s20, [#allocation5]  }
  0x2e   :  { %s3693_s25 = scalar_lea.vmem %s69_s22, 4096  ;;  %p3698_p7 = scmp.lt.s32.totalorder %s69_s22, %s69_s22 }
  0x2f   :  { %p3694_p6 = scmp.ne.s32.totalorder %s69_s22, %s3693_s25  ;;  %p3699_p8 = scmp.lt.s32.totalorder %s3693_s25, %s3693_s25 }
  0x31   :  { %p3700_p9 = por %p3699_p8, %p3698_p7 }
  0x33   :  { %p3701_p10 = pnand %p3700_p9, %p3694_p6 }
  0x35   :  { %3704 = shalt.err (!%p3701_p10)
}
  0x36   :  { %s3720_s0 = smov 64   ;;  %s3721_s26 = smov 4  }
  0x37   :  { %74 = dma.hbm_to_vmem [thread:$0]  %s4054_s5, 4096, %s69_s22, [#allocation8], %s3720_s0, %s3720_s0, %s3721_s26  }
  0x38   :  { %3705 = dma.done.wait [#allocation3], 4096  }
  0x39   :  { %3706 = vsyncadd [#allocation3], 4294963200 }
  0x3a   :  { %3707 = dma.done.wait [#allocation5], 16448  }
  0x3b   :  { %3708 = vsyncadd [#allocation5], 4294950848 }
  0x3c   :  { %3709 = dma.done.wait [#allocation8], 20480  }
  0x3d   :  { %3710 = vsyncadd [#allocation8], 4294946816  ;;  %v3189_v0 = vld [vmem:[#allocation4 + $0xe4] ss:$16 sps:$4 sm:$0xff]   ;;  %v3193_v2 = vld [vmem:[#allocation4 + $0xe0] ss:$16 sps:$4 sm:$0xff]  }
  0x3e   :  { %v3191_v1 = vld [vmem:[#allocation4 + $0x2e4] ss:$16 sps:$4 sm:$0xff]   ;;  %931 = vmatprep.subr.bf16.mxu0 %v3189_v0  ;;  %v3194_v3 = vld [vmem:[#allocation4 + $0x2e0] ss:$16 sps:$4 sm:$0xff]   ;;  %v94_v46 = vld [vmem:[#allocation2 + $0x8] sm:$0xff] }
  0x3f   :  { %1004 = vmatprep.subr.bf16.mxu1 %v3191_v1  ;;  %v3195_v4 = vld [vmem:[#allocation4 + $0xc4] ss:$16 sps:$4 sm:$0xff]   ;;  %932 = vmatpush1.bf16.msra.mxu0 %v3193_v2  ;;  %v3199_v6 = vld [vmem:[#allocation4 + $0xc0] ss:$16 sps:$4 sm:$0xff]   ;;  %v98_v47 = vld [vmem:[#allocation2 + $0x28] sm:$0xff] }
  0x40   :  { %1005 = vmatpush1.bf16.msra.mxu1 %v3194_v3  ;;  %v3197_v5 = vld [vmem:[#allocation4 + $0x2c4] ss:$16 sps:$4 sm:$0xff]   ;;  %933 = vmatprep.subr.bf16.mxu0 %v3195_v4  ;;  %v3200_v7 = vld [vmem:[#allocation4 + $0x2c0] ss:$16 sps:$4 sm:$0xff]   ;;  %v96_v48 = vld [vmem:[#allocation2 + $0x18] sm:$0xff]  ;;  %v3777_v53 = vpack.c.bf16 %v98_v47, %v94_v46 }
  0x41   :  { %1006 = vmatprep.subr.bf16.mxu1 %v3197_v5  ;;  %v3201_v8 = vld [vmem:[#allocation4 + $0xa4] ss:$16 sps:$4 sm:$0xff]   ;;  %v3205_v10 = vld [vmem:[#allocation4 + $0xa0] ss:$16 sps:$4 sm:$0xff]   ;;  %v100_v49 = vld [vmem:[#allocation2 + $0x38] sm:$0xff] }
  0x42   :  { %v3203_v9 = vld [vmem:[#allocation4 + $0x2a4] ss:$16 sps:$4 sm:$0xff]   ;;  %v3206_v11 = vld [vmem:[#allocation4 + $0x2a0] ss:$16 sps:$4 sm:$0xff]   ;;  %v3779_v54 = vpack.c.bf16 %v100_v49, %v96_v48  ;;  %963 = vmatprep.mubr.bf16.mxu0 %v3777_v53  ;;  %v3311_v48 = vld [vmem:[#allocation4 + $0x6c] ss:$16 sps:$4 sm:$0xff]  }
  0x43   :  { %934 = vmatpush1.bf16.msra.mxu0 %v3199_v6  ;;  %v3207_v12 = vld [vmem:[#allocation4 + $0x84] ss:$16 sps:$4 sm:$0xff]   ;;  %v3211_v14 = vld [vmem:[#allocation4 + $0x80] ss:$16 sps:$4 sm:$0xff]  }
  0x44   :  { %1007 = vmatpush1.bf16.msra.mxu1 %v3200_v7  ;;  %935 = vmatprep.subr.bf16.mxu0 %v3201_v8  ;;  %v3209_v13 = vld [vmem:[#allocation4 + $0x284] ss:$16 sps:$4 sm:$0xff]   ;;  %v3212_v15 = vld [vmem:[#allocation4 + $0x280] ss:$16 sps:$4 sm:$0xff]  }
  0x45   :  { %1008 = vmatprep.subr.bf16.mxu1 %v3203_v9  ;;  %v3213_v16 = vld [vmem:[#allocation4 + $0x64] ss:$16 sps:$4 sm:$0xff]   ;;  %v3217_v18 = vld [vmem:[#allocation4 + $0x60] ss:$16 sps:$4 sm:$0xff]   ;;  %1036 = vmatprep.mubr.bf16.mxu1 %v3779_v54 }
  0x46   :  { %v3215_v17 = vld [vmem:[#allocation4 + $0x264] ss:$16 sps:$4 sm:$0xff]   ;;  %v3218_v19 = vld [vmem:[#allocation4 + $0x260] ss:$16 sps:$4 sm:$0xff]  }
  0x47   :  { %936 = vmatpush1.bf16.msra.mxu0 %v3205_v10  ;;  %v3219_v20 = vld [vmem:[#allocation4 + $0x44] ss:$16 sps:$4 sm:$0xff]   ;;  %v3223_v22 = vld [vmem:[#allocation4 + $0x40] ss:$16 sps:$4 sm:$0xff]   ;;  %v3287_v10 = vld [vmem:[#allocation4 + $0xec] ss:$16 sps:$4 sm:$0xff]  }
  0x48   :  { %1009 = vmatpush1.bf16.msra.mxu1 %v3206_v11  ;;  %937 = vmatprep.subr.bf16.mxu0 %v3207_v12  ;;  %v3221_v21 = vld [vmem:[#allocation4 + $0x244] ss:$16 sps:$4 sm:$0xff]   ;;  %v3224_v23 = vld [vmem:[#allocation4 + $0x240] ss:$16 sps:$4 sm:$0xff]   ;;  %v3290_v11 = vld [vmem:[#allocation4 + $0x2ec] ss:$16 sps:$4 sm:$0xff]  }
  0x49   :  { %1010 = vmatprep.subr.bf16.mxu1 %v3209_v13  ;;  %v3225_v24 = vld [vmem:[#allocation4 + $0x24] ss:$16 sps:$4 sm:$0xff]   ;;  %v3229_v26 = vld [vmem:[#allocation4 + $0x20] ss:$16 sps:$4 sm:$0xff]   ;;  %v3285_v12 = vld [vmem:[#allocation4 + $0xe8] ss:$16 sps:$4 sm:$0xff]  }
  0x4a   :  { %v3227_v25 = vld [vmem:[#allocation4 + $0x224] ss:$16 sps:$4 sm:$0xff]   ;;  %v3230_v27 = vld [vmem:[#allocation4 + $0x220] ss:$16 sps:$4 sm:$0xff]   ;;  %v3288_v13 = vld [vmem:[#allocation4 + $0x2e8] ss:$16 sps:$4 sm:$0xff]  }
  0x4b   :  { %938 = vmatpush1.bf16.msra.mxu0 %v3211_v14  ;;  %v3231_v28 = vld [vmem:[#allocation4 + $0x4] ss:$16 sps:$4 sm:$0xff]   ;;  %v3235_v30 = vld [vmem:[#allocation4] ss:$16 sps:$4 sm:$0xff]   ;;  %v102_v14 = vld [vmem:[#allocation2 + $0x48] sm:$0xff] }
  0x4c   :  { %1011 = vmatpush1.bf16.msra.mxu1 %v3212_v15  ;;  %939 = vmatprep.subr.bf16.mxu0 %v3213_v16  ;;  %v3233_v29 = vld [vmem:[#allocation4 + $0x204] ss:$16 sps:$4 sm:$0xff]   ;;  %v3236_v31 = vld [vmem:[#allocation4 + $0x200] ss:$16 sps:$4 sm:$0xff]  }
  0x4d   :  { %1012 = vmatprep.subr.bf16.mxu1 %v3215_v17  ;;  %v3237_v32 = vld [vmem:[#allocation4 + $0x1e4] ss:$16 sps:$4 sm:$0xff]   ;;  %v3241_v34 = vld [vmem:[#allocation4 + $0x1e0] ss:$16 sps:$4 sm:$0xff]   ;;  %v106_v17 = vld [vmem:[#allocation2 + $0x68] sm:$0xff] }
  0x4e   :  { %v3239_v33 = vld [vmem:[#allocation4 + $0x3e4] ss:$16 sps:$4 sm:$0xff]   ;;  %v3242_v35 = vld [vmem:[#allocation4 + $0x3e0] ss:$16 sps:$4 sm:$0xff]  }
  0x4f   :  { %940 = vmatpush1.bf16.msra.mxu0 %v3217_v18  ;;  %v3243_v36 = vld [vmem:[#allocation4 + $0x1c4] ss:$16 sps:$4 sm:$0xff]   ;;  %v3247_v38 = vld [vmem:[#allocation4 + $0x1c0] ss:$16 sps:$4 sm:$0xff]   ;;  %v104_v18 = vld [vmem:[#allocation2 + $0x58] sm:$0xff] }
  0x50   :  { %1013 = vmatpush1.bf16.msra.mxu1 %v3218_v19  ;;  %941 = vmatprep.subr.bf16.mxu0 %v3219_v20  ;;  %v3245_v37 = vld [vmem:[#allocation4 + $0x3c4] ss:$16 sps:$4 sm:$0xff]   ;;  %v3248_v39 = vld [vmem:[#allocation4 + $0x3c0] ss:$16 sps:$4 sm:$0xff]   ;;  %v108_v19 = vld [vmem:[#allocation2 + $0x78] sm:$0xff] }
  0x51   :  { %1014 = vmatprep.subr.bf16.mxu1 %v3221_v21  ;;  %v3249_v40 = vld [vmem:[#allocation4 + $0x1a4] ss:$16 sps:$4 sm:$0xff]   ;;  %v3253_v42 = vld [vmem:[#allocation4 + $0x1a0] ss:$16 sps:$4 sm:$0xff]   ;;  %v3293_v20 = vld [vmem:[#allocation4 + $0xcc] ss:$16 sps:$4 sm:$0xff]  }
  0x52   :  { %v3251_v41 = vld [vmem:[#allocation4 + $0x3a4] ss:$16 sps:$4 sm:$0xff]   ;;  %v3254_v43 = vld [vmem:[#allocation4 + $0x3a0] ss:$16 sps:$4 sm:$0xff]   ;;  %v3296_v21 = vld [vmem:[#allocation4 + $0x2cc] ss:$16 sps:$4 sm:$0xff]  }
  0x53   :  { %942 = vmatpush1.bf16.msra.mxu0 %v3223_v22  ;;  %v3255_v44 = vld [vmem:[#allocation4 + $0x184] ss:$16 sps:$4 sm:$0xff]   ;;  %v3259_v50 = vld [vmem:[#allocation4 + $0x180] ss:$16 sps:$4 sm:$0xff]   ;;  %v3291_v22 = vld [vmem:[#allocation4 + $0xc8] ss:$16 sps:$4 sm:$0xff]  }
  0x54   :  { %1015 = vmatpush1.bf16.msra.mxu1 %v3224_v23  ;;  %943 = vmatprep.subr.bf16.mxu0 %v3225_v24  ;;  %v3257_v45 = vld [vmem:[#allocation4 + $0x384] ss:$16 sps:$4 sm:$0xff]   ;;  %v3260_v51 = vld [vmem:[#allocation4 + $0x380] ss:$16 sps:$4 sm:$0xff]   ;;  %v3294_v23 = vld [vmem:[#allocation4 + $0x2c8] ss:$16 sps:$4 sm:$0xff]   ;;  %v3787_v24 = vpack.c.bf16 %v106_v17, %v102_v14 }
  0x55   :  { %1016 = vmatprep.subr.bf16.mxu1 %v3227_v25  ;;  %v3261_v52 = vld [vmem:[#allocation4 + $0x164] ss:$16 sps:$4 sm:$0xff]   ;;  %v3265_v56 = vld [vmem:[#allocation4 + $0x160] ss:$16 sps:$4 sm:$0xff]   ;;  %v3329_v14 = vld [vmem:[#allocation4 + $0xc] ss:$16 sps:$4 sm:$0xff]  }
  0x56   :  { %v3263_v55 = vld [vmem:[#allocation4 + $0x364] ss:$16 sps:$4 sm:$0xff]   ;;  %v3266_v57 = vld [vmem:[#allocation4 + $0x360] ss:$16 sps:$4 sm:$0xff]   ;;  %v3332_v17 = vld [vmem:[#allocation4 + $0x20c] ss:$16 sps:$4 sm:$0xff]  }
  0x57   :  { %944 = vmatpush1.bf16.msra.mxu0 %v3229_v26  ;;  %v3267_v58 = vld [vmem:[#allocation4 + $0x144] ss:$16 sps:$4 sm:$0xff]   ;;  %v3271_v60 = vld [vmem:[#allocation4 + $0x140] ss:$16 sps:$4 sm:$0xff]   ;;  %v3789_v26 = vpack.c.bf16 %v108_v19, %v104_v18  ;;  %v3327_v18 = vld [vmem:[#allocation4 + $0x8] ss:$16 sps:$4 sm:$0xff]  }
  0x58   :  { %1017 = vmatpush1.bf16.msra.mxu1 %v3230_v27  ;;  %945 = vmatprep.subr.bf16.mxu0 %v3231_v28  ;;  %v3269_v59 = vld [vmem:[#allocation4 + $0x344] ss:$16 sps:$4 sm:$0xff]   ;;  %v3272_v61 = vld [vmem:[#allocation4 + $0x340] ss:$16 sps:$4 sm:$0xff]   ;;  %v3299_v28 = vld [vmem:[#allocation4 + $0xac] ss:$16 sps:$4 sm:$0xff]  }
  0x59   :  { %1018 = vmatprep.subr.bf16.mxu1 %v3233_v29  ;;  %v3273_v62 = vld [vmem:[#allocation4 + $0x124] ss:$16 sps:$4 sm:$0xff]   ;;  %v3277_v0 = vld [vmem:[#allocation4 + $0x120] ss:$16 sps:$4 sm:$0xff]   ;;  %v3330_v19 = vld [vmem:[#allocation4 + $0x208] ss:$16 sps:$4 sm:$0xff]  }
  0x5a   :  { %v3275_v63 = vld [vmem:[#allocation4 + $0x324] ss:$16 sps:$4 sm:$0xff]   ;;  %v3278_v1 = vld [vmem:[#allocation4 + $0x320] ss:$16 sps:$4 sm:$0xff]  }
  0x5b   :  { %946 = vmatpush1.bf16.msra.mxu0 %v3235_v30  ;;  %v3279_v2 = vld [vmem:[#allocation4 + $0x104] ss:$16 sps:$4 sm:$0xff]   ;;  %v3283_v4 = vld [vmem:[#allocation4 + $0x100] ss:$16 sps:$4 sm:$0xff]  }
  0x5c   :  { %1019 = vmatpush1.bf16.msra.mxu1 %v3236_v31  ;;  %947 = vmatprep.subr.bf16.mxu0 %v3237_v32  ;;  %v3281_v3 = vld [vmem:[#allocation4 + $0x304] ss:$16 sps:$4 sm:$0xff]   ;;  %v3284_v5 = vld [vmem:[#allocation4 + $0x300] ss:$16 sps:$4 sm:$0xff]   ;;  %v3302_v31 = vld [vmem:[#allocation4 + $0x2ac] ss:$16 sps:$4 sm:$0xff]  }
  0x5d   :  { %1020 = vmatprep.subr.bf16.mxu1 %v3239_v33  ;;  %v93_v6 = vld [vmem:[#allocation2] sm:$0xff]  ;;  %v95_v8 = vld [vmem:[#allocation2 + $0x10] sm:$0xff]  ;;  %v3297_v32 = vld [vmem:[#allocation4 + $0xa8] ss:$16 sps:$4 sm:$0xff]  }
  0x5e   :  { %v97_v7 = vld [vmem:[#allocation2 + $0x20] sm:$0xff]  ;;  %v99_v9 = vld [vmem:[#allocation2 + $0x30] sm:$0xff]  ;;  %v3300_v33 = vld [vmem:[#allocation4 + $0x2a8] ss:$16 sps:$4 sm:$0xff]  }
  0x5f   :  { %948 = vmatpush2.bf16.msra.mxu0 %v3241_v34  ;;  %v3783_v15 = vpack.c.bf16 %v97_v7, %v93_v6  ;;  %v3785_v16 = vpack.c.bf16 %v99_v9, %v95_v8  ;;  %v101_v25 = vld [vmem:[#allocation2 + $0x40] sm:$0xff]  ;;  %v103_v29 = vld [vmem:[#allocation2 + $0x50] sm:$0xff]  ;;  %v110_v34 = vld [vmem:[#allocation2 + $0x88] sm:$0xff] }
  0x60   :  { %1021 = vmatpush2.bf16.msra.mxu1 %v3242_v35  ;;  %949 = vmatprep.subr.bf16.mxu0 %v3243_v36  ;;  %v105_v27 = vld [vmem:[#allocation2 + $0x60] sm:$0xff]  ;;  %v107_v30 = vld [vmem:[#allocation2 + $0x70] sm:$0xff]  ;;  %v3323_v6 = vld [vmem:[#allocation4 + $0x2c] ss:$16 sps:$4 sm:$0xff]  }
  0x61   :  { %1022 = vmatprep.subr.bf16.mxu1 %v3245_v37  ;;  %v3795_v35 = vpack.c.bf16 %v105_v27, %v101_v25  ;;  %v3797_v36 = vpack.c.bf16 %v107_v30, %v103_v29  ;;  %v114_v37 = vld [vmem:[#allocation2 + $0xa8] sm:$0xff]  ;;  %v113_v46 = vld [vmem:[#allocation2 + $0xa0] sm:$0xff]  ;;  %v111_v49 = vld [vmem:[#allocation2 + $0x90] sm:$0xff] }
  0x62   :  { %v119_v7 = vld [vmem:[#allocation2 + $0xd0] sm:$0xff]  ;;  %v3326_v9 = vld [vmem:[#allocation4 + $0x22c] ss:$16 sps:$4 sm:$0xff]   ;;  %v3342_v29 = vld [vmem:[#allocation4 + $0x3c8] ss:$16 sps:$4 sm:$0xff]  }
  0x63   :  { %950 = vmatpush2.bf16.msra.mxu0 %v3247_v38  ;;  %v112_v38 = vld [vmem:[#allocation2 + $0x98] sm:$0xff]  ;;  %v123_v8 = vld [vmem:[#allocation2 + $0xf0] sm:$0xff] }
  0x64   :  { %1023 = vmatpush2.bf16.msra.mxu1 %v3248_v39  ;;  %951 = vmatprep.subr.bf16.mxu0 %v3249_v40  ;;  %v116_v39 = vld [vmem:[#allocation2 + $0xb8] sm:$0xff] }
  0x65   :  { %1024 = vmatprep.subr.bf16.mxu1 %v3251_v41  ;;  %v3305_v40 = vld [vmem:[#allocation4 + $0x8c] ss:$16 sps:$4 sm:$0xff]   ;;  %v3801_v47 = vpack.c.bf16 %v116_v39, %v112_v38 }
  0x66   :  { %v3308_v41 = vld [vmem:[#allocation4 + $0x28c] ss:$16 sps:$4 sm:$0xff]  }
  0x67   :  { %952 = vmatpush2.bf16.msra.mxu0 %v3253_v42  ;;  %v3303_v42 = vld [vmem:[#allocation4 + $0x88] ss:$16 sps:$4 sm:$0xff]   ;;  %v3341_v25 = vld [vmem:[#allocation4 + $0x1cc] ss:$16 sps:$4 sm:$0xff]  }
  0x68   :  { %1025 = vmatpush2.bf16.msra.mxu1 %v3254_v43  ;;  %953 = vmatprep.subr.bf16.mxu0 %v3255_v44  ;;  %v3306_v43 = vld [vmem:[#allocation4 + $0x288] ss:$16 sps:$4 sm:$0xff]   ;;  %v3799_v44 = vpack.c.bf16 %v114_v37, %v110_v34  ;;  %v3344_v27 = vld [vmem:[#allocation4 + $0x3cc] ss:$16 sps:$4 sm:$0xff]  }
  0x69   :  { %1026 = vmatprep.subr.bf16.mxu1 %v3257_v45  ;;  %v109_v45 = vld [vmem:[#allocation2 + $0x80] sm:$0xff]  ;;  %v3347_v30 = vld [vmem:[#allocation4 + $0x1ac] ss:$16 sps:$4 sm:$0xff]   ;;  %v3351_v34 = vld [vmem:[#allocation4 + $0x188] ss:$16 sps:$4 sm:$0xff]  }
  0x6a   :  { %v3354_v37 = vld [vmem:[#allocation4 + $0x388] ss:$16 sps:$4 sm:$0xff]   ;;  %v3359_v38 = vld [vmem:[#allocation4 + $0x16c] ss:$16 sps:$4 sm:$0xff]  }
  0x6b   :  { %954 = vmatpush2.bf16.msra.mxu0 %v3259_v50  ;;  %v115_v50 = vld [vmem:[#allocation2 + $0xb0] sm:$0xff]  ;;  %v3362_v39 = vld [vmem:[#allocation4 + $0x36c] ss:$16 sps:$4 sm:$0xff]  }
  0x6c   :  { %1027 = vmatpush2.bf16.msra.mxu1 %v3260_v51  ;;  %955 = vmatprep.subr.bf16.mxu0 %v3261_v52  ;;  %v3314_v51 = vld [vmem:[#allocation4 + $0x26c] ss:$16 sps:$4 sm:$0xff]   ;;  %v3309_v52 = vld [vmem:[#allocation4 + $0x68] ss:$16 sps:$4 sm:$0xff]  }
  0x6d   :  { %1028 = vmatprep.subr.bf16.mxu1 %v3263_v55  ;;  %v3312_v55 = vld [vmem:[#allocation4 + $0x268] ss:$16 sps:$4 sm:$0xff]  }
  0x6f   :  { %956 = vmatpush2.bf16.msra.mxu0 %v3265_v56  ;;  %v118_v56 = vld [vmem:[#allocation2 + $0xc8] sm:$0xff] }
  0x70   :  { %1029 = vmatpush2.bf16.msra.mxu1 %v3266_v57  ;;  %957 = vmatprep.subr.bf16.mxu0 %v3267_v58  ;;  %v122_v57 = vld [vmem:[#allocation2 + $0xe8] sm:$0xff]  ;;  %v3807_v58 = vpack.c.bf16 %v113_v46, %v109_v45 }
  0x71   :  { %1030 = vmatprep.subr.bf16.mxu1 %v3269_v59  ;;  %v3809_v59 = vpack.c.bf16 %v115_v50, %v111_v49  ;;  %v3363_v45 = vld [vmem:[#allocation4 + $0x148] ss:$16 sps:$4 sm:$0xff]   ;;  %v3374_v49 = vld [vmem:[#allocation4 + $0x32c] ss:$16 sps:$4 sm:$0xff]  }
  0x72   :  { %v3366_v46 = vld [vmem:[#allocation4 + $0x348] ss:$16 sps:$4 sm:$0xff]  }
  0x73   :  { %958 = vmatpush2.bf16.msra.mxu0 %v3271_v60  ;;  %v120_v60 = vld [vmem:[#allocation2 + $0xd8] sm:$0xff] }
  0x74   :  { %1031 = vmatpush2.bf16.msra.mxu1 %v3272_v61  ;;  %959 = vmatprep.subr.bf16.mxu0 %v3273_v62  ;;  %v124_v61 = vld [vmem:[#allocation2 + $0xf8] sm:$0xff] }
  0x75   :  { %1032 = vmatprep.subr.bf16.mxu1 %v3275_v63  ;;  %v3317_v62 = vld [vmem:[#allocation4 + $0x4c] ss:$16 sps:$4 sm:$0xff]   ;;  %v3369_v50 = vld [vmem:[#allocation4 + $0x128] ss:$16 sps:$4 sm:$0xff]  }
  0x76   :  { %v3320_v63 = vld [vmem:[#allocation4 + $0x24c] ss:$16 sps:$4 sm:$0xff]  }
  0x77   :  { %960 = vmatpush2.bf16.msra.mxu0 %v3277_v0  ;;  %v3315_v0 = vld [vmem:[#allocation4 + $0x48] ss:$16 sps:$4 sm:$0xff]  }
  0x78   :  { %1033 = vmatpush2.bf16.msra.mxu1 %v3278_v1  ;;  %961 = vmatprep.subr.bf16.mxu0 %v3279_v2  ;;  %v3318_v1 = vld [vmem:[#allocation4 + $0x248] ss:$16 sps:$4 sm:$0xff]   ;;  %v3811_v2 = vpack.c.bf16 %v122_v57, %v118_v56 }
  0x79   :  { %1034 = vmatprep.subr.bf16.mxu1 %v3281_v3  ;;  %v117_v3 = vld [vmem:[#allocation2 + $0xc0] sm:$0xff]  ;;  %v3375_v56 = vld [vmem:[#allocation4 + $0x108] ss:$16 sps:$4 sm:$0xff]  }
  0x7a   :  { %v3378_v57 = vld [vmem:[#allocation4 + $0x308] ss:$16 sps:$4 sm:$0xff]  }
  0x7b   :  { %962 = vmatpush2.bf16.msra.mxu0 %v3283_v4  ;;  %v121_v4 = vld [vmem:[#allocation2 + $0xe0] sm:$0xff] }
  0x7c   :  { %1035 = vmatpush2.bf16.msra.mxu1 %v3284_v5  ;;  %1077 = vmatprep.subr.bf16.mxu0 %v3287_v10  ;;  %v3813_v5 = vpack.c.bf16 %v124_v61, %v120_v60  ;;  %v3819_v10 = vpack.c.bf16 %v121_v4, %v117_v3  ;;  %v3383_v60 = vld [vmem:[#allocation7 + $0xe4] ss:$16 sps:$4 sm:$0xff]   ;;  %v3381_v61 = vld [vmem:[#allocation7 + $0xe0] ss:$16 sps:$4 sm:$0xff]  }
  0x7d   :  { %1150 = vmatprep.subr.bf16.mxu1 %v3290_v11  ;;  %v3321_v11 = vld [vmem:[#allocation4 + $0x28] ss:$16 sps:$4 sm:$0xff]  }
  0x7e   :  { %964 = vmatmul.mubr.bf16.vlgmr.msra.gmra.mxu0 %v3783_v15  ;;  %v3392_v3 = vld [vmem:[#allocation7 + $0x84] ss:$16 sps:$4 sm:$0xff]  }
  0x7f   :  { %1037 = vmatmul.mubr.bf16.vlgmr.msra.gmra.mxu1 %v3785_v16  ;;  %1078 = vmatpush1.bf16.msra.mxu0 %v3285_v12  ;;  %v3324_v12 = vld [vmem:[#allocation4 + $0x228] ss:$16 sps:$4 sm:$0xff]  }
  0x80   :  { %1151 = vmatpush1.bf16.msra.mxu1 %v3288_v13  ;;  %1079 = vmatprep.subr.bf16.mxu0 %v3293_v20  ;;  %v3821_v13 = vpack.c.bf16 %v123_v8, %v119_v7  ;;  %v3335_v20 = vld [vmem:[#allocation4 + $0x1ec] ss:$16 sps:$4 sm:$0xff]   ;;  %v3398_v4 = vld [vmem:[#allocation7 + $0x44] ss:$16 sps:$4 sm:$0xff]   ;;  %v3399_v7 = vld [vmem:[#allocation7 + $0x20] ss:$16 sps:$4 sm:$0xff]  }
  0x81   :  { %1152 = vmatprep.subr.bf16.mxu1 %v3296_v21  ;;  %973 = vmatprep.mubr.bf16.mxu0 %v3787_v24  ;;  %v3338_v21 = vld [vmem:[#allocation4 + $0x3ec] ss:$16 sps:$4 sm:$0xff]   ;;  %v3443_v8 = vld [vmem:[#allocation7 + $0x2a4] ss:$16 sps:$4 sm:$0xff]  }
  0x82   :  { %1046 = vmatprep.mubr.bf16.mxu1 %v3789_v26 }
  0x83   :  { %1080 = vmatpush1.bf16.msra.mxu0 %v3291_v22  ;;  %v3333_v22 = vld [vmem:[#allocation4 + $0x1e8] ss:$16 sps:$4 sm:$0xff]  }
  0x84   :  { %1153 = vmatpush1.bf16.msra.mxu1 %v3294_v23  ;;  %1081 = vmatprep.subr.bf16.mxu0 %v3299_v28  ;;  %v3336_v23 = vld [vmem:[#allocation4 + $0x3e8] ss:$16 sps:$4 sm:$0xff]  }
  0x85   :  { %1154 = vmatprep.subr.bf16.mxu1 %v3302_v31  ;;  %v3339_v28 = vld [vmem:[#allocation4 + $0x1c8] ss:$16 sps:$4 sm:$0xff]   ;;  %v3350_v31 = vld [vmem:[#allocation4 + $0x3ac] ss:$16 sps:$4 sm:$0xff]  }
  0x86   :  { %974 = vmatmul.mubr.bf16.gmra.mxu0 %v3795_v35 }
  0x87   :  { %1047 = vmatmul.mubr.bf16.gmra.mxu1 %v3797_v36  ;;  %1082 = vmatpush1.bf16.msra.mxu0 %v3297_v32  ;;  %v3345_v32 = vld [vmem:[#allocation4 + $0x1a8] ss:$16 sps:$4 sm:$0xff]  }
  0x88   :  { %1155 = vmatpush1.bf16.msra.mxu1 %v3300_v33  ;;  %1083 = vmatprep.subr.bf16.mxu0 %v3305_v40  ;;  %v3356_v33 = vld [vmem:[#allocation4 + $0x38c] ss:$16 sps:$4 sm:$0xff]   ;;  %v3357_v40 = vld [vmem:[#allocation4 + $0x168] ss:$16 sps:$4 sm:$0xff]  }
  0x89   :  { %1156 = vmatprep.subr.bf16.mxu1 %v3308_v41  ;;  %983 = vmatprep.mubr.bf16.mxu0 %v3799_v44  ;;  %v3360_v41 = vld [vmem:[#allocation4 + $0x368] ss:$16 sps:$4 sm:$0xff]  }
  0x8a   :  { %1056 = vmatprep.mubr.bf16.mxu1 %v3801_v47 }
  0x8b   :  { %1084 = vmatpush1.bf16.msra.mxu0 %v3303_v42  ;;  %v3365_v42 = vld [vmem:[#allocation4 + $0x14c] ss:$16 sps:$4 sm:$0xff]  }
  0x8c   :  { %1157 = vmatpush1.bf16.msra.mxu1 %v3306_v43  ;;  %1085 = vmatprep.subr.bf16.mxu0 %v3311_v48  ;;  %v3368_v43 = vld [vmem:[#allocation4 + $0x34c] ss:$16 sps:$4 sm:$0xff]  }
  0x8d   :  { %1158 = vmatprep.subr.bf16.mxu1 %v3314_v51  ;;  %v3371_v48 = vld [vmem:[#allocation4 + $0x12c] ss:$16 sps:$4 sm:$0xff]   ;;  %v3372_v51 = vld [vmem:[#allocation4 + $0x328] ss:$16 sps:$4 sm:$0xff]  }
  0x8e   :  { %984 = vmatmul.mubr.bf16.gmra.mxu0 %v3807_v58 }
  0x8f   :  { %1057 = vmatmul.mubr.bf16.gmra.mxu1 %v3809_v59  ;;  %1086 = vmatpush1.bf16.msra.mxu0 %v3309_v52  ;;  %v3377_v52 = vld [vmem:[#allocation4 + $0x10c] ss:$16 sps:$4 sm:$0xff]  }
  0x90   :  { %1159 = vmatpush1.bf16.msra.mxu1 %v3312_v55  ;;  %1087 = vmatprep.subr.bf16.mxu0 %v3317_v62  ;;  %v3380_v55 = vld [vmem:[#allocation4 + $0x30c] ss:$16 sps:$4 sm:$0xff]   ;;  %v3386_v62 = vld [vmem:[#allocation7 + $0xc4] ss:$16 sps:$4 sm:$0xff]  }
  0x91   :  { %1160 = vmatprep.subr.bf16.mxu1 %v3320_v63  ;;  %993 = vmatprep.mubr.bf16.mxu0 %v3811_v2  ;;  %v3384_v63 = vld [vmem:[#allocation7 + $0xc0] ss:$16 sps:$4 sm:$0xff]  }
  0x92   :  { %1066 = vmatprep.mubr.bf16.mxu1 %v3813_v5 }
  0x93   :  { %1088 = vmatpush1.bf16.msra.mxu0 %v3315_v0  ;;  %v3389_v0 = vld [vmem:[#allocation7 + $0xa4] ss:$16 sps:$4 sm:$0xff]  }
  0x94   :  { %1161 = vmatpush1.bf16.msra.mxu1 %v3318_v1  ;;  %1089 = vmatprep.subr.bf16.mxu0 %v3323_v6  ;;  %v3387_v1 = vld [vmem:[#allocation7 + $0xa0] ss:$16 sps:$4 sm:$0xff]  }
  0x95   :  { %1162 = vmatprep.subr.bf16.mxu1 %v3326_v9  ;;  %v3429_v6 = vld [vmem:[#allocation7 + $0x2e0] ss:$16 sps:$4 sm:$0xff]  }
  0x96   :  { %994 = vmatmul.mubr.bf16.gmra.mxu0 %v3819_v10  ;;  %v3441_v9 = vld [vmem:[#allocation7 + $0x2a0] ss:$16 sps:$4 sm:$0xff]  }
  0x97   :  { %1067 = vmatmul.mubr.bf16.gmra.mxu1 %v3821_v13  ;;  %1090 = vmatpush1.bf16.msra.mxu0 %v3321_v11  ;;  %v3447_v11 = vld [vmem:[#allocation7 + $0x280] ss:$16 sps:$4 sm:$0xff]  }
  0x98   :  { %1163 = vmatpush1.bf16.msra.mxu1 %v3324_v12  ;;  %1091 = vmatprep.subr.bf16.mxu0 %v3329_v14  ;;  %v3405_v12 = vld [vmem:[#allocation7 + $0x1e0] ss:$16 sps:$4 sm:$0xff]   ;;  %v3455_v14 = vld [vmem:[#allocation7 + $0x264] ss:$16 sps:$4 sm:$0xff]  }
  0x99   :  { %1164 = vmatprep.subr.bf16.mxu1 %v3332_v17  ;;  %1109 = vmatprep.mubr.bf16.mxu0 %v3777_v53  ;;  %v3348_v53 = vld [vmem:[#allocation4 + $0x3a8] ss:$16 sps:$4 sm:$0xff]  }
  0x9a   :  { %1182 = vmatprep.mubr.bf16.mxu1 %v3779_v54  ;;  %v3353_v54 = vld [vmem:[#allocation4 + $0x18c] ss:$16 sps:$4 sm:$0xff]   ;;  %v3410_v17 = vld [vmem:[#allocation7 + $0x1c4] ss:$16 sps:$4 sm:$0xff]  }
  0x9b   :  { %1092 = vmatpush1.bf16.msra.mxu0 %v3327_v18  ;;  %v3453_v18 = vld [vmem:[#allocation7 + $0x260] ss:$16 sps:$4 sm:$0xff]  }
  0x9c   :  { %1165 = vmatpush1.bf16.msra.mxu1 %v3330_v19  ;;  %1093 = vmatprep.subr.bf16.mxu0 %v3335_v20  ;;  %v3413_v19 = vld [vmem:[#allocation7 + $0x1a4] ss:$16 sps:$4 sm:$0xff]   ;;  %v3459_v20 = vld [vmem:[#allocation7 + $0x240] ss:$16 sps:$4 sm:$0xff]  }
  0x9d   :  { %1166 = vmatprep.subr.bf16.mxu1 %v3338_v21  ;;  %v3411_v21 = vld [vmem:[#allocation7 + $0x1a0] ss:$16 sps:$4 sm:$0xff]  }
  0x9f   :  { %1094 = vmatpush2.bf16.msra.mxu0 %v3333_v22  ;;  %v3467_v22 = vld [vmem:[#allocation7 + $0x224] ss:$16 sps:$4 sm:$0xff]  }
  0xa0   :  { %1167 = vmatpush2.bf16.msra.mxu1 %v3336_v23  ;;  %1095 = vmatprep.subr.bf16.mxu0 %v3341_v25  ;;  %v3416_v23 = vld [vmem:[#allocation7 + $0x184] ss:$16 sps:$4 sm:$0xff]   ;;  %v3465_v25 = vld [vmem:[#allocation7 + $0x220] ss:$16 sps:$4 sm:$0xff]  }
  0xa1   :  { %1168 = vmatprep.subr.bf16.mxu1 %v3344_v27  ;;  %v3414_v27 = vld [vmem:[#allocation7 + $0x180] ss:$16 sps:$4 sm:$0xff]  }
  0xa3   :  { %1096 = vmatpush2.bf16.msra.mxu0 %v3339_v28  ;;  %v3419_v28 = vld [vmem:[#allocation7 + $0x164] ss:$16 sps:$4 sm:$0xff]  }
  0xa4   :  { %1169 = vmatpush2.bf16.msra.mxu1 %v3342_v29  ;;  %1097 = vmatprep.subr.bf16.mxu0 %v3347_v30  ;;  %v3473_v29 = vld [vmem:[#allocation7 + $0x204] ss:$16 sps:$4 sm:$0xff]   ;;  %v3471_v30 = vld [vmem:[#allocation7 + $0x200] ss:$16 sps:$4 sm:$0xff]  }
  0xa5   :  { %1170 = vmatprep.subr.bf16.mxu1 %v3350_v31  ;;  %v3417_v31 = vld [vmem:[#allocation7 + $0x160] ss:$16 sps:$4 sm:$0xff]  }
  0xa7   :  { %1098 = vmatpush2.bf16.msra.mxu0 %v3345_v32  ;;  %v3422_v32 = vld [vmem:[#allocation7 + $0x144] ss:$16 sps:$4 sm:$0xff]  }
  0xa8   :  { %1171 = vmatpush2.bf16.msra.mxu1 %v3348_v53  ;;  %1099 = vmatprep.subr.bf16.mxu0 %v3353_v54  ;;  %v3479_v53 = vld [vmem:[#allocation7 + $0x3e4] ss:$16 sps:$4 sm:$0xff]   ;;  %v3477_v54 = vld [vmem:[#allocation7 + $0x3e0] ss:$16 sps:$4 sm:$0xff]  }
  0xa9   :  { %1172 = vmatprep.subr.bf16.mxu1 %v3356_v33  ;;  %v3420_v33 = vld [vmem:[#allocation7 + $0x140] ss:$16 sps:$4 sm:$0xff]  }
  0xab   :  { %1100 = vmatpush2.bf16.msra.mxu0 %v3351_v34  ;;  %v3425_v34 = vld [vmem:[#allocation7 + $0x124] ss:$16 sps:$4 sm:$0xff]  }
  0xac   :  { %1173 = vmatpush2.bf16.msra.mxu1 %v3354_v37  ;;  %1101 = vmatprep.subr.bf16.mxu0 %v3359_v38  ;;  %v3485_v37 = vld [vmem:[#allocation7 + $0x3c4] ss:$16 sps:$4 sm:$0xff]   ;;  %v3483_v38 = vld [vmem:[#allocation7 + $0x3c0] ss:$16 sps:$4 sm:$0xff]  }
  0xad   :  { %1174 = vmatprep.subr.bf16.mxu1 %v3362_v39  ;;  %v3491_v39 = vld [vmem:[#allocation7 + $0x3a4] ss:$16 sps:$4 sm:$0xff]  }
  0xaf   :  { %1102 = vmatpush2.bf16.msra.mxu0 %v3357_v40  ;;  %v3423_v40 = vld [vmem:[#allocation7 + $0x120] ss:$16 sps:$4 sm:$0xff]  }
  0xb0   :  { %1175 = vmatpush2.bf16.msra.mxu1 %v3360_v41  ;;  %1103 = vmatprep.subr.bf16.mxu0 %v3365_v42  ;;  %v3489_v41 = vld [vmem:[#allocation7 + $0x3a0] ss:$16 sps:$4 sm:$0xff]   ;;  %v3428_v42 = vld [vmem:[#allocation7 + $0x104] ss:$16 sps:$4 sm:$0xff]  }
  0xb1   :  { %1176 = vmatprep.subr.bf16.mxu1 %v3368_v43  ;;  %v3497_v43 = vld [vmem:[#allocation7 + $0x384] ss:$16 sps:$4 sm:$0xff]  }
  0xb3   :  { %1104 = vmatpush2.bf16.msra.mxu0 %v3363_v45  ;;  %v3426_v45 = vld [vmem:[#allocation7 + $0x100] ss:$16 sps:$4 sm:$0xff]  }
  0xb4   :  { %1177 = vmatpush2.bf16.msra.mxu1 %v3366_v46  ;;  %1105 = vmatprep.subr.bf16.mxu0 %v3371_v48  ;;  %v3495_v46 = vld [vmem:[#allocation7 + $0x380] ss:$16 sps:$4 sm:$0xff]   ;;  %v3434_v48 = vld [vmem:[#allocation7 + $0xec] ss:$16 sps:$4 sm:$0xff]  }
  0xb5   :  { %1178 = vmatprep.subr.bf16.mxu1 %v3374_v49  ;;  %v3503_v49 = vld [vmem:[#allocation7 + $0x364] ss:$16 sps:$4 sm:$0xff]  }
  0xb7   :  { %1106 = vmatpush2.bf16.msra.mxu0 %v3369_v50  ;;  %v3501_v50 = vld [vmem:[#allocation7 + $0x360] ss:$16 sps:$4 sm:$0xff]  }
  0xb8   :  { %1179 = vmatpush2.bf16.msra.mxu1 %v3372_v51  ;;  %1107 = vmatprep.subr.bf16.mxu0 %v3377_v52  ;;  %v3509_v51 = vld [vmem:[#allocation7 + $0x344] ss:$16 sps:$4 sm:$0xff]   ;;  %v3507_v52 = vld [vmem:[#allocation7 + $0x340] ss:$16 sps:$4 sm:$0xff]  }
  0xb9   :  { %1180 = vmatprep.subr.bf16.mxu1 %v3380_v55  ;;  %v3515_v55 = vld [vmem:[#allocation7 + $0x324] ss:$16 sps:$4 sm:$0xff]  }
  0xbb   :  { %1108 = vmatpush2.bf16.msra.mxu0 %v3375_v56  ;;  %v3513_v56 = vld [vmem:[#allocation7 + $0x320] ss:$16 sps:$4 sm:$0xff]  }
  0xbc   :  { %1181 = vmatpush2.bf16.msra.mxu1 %v3378_v57  ;;  %2061 = vmatprep.subr.bf16.mxu0 %v3383_v60  ;;  %v3521_v57 = vld [vmem:[#allocation7 + $0x304] ss:$16 sps:$4 sm:$0xff]   ;;  %v3519_v60 = vld [vmem:[#allocation7 + $0x300] ss:$16 sps:$4 sm:$0xff]  }
  0xbe   :  { %1110 = vmatmul.mubr.bf16.vlgmr.msra.gmra.mxu0 %v3783_v15  ;;  %v3390_v15 = vld [vmem:[#allocation7 + $0x80] ss:$16 sps:$4 sm:$0xff]  }
  0xbf   :  { %1183 = vmatmul.mubr.bf16.vlgmr.msra.gmra.mxu1 %v3785_v16  ;;  %1119 = vmatprep.mubr.bf16.mxu0 %v3787_v24  ;;  %v3395_v16 = vld [vmem:[#allocation7 + $0x64] ss:$16 sps:$4 sm:$0xff]   ;;  %v3393_v24 = vld [vmem:[#allocation7 + $0x60] ss:$16 sps:$4 sm:$0xff]  }
  0xc0   :  { %1192 = vmatprep.mubr.bf16.mxu1 %v3789_v26  ;;  %2062 = vmatpush1.bf16.msra.mxu0 %v3381_v61  ;;  %v3431_v26 = vld [vmem:[#allocation7 + $0x2e4] ss:$16 sps:$4 sm:$0xff]   ;;  %v3527_v61 = vld [vmem:[#allocation7 + $0x2ec] ss:$16 sps:$4 sm:$0xff]  }
  0xc1   :  { %2063 = vmatprep.subr.bf16.mxu0 %v3386_v62  ;;  %2134 = vmatprep.subr.bf16.mxu1 %v3431_v26  ;;  %v271_v62 = vlaneseq }
  0xc2   :  { %2135 = vmatpush1.bf16.msra.mxu1 %v3429_v6 }
  0xc4   :  { %2064 = vmatpush1.bf16.msra.mxu0 %v3384_v63  ;;  %v3841_v63 = vshrl.u32 %v271_v62, 7 }
  0xc5   :  { %2065 = vmatprep.subr.bf16.mxu0 %v3389_v0 }
  0xc6   :  { %1120 = vmatmul.mubr.bf16.gmra.mxu0 %v3795_v35  ;;  %v3396_v35 = vld [vmem:[#allocation7 + $0x40] ss:$16 sps:$4 sm:$0xff]   ;;  %v277_v0 = vsub.s32 1, %v3841_v63 }
  0xc7   :  { %1193 = vmatmul.mubr.bf16.gmra.mxu1 %v3797_v36  ;;  %1129 = vmatprep.mubr.bf16.mxu0 %v3799_v44  ;;  %v3437_v36 = vld [vmem:[#allocation7 + $0x2c4] ss:$16 sps:$4 sm:$0xff]  }
  0xc8   :  { %1202 = vmatprep.mubr.bf16.mxu1 %v3801_v47  ;;  %2066 = vmatpush1.bf16.msra.mxu0 %v3387_v1  ;;  %v3401_v44 = vld [vmem:[#allocation7 + $0x24] ss:$16 sps:$4 sm:$0xff]   ;;  %v3435_v47 = vld [vmem:[#allocation7 + $0x2c0] ss:$16 sps:$4 sm:$0xff]   ;;  %v3844_v1 = vld [vmem:[#allocation6] sm:$0xf] }
  0xc9   :  { %2067 = vmatprep.subr.bf16.mxu0 %v3392_v3  ;;  %2136 = vmatprep.subr.bf16.mxu1 %v3437_v36  ;;  %v273_v3 = vsub.s32 0, %v3841_v63 }
  0xca   :  { %2137 = vmatpush1.bf16.msra.mxu1 %v3435_v47 }
  0xcb   :  { %2138 = vmatprep.subr.bf16.mxu1 %v3443_v8 }
  0xcc   :  { %2068 = vmatpush1.bf16.msra.mxu0 %v3390_v15  ;;  %v3850_v15 = vrot.slane %v3844_v1, %v277_v0 }
  0xcd   :  { %2069 = vmatprep.subr.bf16.mxu0 %v3395_v16  ;;  %v3855_v16 = vrot.slane %v3844_v1, %v273_v3 }
  0xce   :  { %1130 = vmatmul.mubr.bf16.gmra.mxu0 %v3807_v58  ;;  %v3404_v58 = vld [vmem:[#allocation7 + $0x4] ss:$16 sps:$4 sm:$0xff]   ;;  %2139 = vmatpush1.bf16.msra.mxu1 %v3441_v9 }
  0xcf   :  { %1203 = vmatmul.mubr.bf16.gmra.mxu1 %v3809_v59  ;;  %1139 = vmatprep.mubr.bf16.mxu0 %v3811_v2  ;;  %v3402_v59 = vld [vmem:[#allocation7] ss:$16 sps:$4 sm:$0xff]   ;;  %v3449_v2 = vld [vmem:[#allocation7 + $0x284] ss:$16 sps:$4 sm:$0xff]  }
  0xd0   :  { %1212 = vmatprep.mubr.bf16.mxu1 %v3813_v5  ;;  %2070 = vmatpush1.bf16.msra.mxu0 %v3393_v24  ;;  %v3407_v5 = vld [vmem:[#allocation7 + $0x1e4] ss:$16 sps:$4 sm:$0xff]  }
  0xd1   :  { %2071 = vmatprep.subr.bf16.mxu0 %v3398_v4  ;;  %2140 = vmatprep.subr.bf16.mxu1 %v3449_v2 }
  0xd2   :  { %2141 = vmatpush1.bf16.msra.mxu1 %v3447_v11 }
  0xd3   :  { %2142 = vmatprep.subr.bf16.mxu1 %v3455_v14 }
  0xd4   :  { %2072 = vmatpush1.bf16.msra.mxu0 %v3396_v35 }
  0xd5   :  { %2073 = vmatprep.subr.bf16.mxu0 %v3401_v44 }
  0xd6   :  { %1140 = vmatmul.mubr.bf16.gmra.mxu0 %v3819_v10  ;;  %v3408_v10 = vld [vmem:[#allocation7 + $0x1c0] ss:$16 sps:$4 sm:$0xff]   ;;  %2143 = vmatpush1.bf16.msra.mxu1 %v3453_v18 }
  0xd7   :  { %1213 = vmatmul.mubr.bf16.gmra.mxu1 %v3821_v13  ;;  %v3461_v13 = vld [vmem:[#allocation7 + $0x244] ss:$16 sps:$4 sm:$0xff]  }
  0xd8   :  { %2074 = vmatpush1.bf16.msra.mxu0 %v3399_v7  ;;  %2144 = vmatprep.subr.bf16.mxu1 %v3461_v13 }
  0xd9   :  { %2075 = vmatprep.subr.bf16.mxu0 %v3404_v58 }
  0xda   :  { %2145 = vmatpush1.bf16.msra.mxu1 %v3459_v20 }
  0xdb   :  { %2146 = vmatprep.subr.bf16.mxu1 %v3467_v22 }
  0xdc   :  { %2076 = vmatpush1.bf16.msra.mxu0 %v3402_v59 }
  0xdd   :  { %2077 = vmatprep.subr.bf16.mxu0 %v3407_v5 }
  0xde   :  { %2147 = vmatpush1.bf16.msra.mxu1 %v3465_v25 }
  0xdf   :  { %2148 = vmatprep.subr.bf16.mxu1 %v3473_v29 }
  0xe0   :  { %2078 = vmatpush2.bf16.msra.mxu0 %v3405_v12 }
  0xe1   :  { %2079 = vmatprep.subr.bf16.mxu0 %v3410_v17 }
  0xe2   :  { %2149 = vmatpush1.bf16.msra.mxu1 %v3471_v30 }
  0xe3   :  { %2150 = vmatprep.subr.bf16.mxu1 %v3479_v53 }
  0xe4   :  { %2080 = vmatpush2.bf16.msra.mxu0 %v3408_v10 }
  0xe5   :  { %2081 = vmatprep.subr.bf16.mxu0 %v3413_v19 }
  0xe6   :  { %2151 = vmatpush2.bf16.msra.mxu1 %v3477_v54 }
  0xe7   :  { %2152 = vmatprep.subr.bf16.mxu1 %v3485_v37 }
  0xe8   :  { %2082 = vmatpush2.bf16.msra.mxu0 %v3411_v21 }
  0xe9   :  { %2083 = vmatprep.subr.bf16.mxu0 %v3416_v23 }
  0xea   :  { %2153 = vmatpush2.bf16.msra.mxu1 %v3483_v38 }
  0xeb   :  { %2154 = vmatprep.subr.bf16.mxu1 %v3491_v39 }
  0xec   :  { %2084 = vmatpush2.bf16.msra.mxu0 %v3414_v27 }
  0xed   :  { %2085 = vmatprep.subr.bf16.mxu0 %v3419_v28 }
  0xee   :  { %2155 = vmatpush2.bf16.msra.mxu1 %v3489_v41 }
  0xef   :  { %2156 = vmatprep.subr.bf16.mxu1 %v3497_v43 }
  0xf0   :  { %2086 = vmatpush2.bf16.msra.mxu0 %v3417_v31  ;;  %v3432_v31 = vld [vmem:[#allocation7 + $0xe8] ss:$16 sps:$4 sm:$0xff]  }
  0xf1   :  { %2087 = vmatprep.subr.bf16.mxu0 %v3422_v32 }
  0xf2   :  { %2157 = vmatpush2.bf16.msra.mxu1 %v3495_v46  ;;  %v3438_v46 = vld [vmem:[#allocation7 + $0xc8] ss:$16 sps:$4 sm:$0xff]  }
  0xf3   :  { %2158 = vmatprep.subr.bf16.mxu1 %v3503_v49 }
  0xf4   :  { %2088 = vmatpush2.bf16.msra.mxu0 %v3420_v33  ;;  %v3440_v33 = vld [vmem:[#allocation7 + $0xcc] ss:$16 sps:$4 sm:$0xff]  }
  0xf5   :  { %2089 = vmatprep.subr.bf16.mxu0 %v3425_v34 }
  0xf6   :  { %2159 = vmatpush2.bf16.msra.mxu1 %v3501_v50  ;;  %v3446_v50 = vld [vmem:[#allocation7 + $0xac] ss:$16 sps:$4 sm:$0xff]  }
  0xf7   :  { %2160 = vmatprep.subr.bf16.mxu1 %v3509_v51 }
  0xf8   :  { %2090 = vmatpush2.bf16.msra.mxu0 %v3423_v40 }
  0xf9   :  { %2091 = vmatprep.subr.bf16.mxu0 %v3428_v42 }
  0xfa   :  { %2161 = vmatpush2.bf16.msra.mxu1 %v3507_v52 }
  0xfb   :  { %2162 = vmatprep.subr.bf16.mxu1 %v3515_v55 }
  0xfc   :  { %2092 = vmatpush2.bf16.msra.mxu0 %v3426_v45 }
  0xfd   :  { %2207 = vmatprep.subr.bf16.mxu0 %v3434_v48 }
  0xfe   :  { %2163 = vmatpush2.bf16.msra.mxu1 %v3513_v56 }
  0xff   :  { %2164 = vmatprep.subr.bf16.mxu1 %v3521_v57 }
 0x102   :  { %2165 = vmatpush2.bf16.msra.mxu1 %v3519_v60 }
 0x103   :  { %2280 = vmatprep.subr.bf16.mxu1 %v3527_v61 }
 0x13e   :  { %v965_v24 = vpop.f32.mrf.mxu0 }
 0x13f   :  { %v1038_v26 = vpop.f32.mrf.mxu1  ;;  %v966_v36 = vadd.f32 %v965_v24, %v3855_v16 }
 0x140   :  { %v967_v4 = vpop.f32.mrf.mxu0 }
 0x141   :  { %v1040_v6 = vpop.f32.mrf.mxu1  ;;  %v968_v35 = vadd.f32 %v967_v4, %v3850_v15  ;;  %v1039_v5 = vadd.f32 %v1038_v26, %v966_v36  ;;  %v3444_v26 = vld [vmem:[#allocation7 + $0xa8] ss:$16 sps:$4 sm:$0xff]  }
 0x142   :  { %v969_v44 = vpop.f32.mrf.mxu0 }
 0x143   :  { %v1042_v47 = vpop.f32.mrf.mxu1  ;;  %v970_v7 = vadd.f32 %v969_v44, %v3855_v16  ;;  %v1041_v9 = vadd.f32 %v1040_v6, %v968_v35  ;;  %v1223_v22 = vmax.f32 %v1039_v5, 0.0  ;;  %v3452_v35 = vld [vmem:[#allocation7 + $0x8c] ss:$16 sps:$4 sm:$0xff]   ;;  %v3450_v5 = vld [vmem:[#allocation7 + $0x88] ss:$16 sps:$4 sm:$0xff]  }
 0x144   :  { %v971_v8 = vpop.f32.mrf.mxu0 }
 0x145   :  { %v1044_v58 = vpop.f32.mrf.mxu1  ;;  %v1043_v59 = vadd.f32 %v1042_v47, %v970_v7  ;;  %v972_v2 = vadd.f32 %v971_v8, %v3850_v15  ;;  %v1224_v19 = vmax.f32 %v1041_v9, 0.0 }
 0x146   :  { %v975_v11 = vpop.f32.mrf.mxu0 }
 0x147   :  { %v1048_v12 = vpop.f32.mrf.mxu1  ;;  %v1045_v14 = vadd.f32 %v1044_v58, %v972_v2  ;;  %v976_v17 = vadd.f32 %v975_v11, %v3855_v16  ;;  %v1227_v18 = vmax.f32 %v1043_v59, 0.0 }
 0x148   :  { %v977_v10 = vpop.f32.mrf.mxu0 }
 0x149   :  { %v1050_v13 = vpop.f32.mrf.mxu1  ;;  %v1228_v20 = vmax.f32 %v1045_v14, 0.0  ;;  %v978_v21 = vadd.f32 %v977_v10, %v3850_v15  ;;  %v1049_v23 = vadd.f32 %v1048_v12, %v976_v17  ;;  %v3866_v32 = vpack.c.bf16 %v1227_v18, %v1223_v22  ;;  %v3458_v14 = vld [vmem:[#allocation7 + $0x6c] ss:$16 sps:$4 sm:$0xff]  }
 0x14a   :  { %v979_v25 = vpop.f32.mrf.mxu0 }
 0x14b   :  { %v1052_v27 = vpop.f32.mrf.mxu1  ;;  %v3863_v28 = vpack.c.bf16 %v1228_v20, %v1224_v19  ;;  %v980_v29 = vadd.f32 %v979_v25, %v3855_v16  ;;  %v1051_v30 = vadd.f32 %v1050_v13, %v978_v21  ;;  %v1231_v38 = vmax.f32 %v1049_v23, 0.0  ;;  %v3456_v25 = vld [vmem:[#allocation7 + $0x68] ss:$16 sps:$4 sm:$0xff]  }
 0x14c   :  { %v981_v53 = vpop.f32.mrf.mxu0 }
 0x14d   :  { %v1054_v54 = vpop.f32.mrf.mxu1  ;;  %v982_v34 = vadd.f32 %v981_v53, %v3850_v15  ;;  %v1053_v37 = vadd.f32 %v1052_v27, %v980_v29  ;;  %2093 = vmatprep.mubr.bf16.mxu0 %v3863_v28  ;;  %v1232_v41 = vmax.f32 %v1051_v30, 0.0  ;;  %v3464_v30 = vld [vmem:[#allocation7 + $0x4c] ss:$16 sps:$4 sm:$0xff]  }
 0x14e   :  { %v985_v39 = vpop.f32.mrf.mxu0  ;;  %2094 = vmatmul.mubr.bf16.vlgmr.msra.gmra.mxu0 %v3866_v32 }
 0x14f   :  { %v1058_v40 = vpop.f32.mrf.mxu1  ;;  %v1235_v42 = vmax.f32 %v1053_v37, 0.0  ;;  %v986_v43 = vadd.f32 %v985_v39, %v3855_v16  ;;  %v1055_v45 = vadd.f32 %v1054_v54, %v982_v34  ;;  %2208 = vmatpush1.bf16.msra.mxu0 %v3432_v31 }
 0x150   :  { %v987_v48 = vpop.f32.mrf.mxu0  ;;  %2209 = vmatprep.subr.bf16.mxu0 %v3440_v33 }
 0x151   :  { %v1060_v49 = vpop.f32.mrf.mxu1  ;;  %v1236_v51 = vmax.f32 %v1055_v45, 0.0  ;;  %v988_v52 = vadd.f32 %v987_v48, %v3850_v15  ;;  %v3873_v55 = vpack.c.bf16 %v1235_v42, %v1231_v38  ;;  %v1059_v56 = vadd.f32 %v1058_v40, %v986_v43  ;;  %v3470_v38 = vld [vmem:[#allocation7 + $0x2c] ss:$16 sps:$4 sm:$0xff]   ;;  %v3474_v43 = vld [vmem:[#allocation7 + $0x8] ss:$16 sps:$4 sm:$0xff]  }
 0x152   :  { %v989_v57 = vpop.f32.mrf.mxu0  ;;  %v3476_v42 = vld [vmem:[#allocation7 + $0xc] ss:$16 sps:$4 sm:$0xff]  }
 0x153   :  { %v1062_v60 = vpop.f32.mrf.mxu1  ;;  %v3875_v61 = vpack.c.bf16 %v1236_v51, %v1232_v41  ;;  %v990_v62 = vadd.f32 %v989_v57, %v3855_v16  ;;  %v1061_v24 = vadd.f32 %v1060_v49, %v988_v52  ;;  %2210 = vmatpush1.bf16.msra.mxu0 %v3438_v46  ;;  %v1239_v47 = vmax.f32 %v1059_v56, 0.0  ;;  %v3482_v45 = vld [vmem:[#allocation7 + $0x1ec] ss:$16 sps:$4 sm:$0xff]   ;;  %v3480_v46 = vld [vmem:[#allocation7 + $0x1e8] ss:$16 sps:$4 sm:$0xff]  }
 0x154   :  { %v991_v4 = vpop.f32.mrf.mxu0  ;;  %2211 = vmatprep.subr.bf16.mxu0 %v3446_v50  ;;  %v3488_v48 = vld [vmem:[#allocation7 + $0x1cc] ss:$16 sps:$4 sm:$0xff]   ;;  %v3486_v49 = vld [vmem:[#allocation7 + $0x1c8] ss:$16 sps:$4 sm:$0xff]  }
 0x155   :  { %v1064_v6 = vpop.f32.mrf.mxu1  ;;  %v992_v36 = vadd.f32 %v991_v4, %v3850_v15  ;;  %v1063_v44 = vadd.f32 %v1062_v60, %v990_v62  ;;  %2103 = vmatprep.mubr.bf16.mxu0 %v3875_v61  ;;  %v1240_v58 = vmax.f32 %v1061_v24, 0.0  ;;  %v3494_v50 = vld [vmem:[#allocation7 + $0x1ac] ss:$16 sps:$4 sm:$0xff]   ;;  %v3492_v51 = vld [vmem:[#allocation7 + $0x1a8] ss:$16 sps:$4 sm:$0xff]   ;;  %v281_v60 = vsub.s32 2, %v3841_v63 }
 0x156   :  { %v995_v7 = vpop.f32.mrf.mxu0  ;;  %2104 = vmatmul.mubr.bf16.gmra.mxu0 %v3873_v55  ;;  %v3500_v52 = vld [vmem:[#allocation7 + $0x18c] ss:$16 sps:$4 sm:$0xff]   ;;  %v3498_v56 = vld [vmem:[#allocation7 + $0x188] ss:$16 sps:$4 sm:$0xff]  }
 0x157   :  { %v1068_v8 = vpop.f32.mrf.mxu1  ;;  %v1243_v9 = vmax.f32 %v1063_v44, 0.0  ;;  %v996_v59 = vadd.f32 %v995_v7, %v3855_v16  ;;  %v1065_v2 = vadd.f32 %v1064_v6, %v992_v36  ;;  %2212 = vmatpush1.bf16.msra.mxu0 %v3444_v26  ;;  %v3506_v57 = vld [vmem:[#allocation7 + $0x16c] ss:$16 sps:$4 sm:$0xff]   ;;  %v3504_v62 = vld [vmem:[#allocation7 + $0x168] ss:$16 sps:$4 sm:$0xff]   ;;  %v3908_v4 = vrot.slane %v3844_v1, %v281_v60 }
 0x158   :  { %v997_v11 = vpop.f32.mrf.mxu0  ;;  %2213 = vmatprep.subr.bf16.mxu0 %v3452_v35  ;;  %v3512_v24 = vld [vmem:[#allocation7 + $0x14c] ss:$16 sps:$4 sm:$0xff]   ;;  %v3510_v36 = vld [vmem:[#allocation7 + $0x148] ss:$16 sps:$4 sm:$0xff]  }
 0x159   :  { %v1070_v12 = vpop.f32.mrf.mxu1  ;;  %v1244_v17 = vmax.f32 %v1065_v2, 0.0  ;;  %v998_v18 = vadd.f32 %v997_v11, %v3850_v15  ;;  %v3883_v10 = vpack.c.bf16 %v1243_v9, %v1239_v47  ;;  %v1069_v13 = vadd.f32 %v1068_v8, %v996_v59  ;;  %v3518_v7 = vld [vmem:[#allocation7 + $0x12c] ss:$16 sps:$4 sm:$0xff]  }
 0x15a   :  { %v999_v19 = vpop.f32.mrf.mxu0 }
 0x15b   :  { %v1072_v20 = vpop.f32.mrf.mxu1  ;;  %v3885_v21 = vpack.c.bf16 %v1244_v17, %v1240_v58  ;;  %v1000_v22 = vadd.f32 %v999_v19, %v3855_v16  ;;  %v1071_v23 = vadd.f32 %v1070_v12, %v998_v18  ;;  %2214 = vmatpush1.bf16.msra.mxu0 %v3450_v5  ;;  %v1247_v54 = vmax.f32 %v1069_v13, 0.0  ;;  %v3462_v16 = vld [vmem:[#allocation7 + $0x48] ss:$16 sps:$4 sm:$0xff]   ;;  %v3524_v12 = vld [vmem:[#allocation7 + $0x10c] ss:$16 sps:$4 sm:$0xff]  }
 0x15c   :  { %v1001_v27 = vpop.f32.mrf.mxu0  ;;  %2215 = vmatprep.subr.bf16.mxu0 %v3458_v14  ;;  %v3516_v5 = vld [vmem:[#allocation7 + $0x128] ss:$16 sps:$4 sm:$0xff]  }
 0x15d   :  { %v1074_v29 = vpop.f32.mrf.mxu1  ;;  %v1002_v31 = vadd.f32 %v1001_v27, %v3850_v15  ;;  %v1073_v53 = vadd.f32 %v1072_v20, %v1000_v22  ;;  %2113 = vmatprep.mubr.bf16.mxu0 %v3885_v21  ;;  %v1248_v33 = vmax.f32 %v1071_v23, 0.0  ;;  %v3468_v15 = vld [vmem:[#allocation7 + $0x28] ss:$16 sps:$4 sm:$0xff]  }
 0x15e   :  { %2114 = vmatmul.mubr.bf16.gmra.mxu0 %v3883_v10 }
 0x15f   :  { %v1251_v34 = vmax.f32 %v1073_v53, 0.0  ;;  %v1075_v37 = vadd.f32 %v1074_v29, %v1002_v31  ;;  %2216 = vmatpush1.bf16.msra.mxu0 %v3456_v25  ;;  %v3522_v25 = vld [vmem:[#allocation7 + $0x108] ss:$16 sps:$4 sm:$0xff]  }
 0x160   :  { %2217 = vmatprep.subr.bf16.mxu0 %v3464_v30 }
 0x161   :  { %v1252_v39 = vmax.f32 %v1075_v37, 0.0  ;;  %v3891_v40 = vpack.c.bf16 %v1251_v34, %v1247_v54 }
 0x163   :  { %v3893_v41 = vpack.c.bf16 %v1252_v39, %v1248_v33  ;;  %2218 = vmatpush1.bf16.msra.mxu0 %v3462_v16 }
 0x164   :  { %2219 = vmatprep.subr.bf16.mxu0 %v3470_v38 }
 0x165   :  { %2123 = vmatprep.mubr.bf16.mxu0 %v3893_v41 }
 0x166   :  { %2124 = vmatmul.mubr.bf16.gmra.mxu0 %v3891_v40 }
 0x167   :  { %2220 = vmatpush1.bf16.msra.mxu0 %v3468_v15  ;;  %2239 = vmatprep.mubr.bf16.mxu0 %v3863_v28  ;;  %v285_v28 = vsub.s32 3, %v3841_v63 }
 0x168   :  { %2221 = vmatprep.subr.bf16.mxu0 %v3476_v42  ;;  %v3525_v42 = vld [vmem:[#allocation7 + $0x2e8] ss:$16 sps:$4 sm:$0xff]  }
 0x169   :  { %v3903_v26 = vrot.slane %v3844_v1, %v285_v28 }
 0x16b   :  { %2222 = vmatpush1.bf16.msra.mxu0 %v3474_v43 }
 0x16c   :  { %2223 = vmatprep.subr.bf16.mxu0 %v3482_v45 }
 0x16f   :  { %2224 = vmatpush2.bf16.msra.mxu0 %v3480_v46 }
 0x170   :  { %2225 = vmatprep.subr.bf16.mxu0 %v3488_v48  ;;  %v3530_v48 = vld [vmem:[#allocation7 + $0x2cc] ss:$16 sps:$4 sm:$0xff]  }
 0x173   :  { %2226 = vmatpush2.bf16.msra.mxu0 %v3486_v49 }
 0x174   :  { %2227 = vmatprep.subr.bf16.mxu0 %v3494_v50 }
 0x177   :  { %2228 = vmatpush2.bf16.msra.mxu0 %v3492_v51 }
 0x178   :  { %2229 = vmatprep.subr.bf16.mxu0 %v3500_v52 }
 0x17b   :  { %2230 = vmatpush2.bf16.msra.mxu0 %v3498_v56 }
 0x17c   :  { %2231 = vmatprep.subr.bf16.mxu0 %v3506_v57 }
 0x17e   :  { %v1111_v6 = vpop.f32.mrf.mxu0 }
 0x17f   :  { %v1184_v35 = vpop.f32.mrf.mxu1  ;;  %2232 = vmatpush2.bf16.msra.mxu0 %v3504_v62  ;;  %v1112_v58 = vadd.f32 %v1111_v6, %v3908_v4 }
 0x180   :  { %v1113_v44 = vpop.f32.mrf.mxu0  ;;  %2233 = vmatprep.subr.bf16.mxu0 %v3512_v24 }
 0x181   :  { %v1186_v47 = vpop.f32.mrf.mxu1  ;;  %v1114_v8 = vadd.f32 %v1113_v44, %v3903_v26  ;;  %v1185_v13 = vadd.f32 %v1184_v35, %v1112_v58  ;;  %v3528_v35 = vld [vmem:[#allocation7 + $0x2c8] ss:$16 sps:$4 sm:$0xff]  }
 0x182   :  { %v1115_v9 = vpop.f32.mrf.mxu0 }
 0x183   :  { %v1188_v59 = vpop.f32.mrf.mxu1  ;;  %v1116_v2 = vadd.f32 %v1115_v9, %v3908_v4  ;;  %2234 = vmatpush2.bf16.msra.mxu0 %v3510_v36  ;;  %v1187_v14 = vadd.f32 %v1186_v47, %v1114_v8  ;;  %v1225_v33 = vmax.f32 %v1185_v13, 0.0  ;;  %v3533_v47 = vld [vmem:[#allocation7 + $0x2ac] ss:$16 sps:$4 sm:$0xff]  }
 0x184   :  { %v1117_v1 = vpop.f32.mrf.mxu0  ;;  %2235 = vmatprep.subr.bf16.mxu0 %v3518_v7 }
 0x185   :  { %v1190_v11 = vpop.f32.mrf.mxu1  ;;  %v1189_v17 = vadd.f32 %v1188_v59, %v1116_v2  ;;  %v1118_v18 = vadd.f32 %v1117_v1, %v3903_v26  ;;  %v1226_v31 = vmax.f32 %v1187_v14, 0.0  ;;  %v3536_v14 = vld [vmem:[#allocation7 + $0x28c] ss:$16 sps:$4 sm:$0xff]  }
 0x186   :  { %v1121_v19 = vpop.f32.mrf.mxu0 }
 0x187   :  { %v1194_v20 = vpop.f32.mrf.mxu1  ;;  %v1191_v22 = vadd.f32 %v1190_v11, %v1118_v18  ;;  %v1122_v23 = vadd.f32 %v1121_v19, %v3908_v4  ;;  %2236 = vmatpush2.bf16.msra.mxu0 %v3516_v5  ;;  %v1229_v27 = vmax.f32 %v1189_v17, 0.0 }
 0x188   :  { %v1123_v29 = vpop.f32.mrf.mxu0  ;;  %2237 = vmatprep.subr.bf16.mxu0 %v3524_v12 }
 0x189   :  { %v1196_v30 = vpop.f32.mrf.mxu1  ;;  %v1230_v53 = vmax.f32 %v1191_v22, 0.0  ;;  %v1124_v54 = vadd.f32 %v1123_v29, %v3903_v26  ;;  %v1195_v34 = vadd.f32 %v1194_v20, %v1122_v23  ;;  %v3919_v43 = vpack.c.bf16 %v1229_v27, %v1225_v33  ;;  %v3534_v29 = vld [vmem:[#allocation7 + $0x288] ss:$16 sps:$4 sm:$0xff]  }
 0x18a   :  { %v1125_v37 = vpop.f32.mrf.mxu0 }
 0x18b   :  { %v1198_v16 = vpop.f32.mrf.mxu1  ;;  %v3916_v38 = vpack.c.bf16 %v1230_v53, %v1226_v31  ;;  %v1126_v39 = vadd.f32 %v1125_v37, %v3908_v4  ;;  %v1197_v15 = vadd.f32 %v1196_v30, %v1124_v54  ;;  %2238 = vmatpush2.bf16.msra.mxu0 %v3522_v25  ;;  %v1233_v51 = vmax.f32 %v1195_v34, 0.0  ;;  %v3539_v53 = vld [vmem:[#allocation7 + $0x26c] ss:$16 sps:$4 sm:$0xff]  }
 0x18c   :  { %v1127_v45 = vpop.f32.mrf.mxu0 }
 0x18d   :  { %v1200_v46 = vpop.f32.mrf.mxu1  ;;  %v1128_v49 = vadd.f32 %v1127_v45, %v3903_v26  ;;  %v1199_v50 = vadd.f32 %v1198_v16, %v1126_v39  ;;  %2166 = vmatprep.mubr.bf16.mxu1 %v3916_v38  ;;  %v1234_v57 = vmax.f32 %v1197_v15, 0.0 }
 0x18e   :  { %2240 = vmatmul.mubr.bf16.vlgmr.msra.gmra.mxu0 %v3866_v32  ;;  %v1131_v52 = vpop.f32.mrf.mxu0  ;;  %2167 = vmatmul.mubr.bf16.vlgmr.msra.gmra.mxu1 %v3919_v43 }
 0x18f   :  { %v1204_v56 = vpop.f32.mrf.mxu1  ;;  %v1237_v62 = vmax.f32 %v1199_v50, 0.0  ;;  %v1132_v24 = vadd.f32 %v1131_v52, %v3908_v4  ;;  %v1201_v6 = vadd.f32 %v1200_v46, %v1128_v49  ;;  %2249 = vmatprep.mubr.bf16.mxu0 %v3875_v61  ;;  %2281 = vmatpush1.bf16.msra.mxu1 %v3525_v42  ;;  %v3531_v61 = vld [vmem:[#allocation7 + $0x2a8] ss:$16 sps:$4 sm:$0xff]  }
 0x190   :  { %v1133_v36 = vpop.f32.mrf.mxu0  ;;  %2282 = vmatprep.subr.bf16.mxu1 %v3530_v48  ;;  %v3542_v48 = vld [vmem:[#allocation7 + $0x24c] ss:$16 sps:$4 sm:$0xff]  }
 0x191   :  { %v1206_v44 = vpop.f32.mrf.mxu1  ;;  %v1238_v7 = vmax.f32 %v1201_v6, 0.0  ;;  %v1134_v32 = vadd.f32 %v1133_v36, %v3903_v26  ;;  %v3928_v8 = vpack.c.bf16 %v1237_v62, %v1233_v51  ;;  %v1205_v58 = vadd.f32 %v1204_v56, %v1132_v24  ;;  %v3545_v62 = vld [vmem:[#allocation7 + $0x22c] ss:$16 sps:$4 sm:$0xff]  }
 0x192   :  { %v1135_v9 = vpop.f32.mrf.mxu0  ;;  %v3551_v36 = vld [vmem:[#allocation7 + $0x3ec] ss:$16 sps:$4 sm:$0xff]  }
 0x193   :  { %v1208_v59 = vpop.f32.mrf.mxu1  ;;  %v3930_v2 = vpack.c.bf16 %v1238_v7, %v1234_v57  ;;  %v1136_v5 = vadd.f32 %v1135_v9, %v3908_v4  ;;  %v1207_v1 = vadd.f32 %v1206_v44, %v1134_v32  ;;  %2283 = vmatpush1.bf16.msra.mxu1 %v3528_v35  ;;  %v1241_v13 = vmax.f32 %v1205_v58, 0.0  ;;  %v3540_v57 = vld [vmem:[#allocation7 + $0x248] ss:$16 sps:$4 sm:$0xff]   ;;  %v3554_v32 = vld [vmem:[#allocation7 + $0x3cc] ss:$16 sps:$4 sm:$0xff]   ;;  %v3575_v58 = vld [vmem:[#allocation9 + $0x70] sm:$0xff]  }
 0x194   :  { %v1137_v11 = vpop.f32.mrf.mxu0  ;;  %2284 = vmatprep.subr.bf16.mxu1 %v3533_v47  ;;  %v3543_v35 = vld [vmem:[#allocation7 + $0x228] ss:$16 sps:$4 sm:$0xff]   ;;  %v3576_v9 = vld [vmem:[#allocation9 + $0x30] sm:$0xff]  }
 0x195   :  { %v1210_v12 = vpop.f32.mrf.mxu1  ;;  %v1138_v17 = vadd.f32 %v1137_v11, %v3903_v26  ;;  %v1209_v18 = vadd.f32 %v1208_v59, %v1136_v5  ;;  %2176 = vmatprep.mubr.bf16.mxu1 %v3930_v2  ;;  %v1242_v22 = vmax.f32 %v1207_v1, 0.0  ;;  %v3573_v44 = vld [vmem:[#allocation9 + $0x78] sm:$0xff]   ;;  %v3577_v59 = vld [vmem:[#allocation9 + $0x68] sm:$0xff]   ;;  %v3579_v1 = vld [vmem:[#allocation9 + $0x60] sm:$0xff]  }
 0x196   :  { %2250 = vmatmul.mubr.bf16.gmra.mxu0 %v3873_v55  ;;  %v1141_v19 = vpop.f32.mrf.mxu0  ;;  %2177 = vmatmul.mubr.bf16.gmra.mxu1 %v3928_v8  ;;  %v3549_v47 = vld [vmem:[#allocation7 + $0x3e8] ss:$16 sps:$4 sm:$0xff]   ;;  %v3557_v5 = vld [vmem:[#allocation7 + $0x3ac] ss:$16 sps:$4 sm:$0xff]  }
 0x197   :  { %v1214_v20 = vpop.f32.mrf.mxu1  ;;  %v1245_v23 = vmax.f32 %v1209_v18, 0.0  ;;  %v1142_v25 = vadd.f32 %v1141_v19, %v3908_v4  ;;  %v1211_v27 = vadd.f32 %v1210_v12, %v1138_v17  ;;  %2259 = vmatprep.mubr.bf16.mxu0 %v3885_v21  ;;  %2285 = vmatpush1.bf16.msra.mxu1 %v3531_v61  ;;  %v3537_v21 = vld [vmem:[#allocation7 + $0x268] ss:$16 sps:$4 sm:$0xff]   ;;  %v3560_v11 = vld [vmem:[#allocation7 + $0x38c] ss:$16 sps:$4 sm:$0xff]   ;;  %v3580_v12 = vld [vmem:[#allocation9 + $0x20] sm:$0xff]  }
 0x198   :  { %v1143_v30 = vpop.f32.mrf.mxu0  ;;  %2286 = vmatprep.subr.bf16.mxu1 %v3536_v14  ;;  %3098 = vmatprep.subr.bf16.mxu0 %v3573_v44  ;;  %v3574_v7 = vld [vmem:[#allocation9 + $0x38] sm:$0xff]  }
 0x199   :  { %v1216_v31 = vpop.f32.mrf.mxu1  ;;  %v1246_v54 = vmax.f32 %v1211_v27, 0.0  ;;  %v1144_v55 = vadd.f32 %v1143_v30, %v3903_v26  ;;  %v3940_v33 = vpack.c.bf16 %v1245_v23, %v1241_v13  ;;  %v1215_v34 = vadd.f32 %v1214_v20, %v1142_v25  ;;  %3099 = vmatpush3.bf16.msra.mxu0 %v3574_v7  ;;  %v3555_v61 = vld [vmem:[#allocation7 + $0x3a8] ss:$16 sps:$4 sm:$0xff]   ;;  %v3563_v18 = vld [vmem:[#allocation7 + $0x36c] ss:$16 sps:$4 sm:$0xff]   ;;  %v3583_v30 = vld [vmem:[#allocation9 + $0x50] sm:$0xff]  }
 0x19a   :  { %v1145_v37 = vpop.f32.mrf.mxu0  ;;  %3100 = vmatprep.subr.bf16.mxu0 %v3575_v58  ;;  %v3581_v14 = vld [vmem:[#allocation9 + $0x58] sm:$0xff]  }
 0x19b   :  { %v1218_v16 = vpop.f32.mrf.mxu1  ;;  %v3942_v39 = vpack.c.bf16 %v1246_v54, %v1242_v22  ;;  %v1146_v15 = vadd.f32 %v1145_v37, %v3908_v4  ;;  %v1217_v42 = vadd.f32 %v1216_v31, %v1144_v55  ;;  %2287 = vmatpush1.bf16.msra.mxu1 %v3534_v29  ;;  %v1249_v51 = vmax.f32 %v1215_v34, 0.0  ;;  %v3558_v17 = vld [vmem:[#allocation7 + $0x388] ss:$16 sps:$4 sm:$0xff]   ;;  %v3566_v19 = vld [vmem:[#allocation7 + $0x34c] ss:$16 sps:$4 sm:$0xff]   ;;  %v3584_v31 = vld [vmem:[#allocation9 + $0x10] sm:$0xff]  }
 0x19c   :  { %v1147_v45 = vpop.f32.mrf.mxu0  ;;  %2288 = vmatprep.subr.bf16.mxu1 %v3539_v53  ;;  %v3561_v13 = vld [vmem:[#allocation7 + $0x368] ss:$16 sps:$4 sm:$0xff]   ;;  %v3569_v22 = vld [vmem:[#allocation7 + $0x32c] ss:$16 sps:$4 sm:$0xff]   ;;  %v3587_v55 = vld [vmem:[#allocation9 + $0x40] sm:$0xff]  }
 0x19d   :  { %v1220_v46 = vpop.f32.mrf.mxu1  ;;  %v1148_v49 = vadd.f32 %v1147_v45, %v3903_v26  ;;  %v1219_v50 = vadd.f32 %v1218_v16, %v1146_v15  ;;  %2186 = vmatprep.mubr.bf16.mxu1 %v3942_v39  ;;  %v1250_v52 = vmax.f32 %v1217_v42, 0.0  ;;  %3101 = vmatpush3.bf16.msra.mxu0 %v3576_v9  ;;  %v3564_v20 = vld [vmem:[#allocation7 + $0x348] ss:$16 sps:$4 sm:$0xff]   ;;  %v3572_v25 = vld [vmem:[#allocation7 + $0x30c] ss:$16 sps:$4 sm:$0xff]   ;;  %v3588_v34 = vld [vmem:[#allocation9] sm:$0xff]  }
 0x19e   :  { %2260 = vmatmul.mubr.bf16.gmra.mxu0 %v3883_v10  ;;  %2187 = vmatmul.mubr.bf16.gmra.mxu1 %v3940_v33  ;;  %v3548_v10 = vld [vmem:[#allocation7 + $0x20c] ss:$16 sps:$4 sm:$0xff]   ;;  %v3567_v23 = vld [vmem:[#allocation7 + $0x328] ss:$16 sps:$4 sm:$0xff]   ;;  %v3591_v37 = vld [vmem:[#allocation9 + $0xf0] sm:$0xff]  }
 0x19f   :  { %v1253_v56 = vmax.f32 %v1219_v50, 0.0  ;;  %v1221_v4 = vadd.f32 %v1220_v46, %v1148_v49  ;;  %2269 = vmatprep.mubr.bf16.mxu0 %v3893_v41  ;;  %2289 = vmatpush1.bf16.msra.mxu1 %v3537_v21  ;;  %v3546_v41 = vld [vmem:[#allocation7 + $0x208] ss:$16 sps:$4 sm:$0xff]   ;;  %v3592_v16 = vld [vmem:[#allocation9 + $0xb0] sm:$0xff]   ;;  %v3595_v15 = vld [vmem:[#allocation9 + $0xe0] sm:$0xff]  }
 0x1a0   :  { %2290 = vmatprep.subr.bf16.mxu1 %v3542_v48  ;;  %3102 = vmatprep.subr.bf16.mxu0 %v3577_v59  ;;  %v3570_v27 = vld [vmem:[#allocation7 + $0x308] ss:$16 sps:$4 sm:$0xff]   ;;  %v3596_v42 = vld [vmem:[#allocation9 + $0xa0] sm:$0xff]   ;;  %v3599_v45 = vld [vmem:[#allocation9 + $0xd0] sm:$0xff]  }
 0x1a1   :  { %v1254_v24 = vmax.f32 %v1221_v4, 0.0  ;;  %v3950_v6 = vpack.c.bf16 %v1253_v56, %v1249_v51  ;;  %v3582_v29 = vld [vmem:[#allocation9 + $0x18] sm:$0xff]   ;;  %v3585_v53 = vld [vmem:[#allocation9 + $0x48] sm:$0xff]   ;;  %v3600_v46 = vld [vmem:[#allocation9 + $0x90] sm:$0xff]  }
 0x1a2   :  { %v3586_v54 = vld [vmem:[#allocation9 + $0x8] sm:$0xff]   ;;  %v3598_v21 = vld [vmem:[#allocation9 + $0x98] sm:$0xff]   ;;  %v3603_v50 = vld [vmem:[#allocation9 + $0xc0] sm:$0xff]  }
 0x1a3   :  { %v3952_v26 = vpack.c.bf16 %v1254_v24, %v1250_v52  ;;  %2291 = vmatpush1.bf16.msra.mxu1 %v3540_v57  ;;  %v3601_v48 = vld [vmem:[#allocation9 + $0xc8] sm:$0xff]   ;;  %v3604_v51 = vld [vmem:[#allocation9 + $0x80] sm:$0xff]  }
 0x1a4   :  { %2292 = vmatprep.subr.bf16.mxu1 %v3545_v62  ;;  %v3602_v49 = vld [vmem:[#allocation9 + $0x88] sm:$0xff]  }
 0x1a5   :  { %2196 = vmatprep.mubr.bf16.mxu1 %v3952_v26 }
 0x1a6   :  { %2270 = vmatmul.mubr.bf16.gmra.mxu0 %v3891_v40  ;;  %2197 = vmatmul.mubr.bf16.gmra.mxu1 %v3950_v6  ;;  %v3552_v40 = vld [vmem:[#allocation7 + $0x3c8] ss:$16 sps:$4 sm:$0xff]  }
 0x1a7   :  { %2293 = vmatpush1.bf16.msra.mxu1 %v3543_v35  ;;  %2312 = vmatprep.mubr.bf16.mxu1 %v3916_v38  ;;  %v3578_v38 = vld [vmem:[#allocation9 + $0x28] sm:$0xff]   ;;  %v3968_v35 = vld [vmem:[%s4053_s4] sm:$0xf] }
 0x1a8   :  { %2294 = vmatprep.subr.bf16.mxu1 %v3548_v10  ;;  %3103 = vmatpush3.bf16.msra.mxu0 %v3578_v38 }
 0x1a9   :  { %3104 = vmatprep.subr.bf16.mxu0 %v3579_v1 }
 0x1ab   :  { %2295 = vmatpush1.bf16.msra.mxu1 %v3546_v41  ;;  %v3973_v41 = vrot.slane %v3968_v35, %v277_v0 }
 0x1ac   :  { %2296 = vmatprep.subr.bf16.mxu1 %v3551_v36  ;;  %3105 = vmatpush3.bf16.msra.mxu0 %v3580_v12  ;;  %v3978_v36 = vrot.slane %v3968_v35, %v273_v3 }
 0x1ad   :  { %3106 = vmatprep.subr.bf16.mxu0 %v3581_v14 }
 0x1af   :  { %2297 = vmatpush2.bf16.msra.mxu1 %v3549_v47 }
 0x1b0   :  { %2298 = vmatprep.subr.bf16.mxu1 %v3554_v32  ;;  %3107 = vmatpush3.bf16.msra.mxu0 %v3582_v29 }
 0x1b1   :  { %3108 = vmatprep.subr.bf16.mxu0 %v3583_v30 }
 0x1b3   :  { %2299 = vmatpush2.bf16.msra.mxu1 %v3552_v40 }
 0x1b4   :  { %2300 = vmatprep.subr.bf16.mxu1 %v3557_v5  ;;  %3109 = vmatpush3.bf16.msra.mxu0 %v3584_v31 }
 0x1b5   :  { %3110 = vmatprep.subr.bf16.mxu0 %v3585_v53 }
 0x1b7   :  { %2301 = vmatpush2.bf16.msra.mxu1 %v3555_v61 }
 0x1b8   :  { %2302 = vmatprep.subr.bf16.mxu1 %v3560_v11  ;;  %3111 = vmatpush3.bf16.msra.mxu0 %v3586_v54 }
 0x1b9   :  { %3112 = vmatprep.subr.bf16.mxu0 %v3587_v55 }
 0x1bb   :  { %2303 = vmatpush2.bf16.msra.mxu1 %v3558_v17 }
 0x1bc   :  { %2304 = vmatprep.subr.bf16.mxu1 %v3563_v18  ;;  %3113 = vmatpush3.bf16.msra.mxu0 %v3588_v34 }
 0x1bf   :  { %2305 = vmatpush2.bf16.msra.mxu1 %v3561_v13 }
 0x1c0   :  { %2306 = vmatprep.subr.bf16.mxu1 %v3566_v19 }
 0x1c3   :  { %2307 = vmatpush2.bf16.msra.mxu1 %v3564_v20 }
 0x1c4   :  { %2308 = vmatprep.subr.bf16.mxu1 %v3569_v22 }
 0x1c7   :  { %2309 = vmatpush2.bf16.msra.mxu1 %v3567_v23 }
 0x1c8   :  { %2310 = vmatprep.subr.bf16.mxu1 %v3572_v25 }
 0x1cb   :  { %2311 = vmatpush2.bf16.msra.mxu1 %v3570_v27 }
 0x1ce   :  { %2313 = vmatmul.mubr.bf16.vlgmr.msra.gmra.mxu1 %v3919_v43  ;;  %v3589_v43 = vld [vmem:[#allocation9 + $0xf8] sm:$0xff]  }
 0x1cf   :  { %2322 = vmatprep.mubr.bf16.mxu1 %v3930_v2  ;;  %v3590_v2 = vld [vmem:[#allocation9 + $0xb8] sm:$0xff]   ;;  %3138 = vmatprep.subr.bf16.mxu1 %v3589_v43 }
 0x1d0   :  { %3139 = vmatpush3.bf16.msra.mxu1 %v3590_v2 }
 0x1d1   :  { %3140 = vmatprep.subr.bf16.mxu1 %v3591_v37 }
 0x1d4   :  { %3141 = vmatpush3.bf16.msra.mxu1 %v3592_v16 }
 0x1d6   :  { %2323 = vmatmul.mubr.bf16.gmra.mxu1 %v3928_v8  ;;  %v3593_v8 = vld [vmem:[#allocation9 + $0xe8] sm:$0xff]  }
 0x1d7   :  { %2332 = vmatprep.mubr.bf16.mxu1 %v3942_v39  ;;  %v3594_v39 = vld [vmem:[#allocation9 + $0xa8] sm:$0xff]   ;;  %3142 = vmatprep.subr.bf16.mxu1 %v3593_v8 }
 0x1d8   :  { %3143 = vmatpush3.bf16.msra.mxu1 %v3594_v39 }
 0x1d9   :  { %3144 = vmatprep.subr.bf16.mxu1 %v3595_v15 }
 0x1dc   :  { %3145 = vmatpush3.bf16.msra.mxu1 %v3596_v42 }
 0x1de   :  { %2333 = vmatmul.mubr.bf16.gmra.mxu1 %v3940_v33  ;;  %v3597_v33 = vld [vmem:[#allocation9 + $0xd8] sm:$0xff]  }
 0x1df   :  { %2342 = vmatprep.mubr.bf16.mxu1 %v3952_v26  ;;  %3146 = vmatprep.subr.bf16.mxu1 %v3597_v33 }
 0x1e0   :  { %3147 = vmatpush3.bf16.msra.mxu1 %v3598_v21 }
 0x1e1   :  { %3148 = vmatprep.subr.bf16.mxu1 %v3599_v45 }
 0x1e4   :  { %3149 = vmatpush3.bf16.msra.mxu1 %v3600_v46 }
 0x1e5   :  { %3150 = vmatprep.subr.bf16.mxu1 %v3601_v48 }
 0x1e6   :  { %2343 = vmatmul.mubr.bf16.gmra.mxu1 %v3950_v6 }
 0x1e8   :  { %3151 = vmatpush3.bf16.msra.mxu1 %v3602_v49 }
 0x1e9   :  { %3152 = vmatprep.subr.bf16.mxu1 %v3603_v50 }
 0x1ec   :  { %3153 = vmatpush3.bf16.msra.mxu1 %v3604_v51 }
 0x20e   :  { %v2095_v52 = vpop.f32.mrf.mxu0 }
 0x20f   :  { %v2096_v9 = vadd.f32 %v2095_v52, %v3978_v36 }
 0x210   :  { %v2097_v56 = vpop.f32.mrf.mxu0 }
 0x211   :  { %v2098_v32 = vadd.f32 %v2097_v56, %v3973_v41 }
 0x212   :  { %v2099_v4 = vpop.f32.mrf.mxu0 }
 0x213   :  { %v2100_v58 = vadd.f32 %v2099_v4, %v3978_v36 }
 0x214   :  { %v2101_v57 = vpop.f32.mrf.mxu0 }
 0x215   :  { %v2102_v40 = vadd.f32 %v2101_v57, %v3973_v41 }
 0x216   :  { %v2105_v62 = vpop.f32.mrf.mxu0 }
 0x217   :  { %v2106_v25 = vadd.f32 %v2105_v62, %v3978_v36 }
 0x218   :  { %v2107_v24 = vpop.f32.mrf.mxu0 }
 0x219   :  { %v2108_v20 = vadd.f32 %v2107_v24, %v3973_v41 }
 0x21a   :  { %v2109_v6 = vpop.f32.mrf.mxu0 }
 0x21b   :  { %v2110_v22 = vadd.f32 %v2109_v6, %v3978_v36 }
 0x21c   :  { %v2111_v26 = vpop.f32.mrf.mxu0 }
 0x21d   :  { %v2112_v30 = vadd.f32 %v2111_v26, %v3973_v41 }
 0x21e   :  { %v2115_v10 = vpop.f32.mrf.mxu0 }
 0x21f   :  { %v2116_v46 = vadd.f32 %v2115_v10, %v3978_v36 }
 0x220   :  { %v2117_v47 = vpop.f32.mrf.mxu0 }
 0x221   :  { %v2118_v33 = vadd.f32 %v2117_v47, %v3973_v41 }
 0x222   :  { %v2119_v38 = vpop.f32.mrf.mxu0 }
 0x223   :  { %v2120_v21 = vadd.f32 %v2119_v38, %v3978_v36 }
 0x224   :  { %v2121_v18 = vpop.f32.mrf.mxu0 }
 0x225   :  { %v2122_v50 = vadd.f32 %v2121_v18, %v3973_v41 }
 0x226   :  { %v2125_v54 = vpop.f32.mrf.mxu0 }
 0x228   :  { %v2127_v39 = vpop.f32.mrf.mxu0 }
 0x229   :  { %v2128_v10 = vadd.f32 %v2127_v39, %v3973_v41 }
 0x22a   :  { %v2129_v56 = vpop.f32.mrf.mxu0 }
 0x22c   :  { %v2131_v47 = vpop.f32.mrf.mxu0 }
 0x24e   :  { %v2168_v44 = vpop.f32.mrf.mxu1 }
 0x24f   :  { %v2169_v1 = vadd.f32 %v2168_v44, %v2096_v9 }
 0x250   :  { %v2170_v7 = vpop.f32.mrf.mxu1 }
 0x251   :  { %v2171_v5 = vadd.f32 %v2170_v7, %v2098_v32  ;;  %v2353_v13 = vmax.f32 %v2169_v1, 0.0 }
 0x252   :  { %v2172_v59 = vpop.f32.mrf.mxu1 }
 0x253   :  { %v2173_v0 = vadd.f32 %v2172_v59, %v2100_v58  ;;  %v2354_v14 = vmax.f32 %v2171_v5, 0.0  ;;  %v2130_v58 = vadd.f32 %v2129_v56, %v3978_v36  ;;  %v2126_v59 = vadd.f32 %v2125_v54, %v3978_v36 }
 0x254   :  { %v2174_v61 = vpop.f32.mrf.mxu1 }
 0x255   :  { %v2175_v11 = vadd.f32 %v2174_v61, %v2102_v40  ;;  %v2357_v3 = vmax.f32 %v2173_v0, 0.0  ;;  %v2132_v0 = vadd.f32 %v2131_v47, %v3973_v41  ;;  %v2241_v61 = vpop.f32.mrf.mxu0 }
 0x256   :  { %v2178_v12 = vpop.f32.mrf.mxu1 }
 0x257   :  { %v2358_v17 = vmax.f32 %v2175_v11, 0.0  ;;  %v2385_v27 = vpack.c.bf16 %v2357_v3, %v2353_v13  ;;  %v2179_v55 = vadd.f32 %v2178_v12, %v2106_v25  ;;  %v2243_v13 = vpop.f32.mrf.mxu0 }
 0x258   :  { %v2180_v19 = vpop.f32.mrf.mxu1 }
 0x259   :  { %v2386_v23 = vpack.c.bf16 %v2358_v17, %v2354_v14  ;;  %v2181_v31 = vadd.f32 %v2180_v19, %v2108_v20  ;;  %v2361_v15 = vmax.f32 %v2179_v55, 0.0  ;;  %v2245_v36 = vpop.f32.mrf.mxu0 }
 0x25a   :  { %v2182_v29 = vpop.f32.mrf.mxu1 }
 0x25b   :  { %v2183_v53 = vadd.f32 %v2182_v29, %v2110_v22  ;;  %2696 = vmatprep.mubr.bf16.mxu0 %v2386_v23  ;;  %v2362_v16 = vmax.f32 %v2181_v31, 0.0  ;;  %v2247_v23 = vpop.f32.mrf.mxu0  ;;  %v3999_v31 = vrot.slane %v3968_v35, %v285_v28 }
 0x25c   :  { %v2184_v34 = vpop.f32.mrf.mxu1  ;;  %2697 = vmatmul.mubr.bf16.vlgmr.msra.gmra.mxu0 %v2385_v27 }
 0x25d   :  { %v2185_v43 = vadd.f32 %v2184_v34, %v2112_v30  ;;  %v2365_v2 = vmax.f32 %v2183_v53, 0.0  ;;  %v2251_v41 = vpop.f32.mrf.mxu0  ;;  %v4004_v53 = vrot.slane %v3968_v35, %v281_v60 }
 0x25e   :  { %v2188_v37 = vpop.f32.mrf.mxu1 }
 0x25f   :  { %v2366_v8 = vmax.f32 %v2185_v43, 0.0  ;;  %v2389_v48 = vpack.c.bf16 %v2365_v2, %v2361_v15  ;;  %v2189_v4 = vadd.f32 %v2188_v37, %v2116_v46  ;;  %v2253_v25 = vpop.f32.mrf.mxu0  ;;  %v2244_v43 = vadd.f32 %v2243_v13, %v3999_v31 }
 0x260   :  { %v2190_v42 = vpop.f32.mrf.mxu1  ;;  %v2246_v2 = vadd.f32 %v2245_v36, %v4004_v53  ;;  %v2242_v37 = vadd.f32 %v2241_v61, %v4004_v53  ;;  %v2252_v56 = vadd.f32 %v2251_v41, %v4004_v53 }
 0x261   :  { %v2390_v45 = vpack.c.bf16 %v2366_v8, %v2362_v16  ;;  %v2191_v51 = vadd.f32 %v2190_v42, %v2118_v33  ;;  %v2369_v7 = vmax.f32 %v2189_v4, 0.0  ;;  %v2255_v27 = vpop.f32.mrf.mxu0  ;;  %v2248_v8 = vadd.f32 %v2247_v23, %v3999_v31 }
 0x262   :  { %v2192_v49 = vpop.f32.mrf.mxu1 }
 0x263   :  { %v2193_v52 = vadd.f32 %v2192_v49, %v2120_v21  ;;  %2704 = vmatprep.mubr.bf16.mxu0 %v2390_v45  ;;  %v2370_v26 = vmax.f32 %v2191_v51, 0.0  ;;  %v2257_v29 = vpop.f32.mrf.mxu0  ;;  %v2256_v51 = vadd.f32 %v2255_v27, %v4004_v53 }
 0x264   :  { %v2194_v57 = vpop.f32.mrf.mxu1  ;;  %2705 = vmatmul.mubr.bf16.gmra.mxu0 %v2389_v48 }
 0x265   :  { %v2195_v62 = vadd.f32 %v2194_v57, %v2122_v50  ;;  %v2373_v24 = vmax.f32 %v2193_v52, 0.0  ;;  %v2261_v30 = vpop.f32.mrf.mxu0  ;;  %v2254_v50 = vadd.f32 %v2253_v25, %v3999_v31 }
 0x266   :  { %v2198_v6 = vpop.f32.mrf.mxu1  ;;  %v2262_v61 = vadd.f32 %v2261_v30, %v4004_v53 }
 0x267   :  { %v2374_v44 = vmax.f32 %v2195_v62, 0.0  ;;  %v2393_v40 = vpack.c.bf16 %v2373_v24, %v2369_v7  ;;  %v2199_v11 = vadd.f32 %v2198_v6, %v2126_v59  ;;  %v2263_v55 = vpop.f32.mrf.mxu0  ;;  %v2258_v62 = vadd.f32 %v2257_v29, %v3999_v31 }
 0x268   :  { %v2200_v32 = vpop.f32.mrf.mxu1 }
 0x269   :  { %v2394_v9 = vpack.c.bf16 %v2374_v44, %v2370_v26  ;;  %v2201_v38 = vadd.f32 %v2200_v32, %v2128_v10  ;;  %v2377_v19 = vmax.f32 %v2199_v11, 0.0  ;;  %v2265_v15 = vpop.f32.mrf.mxu0 }
 0x26a   :  { %v2202_v5 = vpop.f32.mrf.mxu1 }
 0x26b   :  { %v2203_v1 = vadd.f32 %v2202_v5, %v2130_v58  ;;  %2712 = vmatprep.mubr.bf16.mxu0 %v2394_v9  ;;  %v2378_v17 = vmax.f32 %v2201_v38, 0.0  ;;  %v2267_v46 = vpop.f32.mrf.mxu0  ;;  %v2266_v38 = vadd.f32 %v2265_v15, %v4004_v53 }
 0x26c   :  { %v2204_v3 = vpop.f32.mrf.mxu1  ;;  %2713 = vmatmul.mubr.bf16.gmra.mxu0 %v2393_v40 }
 0x26d   :  { %v2205_v12 = vadd.f32 %v2204_v3, %v2132_v0  ;;  %v2381_v14 = vmax.f32 %v2203_v1, 0.0  ;;  %v2271_v26 = vpop.f32.mrf.mxu0  ;;  %v2264_v0 = vadd.f32 %v2263_v55, %v3999_v31 }
 0x26f   :  { %v2382_v18 = vmax.f32 %v2205_v12, 0.0  ;;  %v2397_v22 = vpack.c.bf16 %v2381_v14, %v2377_v19  ;;  %v2273_v59 = vpop.f32.mrf.mxu0  ;;  %v2268_v12 = vadd.f32 %v2267_v46, %v3999_v31 }
 0x270   :  { %v2274_v30 = vadd.f32 %v2273_v59, %v3999_v31 }
 0x271   :  { %v2398_v20 = vpack.c.bf16 %v2382_v18, %v2378_v17  ;;  %v2275_v18 = vpop.f32.mrf.mxu0 }
 0x273   :  { %2720 = vmatprep.mubr.bf16.mxu0 %v2398_v20  ;;  %v2277_v25 = vpop.f32.mrf.mxu0 }
 0x274   :  { %2721 = vmatmul.mubr.bf16.gmra.mxu0 %v2397_v22 }
 0x28e   :  { %v2314_v54 = vpop.f32.mrf.mxu1 }
 0x28f   :  { %v2315_v42 = vadd.f32 %v2314_v54, %v2242_v37  ;;  %v2276_v54 = vadd.f32 %v2275_v18, %v4004_v53  ;;  %v2278_v37 = vadd.f32 %v2277_v25, %v3999_v31 }
 0x290   :  { %v2316_v34 = vpop.f32.mrf.mxu1 }
 0x291   :  { %v2317_v39 = vadd.f32 %v2316_v34, %v2244_v43  ;;  %v2355_v48 = vmax.f32 %v2315_v42, 0.0  ;;  %v2272_v34 = vadd.f32 %v2271_v26, %v4004_v53 }
 0x292   :  { %v2318_v16 = vpop.f32.mrf.mxu1 }
 0x293   :  { %v2319_v28 = vadd.f32 %v2318_v16, %v2246_v2  ;;  %v2356_v21 = vmax.f32 %v2317_v39, 0.0 }
 0x294   :  { %v2320_v63 = vpop.f32.mrf.mxu1 }
 0x295   :  { %v2321_v33 = vadd.f32 %v2320_v63, %v2248_v8  ;;  %v2359_v60 = vmax.f32 %v2319_v28, 0.0 }
 0x296   :  { %v2324_v35 = vpop.f32.mrf.mxu1 }
 0x297   :  { %v2360_v45 = vmax.f32 %v2321_v33, 0.0  ;;  %v2387_v4 = vpack.c.bf16 %v2359_v60, %v2355_v48  ;;  %v2325_v44 = vadd.f32 %v2324_v35, %v2252_v56 }
 0x298   :  { %v2326_v49 = vpop.f32.mrf.mxu1 }
 0x299   :  { %v2388_v52 = vpack.c.bf16 %v2360_v45, %v2356_v21  ;;  %v2327_v24 = vadd.f32 %v2326_v49, %v2254_v50  ;;  %v2363_v40 = vmax.f32 %v2325_v44, 0.0 }
 0x29a   :  { %v2328_v57 = vpop.f32.mrf.mxu1 }
 0x29b   :  { %v2329_v6 = vadd.f32 %v2328_v57, %v2256_v51  ;;  %2761 = vmatprep.mubr.bf16.mxu1 %v2388_v52  ;;  %v2364_v58 = vmax.f32 %v2327_v24, 0.0 }
 0x29c   :  { %v2330_v47 = vpop.f32.mrf.mxu1  ;;  %2762 = vmatmul.mubr.bf16.vlgmr.msra.gmra.mxu1 %v2387_v4  ;;  %v3065_v4 = vld [vmem:[%s4055_s6] ss:$0 sm:$0xff] }
 0x29d   :  { %v2331_v7 = vadd.f32 %v2330_v47, %v2258_v62  ;;  %v2367_v32 = vmax.f32 %v2329_v6, 0.0 }
 0x29e   :  { %v2334_v10 = vpop.f32.mrf.mxu1 }
 0x29f   :  { %v2368_v9 = vmax.f32 %v2331_v7, 0.0  ;;  %v2391_v11 = vpack.c.bf16 %v2367_v32, %v2363_v40  ;;  %v2335_v13 = vadd.f32 %v2334_v10, %v2262_v61 }
 0x2a0   :  { %v2336_v5 = vpop.f32.mrf.mxu1 }
 0x2a1   :  { %v2392_v1 = vpack.c.bf16 %v2368_v9, %v2364_v58  ;;  %v2337_v14 = vadd.f32 %v2336_v5, %v2264_v0  ;;  %v2371_v27 = vmax.f32 %v2335_v13, 0.0 }
 0x2a2   :  { %v2338_v3 = vpop.f32.mrf.mxu1 }
 0x2a3   :  { %v2339_v17 = vadd.f32 %v2338_v3, %v2266_v38  ;;  %2769 = vmatprep.mubr.bf16.mxu1 %v2392_v1  ;;  %v2372_v23 = vmax.f32 %v2337_v14, 0.0 }
 0x2a4   :  { %v2340_v19 = vpop.f32.mrf.mxu1  ;;  %2770 = vmatmul.mubr.bf16.gmra.mxu1 %v2391_v11 }
 0x2a5   :  { %v2341_v20 = vadd.f32 %v2340_v19, %v2268_v12  ;;  %v2375_v22 = vmax.f32 %v2339_v17, 0.0 }
 0x2a6   :  { %v2344_v36 = vpop.f32.mrf.mxu1 }
 0x2a7   :  { %v2376_v41 = vmax.f32 %v2341_v20, 0.0  ;;  %v2395_v43 = vpack.c.bf16 %v2375_v22, %v2371_v27  ;;  %v2345_v39 = vadd.f32 %v2344_v36, %v2272_v34 }
 0x2a8   :  { %v2346_v29 = vpop.f32.mrf.mxu1 }
 0x2a9   :  { %v2396_v55 = vpack.c.bf16 %v2376_v41, %v2372_v23  ;;  %v2347_v16 = vadd.f32 %v2346_v29, %v2274_v30  ;;  %v2379_v60 = vmax.f32 %v2345_v39, 0.0 }
 0x2aa   :  { %v2348_v2 = vpop.f32.mrf.mxu1 }
 0x2ab   :  { %v2349_v8 = vadd.f32 %v2348_v2, %v2276_v54  ;;  %2777 = vmatprep.mubr.bf16.mxu1 %v2396_v55  ;;  %v2380_v63 = vmax.f32 %v2347_v16, 0.0 }
 0x2ac   :  { %v2350_v28 = vpop.f32.mrf.mxu1  ;;  %2778 = vmatmul.mubr.bf16.gmra.mxu1 %v2395_v43 }
 0x2ad   :  { %v2351_v15 = vadd.f32 %v2350_v28, %v2278_v37  ;;  %v2383_v42 = vmax.f32 %v2349_v8, 0.0 }
 0x2af   :  { %v2384_v33 = vmax.f32 %v2351_v15, 0.0  ;;  %v2399_v21 = vpack.c.bf16 %v2383_v42, %v2379_v60 }
 0x2b1   :  { %v2400_v35 = vpack.c.bf16 %v2384_v33, %v2380_v63 }
 0x2b3   :  { %2785 = vmatprep.mubr.bf16.mxu1 %v2400_v35 }
 0x2b4   :  { %2786 = vmatmul.mubr.bf16.gmra.mxu1 %v2399_v21 }
 0x31c   :  { %v3114_v53 = vpop.f32.mrf.mxu0 }
 0x31e   :  { %v3115_v45 = vpop.f32.mrf.mxu0 }
 0x31f   :  { %v3116_v56 = vadd.f32 %v3115_v45, %v3114_v53 }
 0x320   :  { %v3117_v46 = vpop.f32.mrf.mxu0 }
 0x321   :  { %v2699_v6 = vadd.f32 %v3116_v56, %v3065_v4 }
 0x322   :  { %v3118_v48 = vpop.f32.mrf.mxu0 }
 0x323   :  { %v3119_v26 = vadd.f32 %v3118_v48, %v3117_v46 }
 0x324   :  { %v3120_v31 = vpop.f32.mrf.mxu0 }
 0x325   :  { %v2702_v58 = vadd.f32 %v3119_v26, %v3065_v4 }
 0x326   :  { %v3121_v49 = vpop.f32.mrf.mxu0 }
 0x327   :  { %v3122_v9 = vadd.f32 %v3121_v49, %v3120_v31 }
 0x328   :  { %v3123_v50 = vpop.f32.mrf.mxu0 }
 0x329   :  { %v2707_v1 = vadd.f32 %v3122_v9, %v3065_v4 }
 0x32a   :  { %v3124_v51 = vpop.f32.mrf.mxu0 }
 0x32b   :  { %v3125_v61 = vadd.f32 %v3124_v51, %v3123_v50 }
 0x32c   :  { %v3126_v52 = vpop.f32.mrf.mxu0 }
 0x32d   :  { %v2710_v18 = vadd.f32 %v3125_v61, %v3065_v4 }
 0x32e   :  { %v3127_v57 = vpop.f32.mrf.mxu0 }
 0x32f   :  { %v3128_v13 = vadd.f32 %v3127_v57, %v3126_v52 }
 0x330   :  { %v3129_v47 = vpop.f32.mrf.mxu0 }
 0x331   :  { %v2715_v41 = vadd.f32 %v3128_v13, %v3065_v4 }
 0x332   :  { %v3130_v40 = vpop.f32.mrf.mxu0 }
 0x333   :  { %v3131_v25 = vadd.f32 %v3130_v40, %v3129_v47 }
 0x334   :  { %v3132_v3 = vpop.f32.mrf.mxu0 }
 0x335   :  { %v2718_v34 = vadd.f32 %v3131_v25, %v3065_v4 }
 0x336   :  { %v3133_v20 = vpop.f32.mrf.mxu0 }
 0x337   :  { %v3134_v43 = vadd.f32 %v3133_v20, %v3132_v3 }
 0x338   :  { %v3135_v29 = vpop.f32.mrf.mxu0 }
 0x339   :  { %v2723_v28 = vadd.f32 %v3134_v43, %v3065_v4 }
 0x33a   :  { %v3136_v37 = vpop.f32.mrf.mxu0 }
 0x33b   :  { %v3137_v15 = vadd.f32 %v3136_v37, %v3135_v29 }
 0x33d   :  { %v2726_v35 = vadd.f32 %v3137_v15, %v3065_v4 }
 0x35c   :  { %v3154_v62 = vpop.f32.mrf.mxu1 }
 0x35e   :  { %v3155_v24 = vpop.f32.mrf.mxu1 }
 0x35f   :  { %v3156_v44 = vadd.f32 %v3155_v24, %v3154_v62 }
 0x360   :  { %v3157_v7 = vpop.f32.mrf.mxu1 }
 0x361   :  { %v2764_v32 = vadd.f32 %v3156_v44, %v2699_v6 }
 0x362   :  { %v3158_v10 = vpop.f32.mrf.mxu1 }
 0x363   :  { %2794 = vst [vmem:[%s4056_s7] sm:$0xff] %v2764_v32  ;;  %v3159_v59 = vadd.f32 %v3158_v10, %v3157_v7 }
 0x364   :  { %v3160_v5 = vpop.f32.mrf.mxu1 }
 0x365   :  { %v2767_v0 = vadd.f32 %v3159_v59, %v2702_v58 }
 0x366   :  { %v3161_v38 = vpop.f32.mrf.mxu1 }
 0x367   :  { %2795 = vst [vmem:[%s4056_s7 + $0x8] sm:$0xff] %v2767_v0  ;;  %v3162_v11 = vadd.f32 %v3161_v38, %v3160_v5 }
 0x368   :  { %v3163_v12 = vpop.f32.mrf.mxu1 }
 0x369   :  { %v2772_v14 = vadd.f32 %v3162_v11, %v2707_v1 }
 0x36a   :  { %v3164_v17 = vpop.f32.mrf.mxu1 }
 0x36b   :  { %2796 = vst [vmem:[%s4056_s7 + $0x10] sm:$0xff] %v2772_v14  ;;  %v3165_v19 = vadd.f32 %v3164_v17, %v3163_v12 }
 0x36c   :  { %v3166_v22 = vpop.f32.mrf.mxu1 }
 0x36d   :  { %v2775_v36 = vadd.f32 %v3165_v19, %v2710_v18 }
 0x36e   :  { %v3167_v23 = vpop.f32.mrf.mxu1 }
 0x36f   :  { %2797 = vst [vmem:[%s4056_s7 + $0x18] sm:$0xff] %v2775_v36  ;;  %v3168_v27 = vadd.f32 %v3167_v23, %v3166_v22 }
 0x370   :  { %v3169_v30 = vpop.f32.mrf.mxu1 }
 0x371   :  { %v2780_v54 = vadd.f32 %v3168_v27, %v2715_v41 }
 0x372   :  { %v3170_v55 = vpop.f32.mrf.mxu1 }
 0x373   :  { %2798 = vst [vmem:[%s4056_s7 + $0x20] sm:$0xff] %v2780_v54  ;;  %v3171_v2 = vadd.f32 %v3170_v55, %v3169_v30 }
 0x374   :  { %v3172_v16 = vpop.f32.mrf.mxu1 }
 0x375   :  { %v2783_v8 = vadd.f32 %v3171_v2, %v2718_v34 }
 0x376   :  { %v3173_v39 = vpop.f32.mrf.mxu1 }
 0x377   :  { %2799 = vst [vmem:[%s4056_s7 + $0x28] sm:$0xff] %v2783_v8  ;;  %v3174_v42 = vadd.f32 %v3173_v39, %v3172_v16 }
 0x378   :  { %v3175_v63 = vpop.f32.mrf.mxu1 }
 0x379   :  { %v2788_v33 = vadd.f32 %v3174_v42, %v2723_v28 }
 0x37a   :  { %v3176_v60 = vpop.f32.mrf.mxu1 }
 0x37b   :  { %2800 = vst [vmem:[%s4056_s7 + $0x30] sm:$0xff] %v2788_v33  ;;  %v3177_v21 = vadd.f32 %v3176_v60, %v3175_v63 }
 0x37d   :  { %v2791_v53 = vadd.f32 %v3177_v21, %v2726_v35 }
 0x37f   :  { %2801 = vst [vmem:[%s4056_s7 + $0x38] sm:$0xff] %v2791_v53 }
 0x380   :  { %2806 = vsyncpa [#allocation3], 1 }
 0x381   :  { %2807 = vsyncpa [#allocation5], 1 }
 0x382   :  { %2808 = vsyncpa [#allocation8], 1 }

</bundles_post_ra>
